<compile_context>
chip_gen: v7x
topology: tpu7x:2x2x1
jax: 0.10.0
libtpu: 0.0.40
codegen_flags: <defaults>
</compile_context>

<pallas_src>
import functools

import jax
import jax.numpy as jnp
from jax.experimental import pallas as pl
from jax.experimental.pallas import tpu as pltpu

# Logical layer sizes of the AE module:
#   encoder 784->128->64->36->18->9, decoder 9->18->36->64->128->784.
LAYER_DIMS = [28 * 28, 128, 64, 36, 18, 9, 18, 36, 64, 128, 28 * 28]
NUM_LAYERS = len(LAYER_DIMS) - 1  # 10 Linear layers
# Activations exactly as in the PyTorch module: ReLU after encoder layers 0-3,
# NO activation after the bottleneck Linear(18,9) (layer 4), ReLU after decoder
# layers 5-8, Sigmoid after the final layer 9.
ACTIVATIONS = ["relu"] * 4 + ["none"] + ["relu"] * 4 + ["sigmoid"]

LANE = 128
ROW_ALIGN = 16            # batch-tile granularity (bf16 sublane packing = 16)
MAX_BATCH_TILE = 512      # rows per grid step; keeps VMEM well under 64 MiB


def _round_up(n, m):
    return ((n + m - 1) // m) * m


def _padded_io(layer):
    """Padded (in, out) dims of a layer.  Hidden dims pad to 128 (lane-dense,
    full 128-wide MXU on v5e); the 784-wide input/output stay unpadded so no
    wrapper-side feature pad / slice is needed."""
    din, dout = LAYER_DIMS[layer], LAYER_DIMS[layer + 1]
    din_p = din if layer == 0 else _round_up(din, LANE)
    dout_p = dout if layer == NUM_LAYERS - 1 else _round_up(dout, LANE)
    return din_p, dout_p


# --------------------------------------------------------------------------
# Kernel: full 10-layer MLP chain on one batch tile, params VMEM-resident.
# --------------------------------------------------------------------------
def ae_kernel(x_ref, *refs):
    # refs = (w0, b0, w1, b1, ..., w9, b9, out_ref)
    out_ref = refs[-1]
    p = refs[:-1]

    h = x_ref[...]                                  # (bt, 784) bf16 or f32
    for layer in range(NUM_LAYERS):
        w = p[2 * layer][...]                       # (in_p, out_p)  bf16/f32
        b = p[2 * layer + 1][...]                   # (1,  out_p)   float32
        lhs = h if h.dtype == w.dtype else h.astype(w.dtype)
        h = jnp.dot(lhs, w, preferred_element_type=jnp.float32) + b
        act = ACTIVATIONS[layer]
        if act == "relu":
            h = jnp.maximum(h, 0.0)
        elif act == "sigmoid":
            h = jax.nn.sigmoid(h)
        # act == "none": bottleneck layer, identity.
    out_ref[...] = h.astype(out_ref.dtype)


# --------------------------------------------------------------------------
# Wrapper
# --------------------------------------------------------------------------
@functools.partial(jax.jit, static_argnames=("batch_tile", "single_buffer_params"))
def _ae_forward_impl(x, packed_params, *, batch_tile, single_buffer_params):
    B, F = x.shape
    assert F == LAYER_DIMS[0], f"expected {LAYER_DIMS[0]} input features, got {F}"
    w_dtype = packed_params[0].dtype
    out_dim = LAYER_DIMS[-1]

    B_pad = _round_up(B, batch_tile)
    x = x.astype(w_dtype)                            # bf16 by default
    if B_pad != B:
        x = jnp.pad(x, ((0, B_pad - B), (0, 0)))     # fused via allow_input_fusion

    grid = (B_pad // batch_tile,)

    # x tile follows the batch grid; every parameter is a full, constant block
    # (fetched once, resident in VMEM).  Single-buffer the resident params to
    # free ~0.7-1.4 MB of VMEM (fallback handled by the caller).
    in_specs = [pl.BlockSpec((batch_tile, F), lambda i: (i, 0))]
    for prm in packed_params:
        if single_buffer_params:
            in_specs.append(
                pl.BlockSpec(prm.shape, lambda i: (0, 0),
                             pipeline_mode=pl.Buffered(1)))
        else:
            in_specs.append(pl.BlockSpec(prm.shape, lambda i: (0, 0)))
    out_spec = pl.BlockSpec((batch_tile, out_dim), lambda i: (i, 0))

    # Scheduling hint for XLA.
    param_bytes = sum(int(prm.size) * prm.dtype.itemsize for prm in packed_params)
    flops = 2 * B_pad * sum(
        _padded_io(l)[0] * _padded_io(l)[1] for l in range(NUM_LAYERS))
    bytes_accessed = (int(x.size) * x.dtype.itemsize
                      + B_pad * out_dim * 4
                      + param_bytes)
    cost = pl.CostEstimate(flops=int(flops),
                           transcendentals=int(B_pad * out_dim),
                           bytes_accessed=int(bytes_accessed))

    # VMEM budget: double-buffered x/out tiles + params + live f32 activations.
    # Cap below v7x's 64 MiB physical VMEM (v5e/v6e have 128 MiB).
    x_tile_bytes = batch_tile * F * x.dtype.itemsize
    out_tile_bytes = batch_tile * out_dim * 4
    act_bytes = 2 * batch_tile * _round_up(F, LANE) * 4
    param_vmem = param_bytes * (1 if single_buffer_params else 2)
    est = 2 * (x_tile_bytes + out_tile_bytes) + param_vmem + act_bytes
    vmem_limit = int(min(56 * 1024 * 1024, max(32 * 1024 * 1024, 2 * est)))

    out = pl.pallas_call(
        ae_kernel,
        out_shape=jax.ShapeDtypeStruct((B_pad, out_dim), jnp.float32),
        grid_spec=pltpu.PrefetchScalarGridSpec(
            num_scalar_prefetch=0,
            grid=grid,
            in_specs=in_specs,
            out_specs=out_spec,
        ),
        compiler_params=pltpu.CompilerParams(
            dimension_semantics=("parallel",),      # batch tiles shard across TCs
            vmem_limit_bytes=vmem_limit,
            allow_input_fusion=[0],                 # fuse x pad / bf16 cast
        ),
        cost_estimate=cost,
    )(x, *packed_params)

    return out[:B] if B_pad != B else out


def _choose_batch_tile(B):
    """Adaptive batch tile: multiple of 16 rows; small batches use one exact
    tile (no wasted compute); larger batches get >=2 grid steps (v7x megacore)
    with tiles capped at MAX_BATCH_TILE rows."""
    b = _round_up(max(B, 1), ROW_ALIGN)
    if b < 2 * LANE:
        return b
    steps = max(2, -(-b // MAX_BATCH_TILE))
    return _round_up(-(-b // steps), ROW_ALIGN)


def ae_forward(x, packed_params, batch_tile=None):
    """x: (B, 784). packed_params: flat list [w0, b0, ..., w9, b9] from
    pack_params (weights (in_p, out_p), biases f32 (1, out_p))."""
    if batch_tile is None:
        batch_tile = _choose_batch_tile(x.shape[0])
    packed_params = tuple(packed_params)
    try:
        return _ae_forward_impl(x, packed_params, batch_tile=batch_tile,
                                single_buffer_params=True)
    except Exception:
        # pl.Buffered(1) not supported on this jax/libtpu: fall back to the
        # default double-buffered parameter specs.
        return _ae_forward_impl(x, packed_params, batch_tile=batch_tile,
                                single_buffer_params=False)


# --------------------------------------------------------------------------
# Parameter helpers
# --------------------------------------------------------------------------
def init_params(key):
    """Deterministic synthetic parameters matching the PyTorch module shapes
    (weights stored as (in, out) = transpose of torch's (out, in))."""
    params = []
    for i in range(NUM_LAYERS):
        fan_in, fan_out = LAYER_DIMS[i], LAYER_DIMS[i + 1]
        key, wk, bk = jax.random.split(key, 3)
        bound = 1.0 / float(fan_in) ** 0.5
        w = jax.random.uniform(wk, (fan_in, fan_out), jnp.float32, -bound, bound)
        b = jax.random.uniform(bk, (fan_out,), jnp.float32, -bound, bound)
        params.extend([w, b])
    return params


def pack_params(params, dtype=jnp.bfloat16):
    """Zero-pad hidden dims to 128 lanes.  Weights cast to `dtype` (bf16 by
    default: half the weight DMA bytes, 2x MXU rate, f32 accumulation kept
    in-kernel).  Biases kept float32 and pre-shaped (1, out_p) so the bias add
    is a plain broadcasted VPU add."""
    packed = []
    for i in range(NUM_LAYERS):
        w, b = params[2 * i], params[2 * i + 1]
        din_p, dout_p = _padded_io(i)
        w_p = jnp.zeros((din_p, dout_p), dtype)
        w_p = w_p.at[: w.shape[0], : w.shape[1]].set(w.astype(dtype))
        b_p = jnp.zeros((1, dout_p), jnp.float32)
        b_p = b_p.at[0, : b.shape[0]].set(b.astype(jnp.float32))
        packed.extend([w_p, b_p])
    return packed


def ae_reference(x, params):
    """Pure-JAX reference matching the PyTorch forward."""
    h = x
    for layer in range(NUM_LAYERS):
        w, b = params[2 * layer], params[2 * layer + 1]
        h = h @ w + b
        act = ACTIVATIONS[layer]
        if act == "relu":
            h = jnp.maximum(h, 0.0)
        elif act == "sigmoid":
            h = jax.nn.sigmoid(h)
    return h


# --------------------------------------------------------------------------
# Demo / correctness check
# --------------------------------------------------------------------------
if __name__ == "__main__":
    key = jax.random.PRNGKey(0)
    pkey, xkey, x2key = jax.random.split(key, 3)

    params = init_params(pkey)

    # Small demo batch.
    batch = 16
    x = jax.random.uniform(xkey, (batch, 28 * 28), jnp.float32)
    ref = ae_reference(x, params)

    # Default path: bf16 weights + bf16 input, f32 MXU accumulation.
    packed_bf16 = pack_params(params)                       # bf16 default
    out = jax.block_until_ready(ae_forward(x, packed_bf16))
    assert out.shape == (batch, 28 * 28) and out.dtype == jnp.float32
    assert float(jnp.max(jnp.abs(out - ref))) < 5e-2

    # f32 fallback path (tighter tolerance; robust to matmul-precision modes).
    packed_f32 = pack_params(params, jnp.float32)
    out_f32 = jax.block_until_ready(ae_forward(x, packed_f32))
    assert out_f32.shape == (batch, 28 * 28)
    assert float(jnp.max(jnp.abs(out_f32 - ref))) < 5e-3

    # Multi-step grid: forces batch padding + pipelining across batch tiles.
    x2 = jax.random.uniform(x2key, (40, 28 * 28), jnp.float32)
    ref2 = ae_reference(x2, params)
    out2 = jax.block_until_ready(ae_forward(x2, packed_bf16, batch_tile=16))
    assert out2.shape == (40, 28 * 28)
    assert float(jnp.max(jnp.abs(out2 - ref2))) < 5e-2

    print("KERNEL_OK")
</pallas_src>

<mosaic_0001>
module attributes {stable_mosaic.version = 11 : i64} {
  func.func @ae_kernel(%arg0: i32, %arg1: memref<16x784xbf16, #tpu.memory_space<vmem>>, %arg2: memref<784x128xbf16, #tpu.memory_space<vmem>>, %arg3: memref<1x128xf32, #tpu.memory_space<vmem>>, %arg4: memref<128x128xbf16, #tpu.memory_space<vmem>>, %arg5: memref<1x128xf32, #tpu.memory_space<vmem>>, %arg6: memref<128x128xbf16, #tpu.memory_space<vmem>>, %arg7: memref<1x128xf32, #tpu.memory_space<vmem>>, %arg8: memref<128x128xbf16, #tpu.memory_space<vmem>>, %arg9: memref<1x128xf32, #tpu.memory_space<vmem>>, %arg10: memref<128x128xbf16, #tpu.memory_space<vmem>>, %arg11: memref<1x128xf32, #tpu.memory_space<vmem>>, %arg12: memref<128x128xbf16, #tpu.memory_space<vmem>>, %arg13: memref<1x128xf32, #tpu.memory_space<vmem>>, %arg14: memref<128x128xbf16, #tpu.memory_space<vmem>>, %arg15: memref<1x128xf32, #tpu.memory_space<vmem>>, %arg16: memref<128x128xbf16, #tpu.memory_space<vmem>>, %arg17: memref<1x128xf32, #tpu.memory_space<vmem>>, %arg18: memref<128x128xbf16, #tpu.memory_space<vmem>>, %arg19: memref<1x128xf32, #tpu.memory_space<vmem>>, %arg20: memref<128x784xbf16, #tpu.memory_space<vmem>>, %arg21: memref<1x784xf32, #tpu.memory_space<vmem>>, %arg22: memref<16x784xf32, #tpu.memory_space<vmem>>) attributes {dimension_semantics = [#tpu.dimension_semantics<parallel>], iteration_bounds = array<i64: 1>, scalar_prefetch = 0 : i64, scratch_operands = 0 : i64, tpu.core_type = #tpu.core_type<tc>, window_params = [{transform_indices = @transform_0, window_bounds = array<i64: 16, 784>}, {pipeline_mode = #tpu.pipeline_mode<synchronous>, transform_indices = @transform_1, window_bounds = array<i64: 784, 128>}, {pipeline_mode = #tpu.pipeline_mode<synchronous>, transform_indices = @transform_2, window_bounds = array<i64: 1, 128>}, {pipeline_mode = #tpu.pipeline_mode<synchronous>, transform_indices = @transform_3, window_bounds = array<i64: 128, 128>}, {pipeline_mode = #tpu.pipeline_mode<synchronous>, transform_indices = @transform_4, window_bounds = array<i64: 1, 128>}, {pipeline_mode = #tpu.pipeline_mode<synchronous>, transform_indices = @transform_5, window_bounds = array<i64: 128, 128>}, {pipeline_mode = #tpu.pipeline_mode<synchronous>, transform_indices = @transform_6, window_bounds = array<i64: 1, 128>}, {pipeline_mode = #tpu.pipeline_mode<synchronous>, transform_indices = @transform_7, window_bounds = array<i64: 128, 128>}, {pipeline_mode = #tpu.pipeline_mode<synchronous>, transform_indices = @transform_8, window_bounds = array<i64: 1, 128>}, {pipeline_mode = #tpu.pipeline_mode<synchronous>, transform_indices = @transform_9, window_bounds = array<i64: 128, 128>}, {pipeline_mode = #tpu.pipeline_mode<synchronous>, transform_indices = @transform_10, window_bounds = array<i64: 1, 128>}, {pipeline_mode = #tpu.pipeline_mode<synchronous>, transform_indices = @transform_11, window_bounds = array<i64: 128, 128>}, {pipeline_mode = #tpu.pipeline_mode<synchronous>, transform_indices = @transform_12, window_bounds = array<i64: 1, 128>}, {pipeline_mode = #tpu.pipeline_mode<synchronous>, transform_indices = @transform_13, window_bounds = array<i64: 128, 128>}, {pipeline_mode = #tpu.pipeline_mode<synchronous>, transform_indices = @transform_14, window_bounds = array<i64: 1, 128>}, {pipeline_mode = #tpu.pipeline_mode<synchronous>, transform_indices = @transform_15, window_bounds = array<i64: 128, 128>}, {pipeline_mode = #tpu.pipeline_mode<synchronous>, transform_indices = @transform_16, window_bounds = array<i64: 1, 128>}, {pipeline_mode = #tpu.pipeline_mode<synchronous>, transform_indices = @transform_17, window_bounds = array<i64: 128, 128>}, {pipeline_mode = #tpu.pipeline_mode<synchronous>, transform_indices = @transform_18, window_bounds = array<i64: 1, 128>}, {pipeline_mode = #tpu.pipeline_mode<synchronous>, transform_indices = @transform_19, window_bounds = array<i64: 128, 784>}, {pipeline_mode = #tpu.pipeline_mode<synchronous>, transform_indices = @transform_20, window_bounds = array<i64: 1, 784>}, {transform_indices = @transform_21, window_bounds = array<i64: 16, 784>}]} {
    %c0 = arith.constant 0 : index
    %c0_0 = arith.constant 0 : index
    %0 = vector.load %arg1[%c0, %c0_0] : memref<16x784xbf16, #tpu.memory_space<vmem>>, vector<16x784xbf16>
    %c0_1 = arith.constant 0 : index
    %c0_2 = arith.constant 0 : index
    %1 = vector.load %arg2[%c0_1, %c0_2] : memref<784x128xbf16, #tpu.memory_space<vmem>>, vector<784x128xbf16>
    %c0_3 = arith.constant 0 : index
    %c0_4 = arith.constant 0 : index
    %2 = vector.load %arg3[%c0_3, %c0_4] : memref<1x128xf32, #tpu.memory_space<vmem>>, vector<1x128xf32>
    %cst = arith.constant dense<0.000000e+00> : vector<16x128xf32>
    %3 = tpu.matmul %0, %1, %cst {dimension_numbers = #tpu.dot_dimension_numbers<[1], [0], [0], [1], [0, 0, 1, 1], [], []>} : vector<16x784xbf16>, vector<784x128xbf16>, vector<16x128xf32> -> vector<16x128xf32>
    %4 = vector.broadcast %2 : vector<1x128xf32> to vector<16x128xf32>
    %5 = arith.addf %3, %4 : vector<16x128xf32>
    %cst_5 = arith.constant 0.000000e+00 : f32
    %6 = vector.broadcast %cst_5 : f32 to vector<16x128xf32>
    %7 = arith.maximumf %5, %6 : vector<16x128xf32>
    %c0_6 = arith.constant 0 : index
    %c0_7 = arith.constant 0 : index
    %8 = vector.load %arg4[%c0_6, %c0_7] : memref<128x128xbf16, #tpu.memory_space<vmem>>, vector<128x128xbf16>
    %c0_8 = arith.constant 0 : index
    %c0_9 = arith.constant 0 : index
    %9 = vector.load %arg5[%c0_8, %c0_9] : memref<1x128xf32, #tpu.memory_space<vmem>>, vector<1x128xf32>
    %10 = arith.truncf %7 : vector<16x128xf32> to vector<16x128xbf16>
    %cst_10 = arith.constant dense<0.000000e+00> : vector<16x128xf32>
    %11 = tpu.matmul %10, %8, %cst_10 {dimension_numbers = #tpu.dot_dimension_numbers<[1], [0], [0], [1], [0, 0, 1, 1], [], []>} : vector<16x128xbf16>, vector<128x128xbf16>, vector<16x128xf32> -> vector<16x128xf32>
    %12 = vector.broadcast %9 : vector<1x128xf32> to vector<16x128xf32>
    %13 = arith.addf %11, %12 : vector<16x128xf32>
    %cst_11 = arith.constant 0.000000e+00 : f32
    %14 = vector.broadcast %cst_11 : f32 to vector<16x128xf32>
    %15 = arith.maximumf %13, %14 : vector<16x128xf32>
    %c0_12 = arith.constant 0 : index
    %c0_13 = arith.constant 0 : index
    %16 = vector.load %arg6[%c0_12, %c0_13] : memref<128x128xbf16, #tpu.memory_space<vmem>>, vector<128x128xbf16>
    %c0_14 = arith.constant 0 : index
    %c0_15 = arith.constant 0 : index
    %17 = vector.load %arg7[%c0_14, %c0_15] : memref<1x128xf32, #tpu.memory_space<vmem>>, vector<1x128xf32>
    %18 = arith.truncf %15 : vector<16x128xf32> to vector<16x128xbf16>
    %cst_16 = arith.constant dense<0.000000e+00> : vector<16x128xf32>
    %19 = tpu.matmul %18, %16, %cst_16 {dimension_numbers = #tpu.dot_dimension_numbers<[1], [0], [0], [1], [0, 0, 1, 1], [], []>} : vector<16x128xbf16>, vector<128x128xbf16>, vector<16x128xf32> -> vector<16x128xf32>
    %20 = vector.broadcast %17 : vector<1x128xf32> to vector<16x128xf32>
    %21 = arith.addf %19, %20 : vector<16x128xf32>
    %cst_17 = arith.constant 0.000000e+00 : f32
    %22 = vector.broadcast %cst_17 : f32 to vector<16x128xf32>
    %23 = arith.maximumf %21, %22 : vector<16x128xf32>
    %c0_18 = arith.constant 0 : index
    %c0_19 = arith.constant 0 : index
    %24 = vector.load %arg8[%c0_18, %c0_19] : memref<128x128xbf16, #tpu.memory_space<vmem>>, vector<128x128xbf16>
    %c0_20 = arith.constant 0 : index
    %c0_21 = arith.constant 0 : index
    %25 = vector.load %arg9[%c0_20, %c0_21] : memref<1x128xf32, #tpu.memory_space<vmem>>, vector<1x128xf32>
    %26 = arith.truncf %23 : vector<16x128xf32> to vector<16x128xbf16>
    %cst_22 = arith.constant dense<0.000000e+00> : vector<16x128xf32>
    %27 = tpu.matmul %26, %24, %cst_22 {dimension_numbers = #tpu.dot_dimension_numbers<[1], [0], [0], [1], [0, 0, 1, 1], [], []>} : vector<16x128xbf16>, vector<128x128xbf16>, vector<16x128xf32> -> vector<16x128xf32>
    %28 = vector.broadcast %25 : vector<1x128xf32> to vector<16x128xf32>
    %29 = arith.addf %27, %28 : vector<16x128xf32>
    %cst_23 = arith.constant 0.000000e+00 : f32
    %30 = vector.broadcast %cst_23 : f32 to vector<16x128xf32>
    %31 = arith.maximumf %29, %30 : vector<16x128xf32>
    %c0_24 = arith.constant 0 : index
    %c0_25 = arith.constant 0 : index
    %32 = vector.load %arg10[%c0_24, %c0_25] : memref<128x128xbf16, #tpu.memory_space<vmem>>, vector<128x128xbf16>
    %c0_26 = arith.constant 0 : index
    %c0_27 = arith.constant 0 : index
    %33 = vector.load %arg11[%c0_26, %c0_27] : memref<1x128xf32, #tpu.memory_space<vmem>>, vector<1x128xf32>
    %34 = arith.truncf %31 : vector<16x128xf32> to vector<16x128xbf16>
    %cst_28 = arith.constant dense<0.000000e+00> : vector<16x128xf32>
    %35 = tpu.matmul %34, %32, %cst_28 {dimension_numbers = #tpu.dot_dimension_numbers<[1], [0], [0], [1], [0, 0, 1, 1], [], []>} : vector<16x128xbf16>, vector<128x128xbf16>, vector<16x128xf32> -> vector<16x128xf32>
    %36 = vector.broadcast %33 : vector<1x128xf32> to vector<16x128xf32>
    %37 = arith.addf %35, %36 : vector<16x128xf32>
    %c0_29 = arith.constant 0 : index
    %c0_30 = arith.constant 0 : index
    %38 = vector.load %arg12[%c0_29, %c0_30] : memref<128x128xbf16, #tpu.memory_space<vmem>>, vector<128x128xbf16>
    %c0_31 = arith.constant 0 : index
    %c0_32 = arith.constant 0 : index
    %39 = vector.load %arg13[%c0_31, %c0_32] : memref<1x128xf32, #tpu.memory_space<vmem>>, vector<1x128xf32>
    %40 = arith.truncf %37 : vector<16x128xf32> to vector<16x128xbf16>
    %cst_33 = arith.constant dense<0.000000e+00> : vector<16x128xf32>
    %41 = tpu.matmul %40, %38, %cst_33 {dimension_numbers = #tpu.dot_dimension_numbers<[1], [0], [0], [1], [0, 0, 1, 1], [], []>} : vector<16x128xbf16>, vector<128x128xbf16>, vector<16x128xf32> -> vector<16x128xf32>
    %42 = vector.broadcast %39 : vector<1x128xf32> to vector<16x128xf32>
    %43 = arith.addf %41, %42 : vector<16x128xf32>
    %cst_34 = arith.constant 0.000000e+00 : f32
    %44 = vector.broadcast %cst_34 : f32 to vector<16x128xf32>
    %45 = arith.maximumf %43, %44 : vector<16x128xf32>
    %c0_35 = arith.constant 0 : index
    %c0_36 = arith.constant 0 : index
    %46 = vector.load %arg14[%c0_35, %c0_36] : memref<128x128xbf16, #tpu.memory_space<vmem>>, vector<128x128xbf16>
    %c0_37 = arith.constant 0 : index
    %c0_38 = arith.constant 0 : index
    %47 = vector.load %arg15[%c0_37, %c0_38] : memref<1x128xf32, #tpu.memory_space<vmem>>, vector<1x128xf32>
    %48 = arith.truncf %45 : vector<16x128xf32> to vector<16x128xbf16>
    %cst_39 = arith.constant dense<0.000000e+00> : vector<16x128xf32>
    %49 = tpu.matmul %48, %46, %cst_39 {dimension_numbers = #tpu.dot_dimension_numbers<[1], [0], [0], [1], [0, 0, 1, 1], [], []>} : vector<16x128xbf16>, vector<128x128xbf16>, vector<16x128xf32> -> vector<16x128xf32>
    %50 = vector.broadcast %47 : vector<1x128xf32> to vector<16x128xf32>
    %51 = arith.addf %49, %50 : vector<16x128xf32>
    %cst_40 = arith.constant 0.000000e+00 : f32
    %52 = vector.broadcast %cst_40 : f32 to vector<16x128xf32>
    %53 = arith.maximumf %51, %52 : vector<16x128xf32>
    %c0_41 = arith.constant 0 : index
    %c0_42 = arith.constant 0 : index
    %54 = vector.load %arg16[%c0_41, %c0_42] : memref<128x128xbf16, #tpu.memory_space<vmem>>, vector<128x128xbf16>
    %c0_43 = arith.constant 0 : index
    %c0_44 = arith.constant 0 : index
    %55 = vector.load %arg17[%c0_43, %c0_44] : memref<1x128xf32, #tpu.memory_space<vmem>>, vector<1x128xf32>
    %56 = arith.truncf %53 : vector<16x128xf32> to vector<16x128xbf16>
    %cst_45 = arith.constant dense<0.000000e+00> : vector<16x128xf32>
    %57 = tpu.matmul %56, %54, %cst_45 {dimension_numbers = #tpu.dot_dimension_numbers<[1], [0], [0], [1], [0, 0, 1, 1], [], []>} : vector<16x128xbf16>, vector<128x128xbf16>, vector<16x128xf32> -> vector<16x128xf32>
    %58 = vector.broadcast %55 : vector<1x128xf32> to vector<16x128xf32>
    %59 = arith.addf %57, %58 : vector<16x128xf32>
    %cst_46 = arith.constant 0.000000e+00 : f32
    %60 = vector.broadcast %cst_46 : f32 to vector<16x128xf32>
    %61 = arith.maximumf %59, %60 : vector<16x128xf32>
    %c0_47 = arith.constant 0 : index
    %c0_48 = arith.constant 0 : index
    %62 = vector.load %arg18[%c0_47, %c0_48] : memref<128x128xbf16, #tpu.memory_space<vmem>>, vector<128x128xbf16>
    %c0_49 = arith.constant 0 : index
    %c0_50 = arith.constant 0 : index
    %63 = vector.load %arg19[%c0_49, %c0_50] : memref<1x128xf32, #tpu.memory_space<vmem>>, vector<1x128xf32>
    %64 = arith.truncf %61 : vector<16x128xf32> to vector<16x128xbf16>
    %cst_51 = arith.constant dense<0.000000e+00> : vector<16x128xf32>
    %65 = tpu.matmul %64, %62, %cst_51 {dimension_numbers = #tpu.dot_dimension_numbers<[1], [0], [0], [1], [0, 0, 1, 1], [], []>} : vector<16x128xbf16>, vector<128x128xbf16>, vector<16x128xf32> -> vector<16x128xf32>
    %66 = vector.broadcast %63 : vector<1x128xf32> to vector<16x128xf32>
    %67 = arith.addf %65, %66 : vector<16x128xf32>
    %cst_52 = arith.constant 0.000000e+00 : f32
    %68 = vector.broadcast %cst_52 : f32 to vector<16x128xf32>
    %69 = arith.maximumf %67, %68 : vector<16x128xf32>
    %c0_53 = arith.constant 0 : index
    %c0_54 = arith.constant 0 : index
    %70 = vector.load %arg20[%c0_53, %c0_54] : memref<128x784xbf16, #tpu.memory_space<vmem>>, vector<128x784xbf16>
    %c0_55 = arith.constant 0 : index
    %c0_56 = arith.constant 0 : index
    %71 = vector.load %arg21[%c0_55, %c0_56] : memref<1x784xf32, #tpu.memory_space<vmem>>, vector<1x784xf32>
    %72 = arith.truncf %69 : vector<16x128xf32> to vector<16x128xbf16>
    %cst_57 = arith.constant dense<0.000000e+00> : vector<16x784xf32>
    %73 = tpu.matmul %72, %70, %cst_57 {dimension_numbers = #tpu.dot_dimension_numbers<[1], [0], [0], [1], [0, 0, 1, 1], [], []>} : vector<16x128xbf16>, vector<128x784xbf16>, vector<16x784xf32> -> vector<16x784xf32>
    %74 = vector.broadcast %71 : vector<1x784xf32> to vector<16x784xf32>
    %75 = arith.addf %73, %74 : vector<16x784xf32>
    %76 = arith.negf %75 : vector<16x784xf32>
    %77 = math.exp %76 : vector<16x784xf32>
    %cst_58 = arith.constant 1.000000e+00 : f32
    %78 = vector.broadcast %cst_58 : f32 to vector<16x784xf32>
    %79 = arith.addf %78, %77 : vector<16x784xf32>
    %80 = arith.divf %78, %79 : vector<16x784xf32>
    %c0_59 = arith.constant 0 : index
    %c0_60 = arith.constant 0 : index
    %81 = vector.load %arg22[%c0_59, %c0_60] : memref<16x784xf32, #tpu.memory_space<vmem>>, vector<16x784xf32>
    tpu.vector_store %arg22[%c0_59, %c0_60], %80 {strides = array<i32>} : memref<16x784xf32, #tpu.memory_space<vmem>>, vector<16x784xf32>,
    return
  }
  func.func @transform_0(%arg0: i32) -> (i32, i32) {
    %c0_i32 = arith.constant 0 : i32
    %c0_i32_0 = arith.constant 0 : i32
    return %arg0, %c0_i32 : i32, i32
  }
  func.func @transform_1(%arg0: i32) -> (i32, i32) {
    %c0_i32 = arith.constant 0 : i32
    %c0_i32_0 = arith.constant 0 : i32
    %c0_i32_1 = arith.constant 0 : i32
    return %c0_i32, %c0_i32_0 : i32, i32
  }
  func.func @transform_2(%arg0: i32) -> (i32, i32) {
    %c0_i32 = arith.constant 0 : i32
    %c0_i32_0 = arith.constant 0 : i32
    %c0_i32_1 = arith.constant 0 : i32
    return %c0_i32, %c0_i32_0 : i32, i32
  }
  func.func @transform_3(%arg0: i32) -> (i32, i32) {
    %c0_i32 = arith.constant 0 : i32
    %c0_i32_0 = arith.constant 0 : i32
    %c0_i32_1 = arith.constant 0 : i32
    return %c0_i32, %c0_i32_0 : i32, i32
  }
  func.func @transform_4(%arg0: i32) -> (i32, i32) {
    %c0_i32 = arith.constant 0 : i32
    %c0_i32_0 = arith.constant 0 : i32
    %c0_i32_1 = arith.constant 0 : i32
    return %c0_i32, %c0_i32_0 : i32, i32
  }
  func.func @transform_5(%arg0: i32) -> (i32, i32) {
    %c0_i32 = arith.constant 0 : i32
    %c0_i32_0 = arith.constant 0 : i32
    %c0_i32_1 = arith.constant 0 : i32
    return %c0_i32, %c0_i32_0 : i32, i32
  }
  func.func @transform_6(%arg0: i32) -> (i32, i32) {
    %c0_i32 = arith.constant 0 : i32
    %c0_i32_0 = arith.constant 0 : i32
    %c0_i32_1 = arith.constant 0 : i32
    return %c0_i32, %c0_i32_0 : i32, i32
  }
  func.func @transform_7(%arg0: i32) -> (i32, i32) {
    %c0_i32 = arith.constant 0 : i32
    %c0_i32_0 = arith.constant 0 : i32
    %c0_i32_1 = arith.constant 0 : i32
    return %c0_i32, %c0_i32_0 : i32, i32
  }
  func.func @transform_8(%arg0: i32) -> (i32, i32) {
    %c0_i32 = arith.constant 0 : i32
    %c0_i32_0 = arith.constant 0 : i32
    %c0_i32_1 = arith.constant 0 : i32
    return %c0_i32, %c0_i32_0 : i32, i32
  }
  func.func @transform_9(%arg0: i32) -> (i32, i32) {
    %c0_i32 = arith.constant 0 : i32
    %c0_i32_0 = arith.constant 0 : i32
    %c0_i32_1 = arith.constant 0 : i32
    return %c0_i32, %c0_i32_0 : i32, i32
  }
  func.func @transform_10(%arg0: i32) -> (i32, i32) {
    %c0_i32 = arith.constant 0 : i32
    %c0_i32_0 = arith.constant 0 : i32
    %c0_i32_1 = arith.constant 0 : i32
    return %c0_i32, %c0_i32_0 : i32, i32
  }
  func.func @transform_11(%arg0: i32) -> (i32, i32) {
    %c0_i32 = arith.constant 0 : i32
    %c0_i32_0 = arith.constant 0 : i32
    %c0_i32_1 = arith.constant 0 : i32
    return %c0_i32, %c0_i32_0 : i32, i32
  }
  func.func @transform_12(%arg0: i32) -> (i32, i32) {
    %c0_i32 = arith.constant 0 : i32
    %c0_i32_0 = arith.constant 0 : i32
    %c0_i32_1 = arith.constant 0 : i32
    return %c0_i32, %c0_i32_0 : i32, i32
  }
  func.func @transform_13(%arg0: i32) -> (i32, i32) {
    %c0_i32 = arith.constant 0 : i32
    %c0_i32_0 = arith.constant 0 : i32
    %c0_i32_1 = arith.constant 0 : i32
    return %c0_i32, %c0_i32_0 : i32, i32
  }
  func.func @transform_14(%arg0: i32) -> (i32, i32) {
    %c0_i32 = arith.constant 0 : i32
    %c0_i32_0 = arith.constant 0 : i32
    %c0_i32_1 = arith.constant 0 : i32
    return %c0_i32, %c0_i32_0 : i32, i32
  }
  func.func @transform_15(%arg0: i32) -> (i32, i32) {
    %c0_i32 = arith.constant 0 : i32
    %c0_i32_0 = arith.constant 0 : i32
    %c0_i32_1 = arith.constant 0 : i32
    return %c0_i32, %c0_i32_0 : i32, i32
  }
  func.func @transform_16(%arg0: i32) -> (i32, i32) {
    %c0_i32 = arith.constant 0 : i32
    %c0_i32_0 = arith.constant 0 : i32
    %c0_i32_1 = arith.constant 0 : i32
    return %c0_i32, %c0_i32_0 : i32, i32
  }
  func.func @transform_17(%arg0: i32) -> (i32, i32) {
    %c0_i32 = arith.constant 0 : i32
    %c0_i32_0 = arith.constant 0 : i32
    %c0_i32_1 = arith.constant 0 : i32
    return %c0_i32, %c0_i32_0 : i32, i32
  }
  func.func @transform_18(%arg0: i32) -> (i32, i32) {
    %c0_i32 = arith.constant 0 : i32
    %c0_i32_0 = arith.constant 0 : i32
    %c0_i32_1 = arith.constant 0 : i32
    return %c0_i32, %c0_i32_0 : i32, i32
  }
  func.func @transform_19(%arg0: i32) -> (i32, i32) {
    %c0_i32 = arith.constant 0 : i32
    %c0_i32_0 = arith.constant 0 : i32
    %c0_i32_1 = arith.constant 0 : i32
    return %c0_i32, %c0_i32_0 : i32, i32
  }
  func.func @transform_20(%arg0: i32) -> (i32, i32) {
    %c0_i32 = arith.constant 0 : i32
    %c0_i32_0 = arith.constant 0 : i32
    %c0_i32_1 = arith.constant 0 : i32
    return %c0_i32, %c0_i32_0 : i32, i32
  }
  func.func @transform_21(%arg0: i32) -> (i32, i32) {
    %c0_i32 = arith.constant 0 : i32
    %c0_i32_0 = arith.constant 0 : i32
    return %arg0, %c0_i32 : i32, i32
  }
}

module attributes {stable_mosaic.version = 11 : i64} {
  func.func @ae_kernel(%arg0: i32, %arg1: memref<16x784xbf16, #tpu.memory_space<vmem>>, %arg2: memref<784x128xbf16, #tpu.memory_space<vmem>>, %arg3: memref<1x128xf32, #tpu.memory_space<vmem>>, %arg4: memref<128x128xbf16, #tpu.memory_space<vmem>>, %arg5: memref<1x128xf32, #tpu.memory_space<vmem>>, %arg6: memref<128x128xbf16, #tpu.memory_space<vmem>>, %arg7: memref<1x128xf32, #tpu.memory_space<vmem>>, %arg8: memref<128x128xbf16, #tpu.memory_space<vmem>>, %arg9: memref<1x128xf32, #tpu.memory_space<vmem>>, %arg10: memref<128x128xbf16, #tpu.memory_space<vmem>>, %arg11: memref<1x128xf32, #tpu.memory_space<vmem>>, %arg12: memref<128x128xbf16, #tpu.memory_space<vmem>>, %arg13: memref<1x128xf32, #tpu.memory_space<vmem>>, %arg14: memref<128x128xbf16, #tpu.memory_space<vmem>>, %arg15: memref<1x128xf32, #tpu.memory_space<vmem>>, %arg16: memref<128x128xbf16, #tpu.memory_space<vmem>>, %arg17: memref<1x128xf32, #tpu.memory_space<vmem>>, %arg18: memref<128x128xbf16, #tpu.memory_space<vmem>>, %arg19: memref<1x128xf32, #tpu.memory_space<vmem>>, %arg20: memref<128x784xbf16, #tpu.memory_space<vmem>>, %arg21: memref<1x784xf32, #tpu.memory_space<vmem>>, %arg22: memref<16x784xf32, #tpu.memory_space<vmem>>) attributes {dimension_semantics = [#tpu.dimension_semantics<parallel>], iteration_bounds = array<i64: 1>, scalar_prefetch = 0 : i64, scratch_operands = 0 : i64, tpu.core_type = #tpu.core_type<tc>, window_params = [{transform_indices = @transform_0, window_bounds = array<i64: 16, 784>}, {pipeline_mode = #tpu.pipeline_mode<synchronous>, transform_indices = @transform_1, window_bounds = array<i64: 784, 128>}, {pipeline_mode = #tpu.pipeline_mode<synchronous>, transform_indices = @transform_2, window_bounds = array<i64: 1, 128>}, {pipeline_mode = #tpu.pipeline_mode<synchronous>, transform_indices = @transform_3, window_bounds = array<i64: 128, 128>}, {pipeline_mode = #tpu.pipeline_mode<synchronous>, transform_indices = @transform_4, window_bounds = array<i64: 1, 128>}, {pipeline_mode = #tpu.pipeline_mode<synchronous>, transform_indices = @transform_5, window_bounds = array<i64: 128, 128>}, {pipeline_mode = #tpu.pipeline_mode<synchronous>, transform_indices = @transform_6, window_bounds = array<i64: 1, 128>}, {pipeline_mode = #tpu.pipeline_mode<synchronous>, transform_indices = @transform_7, window_bounds = array<i64: 128, 128>}, {pipeline_mode = #tpu.pipeline_mode<synchronous>, transform_indices = @transform_8, window_bounds = array<i64: 1, 128>}, {pipeline_mode = #tpu.pipeline_mode<synchronous>, transform_indices = @transform_9, window_bounds = array<i64: 128, 128>}, {pipeline_mode = #tpu.pipeline_mode<synchronous>, transform_indices = @transform_10, window_bounds = array<i64: 1, 128>}, {pipeline_mode = #tpu.pipeline_mode<synchronous>, transform_indices = @transform_11, window_bounds = array<i64: 128, 128>}, {pipeline_mode = #tpu.pipeline_mode<synchronous>, transform_indices = @transform_12, window_bounds = array<i64: 1, 128>}, {pipeline_mode = #tpu.pipeline_mode<synchronous>, transform_indices = @transform_13, window_bounds = array<i64: 128, 128>}, {pipeline_mode = #tpu.pipeline_mode<synchronous>, transform_indices = @transform_14, window_bounds = array<i64: 1, 128>}, {pipeline_mode = #tpu.pipeline_mode<synchronous>, transform_indices = @transform_15, window_bounds = array<i64: 128, 128>}, {pipeline_mode = #tpu.pipeline_mode<synchronous>, transform_indices = @transform_16, window_bounds = array<i64: 1, 128>}, {pipeline_mode = #tpu.pipeline_mode<synchronous>, transform_indices = @transform_17, window_bounds = array<i64: 128, 128>}, {pipeline_mode = #tpu.pipeline_mode<synchronous>, transform_indices = @transform_18, window_bounds = array<i64: 1, 128>}, {pipeline_mode = #tpu.pipeline_mode<synchronous>, transform_indices = @transform_19, window_bounds = array<i64: 128, 784>}, {pipeline_mode = #tpu.pipeline_mode<synchronous>, transform_indices = @transform_20, window_bounds = array<i64: 1, 784>}, {transform_indices = @transform_21, window_bounds = array<i64: 16, 784>}]} {
    %c0 = arith.constant 0 : index
    %c0_0 = arith.constant 0 : index
    %0 = vector.load %arg1[%c0, %c0_0] : memref<16x784xbf16, #tpu.memory_space<vmem>>, vector<16x784xbf16>
    %c0_1 = arith.constant 0 : index
    %c0_2 = arith.constant 0 : index
    %1 = vector.load %arg2[%c0_1, %c0_2] : memref<784x128xbf16, #tpu.memory_space<vmem>>, vector<784x128xbf16>
    %c0_3 = arith.constant 0 : index
    %c0_4 = arith.constant 0 : index
    %2 = vector.load %arg3[%c0_3, %c0_4] : memref<1x128xf32, #tpu.memory_space<vmem>>, vector<1x128xf32>
    %cst = arith.constant dense<0.000000e+00> : vector<16x128xf32>
    %3 = tpu.matmul %0, %1, %cst {dimension_numbers = #tpu.dot_dimension_numbers<[1], [0], [0], [1], [0, 0, 1, 1], [], []>} : vector<16x784xbf16>, vector<784x128xbf16>, vector<16x128xf32> -> vector<16x128xf32>
    %4 = vector.broadcast %2 : vector<1x128xf32> to vector<16x128xf32>
    %5 = arith.addf %3, %4 : vector<16x128xf32>
    %cst_5 = arith.constant 0.000000e+00 : f32
    %6 = vector.broadcast %cst_5 : f32 to vector<16x128xf32>
    %7 = arith.maximumf %5, %6 : vector<16x128xf32>
    %c0_6 = arith.constant 0 : index
    %c0_7 = arith.constant 0 : index
    %8 = vector.load %arg4[%c0_6, %c0_7] : memref<128x128xbf16, #tpu.memory_space<vmem>>, vector<128x128xbf16>
    %c0_8 = arith.constant 0 : index
    %c0_9 = arith.constant 0 : index
    %9 = vector.load %arg5[%c0_8, %c0_9] : memref<1x128xf32, #tpu.memory_space<vmem>>, vector<1x128xf32>
    %10 = arith.truncf %7 : vector<16x128xf32> to vector<16x128xbf16>
    %cst_10 = arith.constant dense<0.000000e+00> : vector<16x128xf32>
    %11 = tpu.matmul %10, %8, %cst_10 {dimension_numbers = #tpu.dot_dimension_numbers<[1], [0], [0], [1], [0, 0, 1, 1], [], []>} : vector<16x128xbf16>, vector<128x128xbf16>, vector<16x128xf32> -> vector<16x128xf32>
    %12 = vector.broadcast %9 : vector<1x128xf32> to vector<16x128xf32>
    %13 = arith.addf %11, %12 : vector<16x128xf32>
    %cst_11 = arith.constant 0.000000e+00 : f32
    %14 = vector.broadcast %cst_11 : f32 to vector<16x128xf32>
    %15 = arith.maximumf %13, %14 : vector<16x128xf32>
    %c0_12 = arith.constant 0 : index
    %c0_13 = arith.constant 0 : index
    %16 = vector.load %arg6[%c0_12, %c0_13] : memref<128x128xbf16, #tpu.memory_space<vmem>>, vector<128x128xbf16>
    %c0_14 = arith.constant 0 : index
    %c0_15 = arith.constant 0 : index
    %17 = vector.load %arg7[%c0_14, %c0_15] : memref<1x128xf32, #tpu.memory_space<vmem>>, vector<1x128xf32>
    %18 = arith.truncf %15 : vector<16x128xf32> to vector<16x128xbf16>
    %cst_16 = arith.constant dense<0.000000e+00> : vector<16x128xf32>
    %19 = tpu.matmul %18, %16, %cst_16 {dimension_numbers = #tpu.dot_dimension_numbers<[1], [0], [0], [1], [0, 0, 1, 1], [], []>} : vector<16x128xbf16>, vector<128x128xbf16>, vector<16x128xf32> -> vector<16x128xf32>
    %20 = vector.broadcast %17 : vector<1x128xf32> to vector<16x128xf32>
    %21 = arith.addf %19, %20 : vector<16x128xf32>
    %cst_17 = arith.constant 0.000000e+00 : f32
    %22 = vector.broadcast %cst_17 : f32 to vector<16x128xf32>
    %23 = arith.maximumf %21, %22 : vector<16x128xf32>
    %c0_18 = arith.constant 0 : index
    %c0_19 = arith.constant 0 : index
    %24 = vector.load %arg8[%c0_18, %c0_19] : memref<128x128xbf16, #tpu.memory_space<vmem>>, vector<128x128xbf16>
    %c0_20 = arith.constant 0 : index
    %c0_21 = arith.constant 0 : index
    %25 = vector.load %arg9[%c0_20, %c0_21] : memref<1x128xf32, #tpu.memory_space<vmem>>, vector<1x128xf32>
    %26 = arith.truncf %23 : vector<16x128xf32> to vector<16x128xbf16>
    %cst_22 = arith.constant dense<0.000000e+00> : vector<16x128xf32>
    %27 = tpu.matmul %26, %24, %cst_22 {dimension_numbers = #tpu.dot_dimension_numbers<[1], [0], [0], [1], [0, 0, 1, 1], [], []>} : vector<16x128xbf16>, vector<128x128xbf16>, vector<16x128xf32> -> vector<16x128xf32>
    %28 = vector.broadcast %25 : vector<1x128xf32> to vector<16x128xf32>
    %29 = arith.addf %27, %28 : vector<16x128xf32>
    %cst_23 = arith.constant 0.000000e+00 : f32
    %30 = vector.broadcast %cst_23 : f32 to vector<16x128xf32>
    %31 = arith.maximumf %29, %30 : vector<16x128xf32>
    %c0_24 = arith.constant 0 : index
    %c0_25 = arith.constant 0 : index
    %32 = vector.load %arg10[%c0_24, %c0_25] : memref<128x128xbf16, #tpu.memory_space<vmem>>, vector<128x128xbf16>
    %c0_26 = arith.constant 0 : index
    %c0_27 = arith.constant 0 : index
    %33 = vector.load %arg11[%c0_26, %c0_27] : memref<1x128xf32, #tpu.memory_space<vmem>>, vector<1x128xf32>
    %34 = arith.truncf %31 : vector<16x128xf32> to vector<16x128xbf16>
    %cst_28 = arith.constant dense<0.000000e+00> : vector<16x128xf32>
    %35 = tpu.matmul %34, %32, %cst_28 {dimension_numbers = #tpu.dot_dimension_numbers<[1], [0], [0], [1], [0, 0, 1, 1], [], []>} : vector<16x128xbf16>, vector<128x128xbf16>, vector<16x128xf32> -> vector<16x128xf32>
    %36 = vector.broadcast %33 : vector<1x128xf32> to vector<16x128xf32>
    %37 = arith.addf %35, %36 : vector<16x128xf32>
    %c0_29 = arith.constant 0 : index
    %c0_30 = arith.constant 0 : index
    %38 = vector.load %arg12[%c0_29, %c0_30] : memref<128x128xbf16, #tpu.memory_space<vmem>>, vector<128x128xbf16>
    %c0_31 = arith.constant 0 : index
    %c0_32 = arith.constant 0 : index
    %39 = vector.load %arg13[%c0_31, %c0_32] : memref<1x128xf32, #tpu.memory_space<vmem>>, vector<1x128xf32>
    %40 = arith.truncf %37 : vector<16x128xf32> to vector<16x128xbf16>
    %cst_33 = arith.constant dense<0.000000e+00> : vector<16x128xf32>
    %41 = tpu.matmul %40, %38, %cst_33 {dimension_numbers = #tpu.dot_dimension_numbers<[1], [0], [0], [1], [0, 0, 1, 1], [], []>} : vector<16x128xbf16>, vector<128x128xbf16>, vector<16x128xf32> -> vector<16x128xf32>
    %42 = vector.broadcast %39 : vector<1x128xf32> to vector<16x128xf32>
    %43 = arith.addf %41, %42 : vector<16x128xf32>
    %cst_34 = arith.constant 0.000000e+00 : f32
    %44 = vector.broadcast %cst_34 : f32 to vector<16x128xf32>
    %45 = arith.maximumf %43, %44 : vector<16x128xf32>
    %c0_35 = arith.constant 0 : index
    %c0_36 = arith.constant 0 : index
    %46 = vector.load %arg14[%c0_35, %c0_36] : memref<128x128xbf16, #tpu.memory_space<vmem>>, vector<128x128xbf16>
    %c0_37 = arith.constant 0 : index
    %c0_38 = arith.constant 0 : index
    %47 = vector.load %arg15[%c0_37, %c0_38] : memref<1x128xf32, #tpu.memory_space<vmem>>, vector<1x128xf32>
    %48 = arith.truncf %45 : vector<16x128xf32> to vector<16x128xbf16>
    %cst_39 = arith.constant dense<0.000000e+00> : vector<16x128xf32>
    %49 = tpu.matmul %48, %46, %cst_39 {dimension_numbers = #tpu.dot_dimension_numbers<[1], [0], [0], [1], [0, 0, 1, 1], [], []>} : vector<16x128xbf16>, vector<128x128xbf16>, vector<16x128xf32> -> vector<16x128xf32>
    %50 = vector.broadcast %47 : vector<1x128xf32> to vector<16x128xf32>
    %51 = arith.addf %49, %50 : vector<16x128xf32>
    %cst_40 = arith.constant 0.000000e+00 : f32
    %52 = vector.broadcast %cst_40 : f32 to vector<16x128xf32>
    %53 = arith.maximumf %51, %52 : vector<16x128xf32>
    %c0_41 = arith.constant 0 : index
    %c0_42 = arith.constant 0 : index
    %54 = vector.load %arg16[%c0_41, %c0_42] : memref<128x128xbf16, #tpu.memory_space<vmem>>, vector<128x128xbf16>
    %c0_43 = arith.constant 0 : index
    %c0_44 = arith.constant 0 : index
    %55 = vector.load %arg17[%c0_43, %c0_44] : memref<1x128xf32, #tpu.memory_space<vmem>>, vector<1x128xf32>
    %56 = arith.truncf %53 : vector<16x128xf32> to vector<16x128xbf16>
    %cst_45 = arith.constant dense<0.000000e+00> : vector<16x128xf32>
    %57 = tpu.matmul %56, %54, %cst_45 {dimension_numbers = #tpu.dot_dimension_numbers<[1], [0], [0], [1], [0, 0, 1, 1], [], []>} : vector<16x128xbf16>, vector<128x128xbf16>, vector<16x128xf32> -> vector<16x128xf32>
    %58 = vector.broadcast %55 : vector<1x128xf32> to vector<16x128xf32>
    %59 = arith.addf %57, %58 : vector<16x128xf32>
    %cst_46 = arith.constant 0.000000e+00 : f32
    %60 = vector.broadcast %cst_46 : f32 to vector<16x128xf32>
    %61 = arith.maximumf %59, %60 : vector<16x128xf32>
    %c0_47 = arith.constant 0 : index
    %c0_48 = arith.constant 0 : index
    %62 = vector.load %arg18[%c0_47, %c0_48] : memref<128x128xbf16, #tpu.memory_space<vmem>>, vector<128x128xbf16>
    %c0_49 = arith.constant 0 : index
    %c0_50 = arith.constant 0 : index
    %63 = vector.load %arg19[%c0_49, %c0_50] : memref<1x128xf32, #tpu.memory_space<vmem>>, vector<1x128xf32>
    %64 = arith.truncf %61 : vector<16x128xf32> to vector<16x128xbf16>
    %cst_51 = arith.constant dense<0.000000e+00> : vector<16x128xf32>
    %65 = tpu.matmul %64, %62, %cst_51 {dimension_numbers = #tpu.dot_dimension_numbers<[1], [0], [0], [1], [0, 0, 1, 1], [], []>} : vector<16x128xbf16>, vector<128x128xbf16>, vector<16x128xf32> -> vector<16x128xf32>
    %66 = vector.broadcast %63 : vector<1x128xf32> to vector<16x128xf32>
    %67 = arith.addf %65, %66 : vector<16x128xf32>
    %cst_52 = arith.constant 0.000000e+00 : f32
    %68 = vector.broadcast %cst_52 : f32 to vector<16x128xf32>
    %69 = arith.maximumf %67, %68 : vector<16x128xf32>
    %c0_53 = arith.constant 0 : index
    %c0_54 = arith.constant 0 : index
    %70 = vector.load %arg20[%c0_53, %c0_54] : memref<128x784xbf16, #tpu.memory_space<vmem>>, vector<128x784xbf16>
    %c0_55 = arith.constant 0 : index
    %c0_56 = arith.constant 0 : index
    %71 = vector.load %arg21[%c0_55, %c0_56] : memref<1x784xf32, #tpu.memory_space<vmem>>, vector<1x784xf32>
    %72 = arith.truncf %69 : vector<16x128xf32> to vector<16x128xbf16>
    %cst_57 = arith.constant dense<0.000000e+00> : vector<16x784xf32>
    %73 = tpu.matmul %72, %70, %cst_57 {dimension_numbers = #tpu.dot_dimension_numbers<[1], [0], [0], [1], [0, 0, 1, 1], [], []>} : vector<16x128xbf16>, vector<128x784xbf16>, vector<16x784xf32> -> vector<16x784xf32>
    %74 = vector.broadcast %71 : vector<1x784xf32> to vector<16x784xf32>
    %75 = arith.addf %73, %74 : vector<16x784xf32>
    %76 = arith.negf %75 : vector<16x784xf32>
    %77 = math.exp %76 : vector<16x784xf32>
    %cst_58 = arith.constant 1.000000e+00 : f32
    %78 = vector.broadcast %cst_58 : f32 to vector<16x784xf32>
    %79 = arith.addf %78, %77 : vector<16x784xf32>
    %80 = arith.divf %78, %79 : vector<16x784xf32>
    %c0_59 = arith.constant 0 : index
    %c0_60 = arith.constant 0 : index
    %81 = vector.load %arg22[%c0_59, %c0_60] : memref<16x784xf32, #tpu.memory_space<vmem>>, vector<16x784xf32>
    tpu.vector_store %arg22[%c0_59, %c0_60], %80 {strides = array<i32>} : memref<16x784xf32, #tpu.memory_space<vmem>>, vector<16x784xf32>,
    return
  }
  func.func @transform_0(%arg0: i32) -> (i32, i32) {
    %c0_i32 = arith.constant 0 : i32
    %c0_i32_0 = arith.constant 0 : i32
    return %arg0, %c0_i32 : i32, i32
  }
  func.func @transform_1(%arg0: i32) -> (i32, i32) {
    %c0_i32 = arith.constant 0 : i32
    %c0_i32_0 = arith.constant 0 : i32
    %c0_i32_1 = arith.constant 0 : i32
    return %c0_i32, %c0_i32_0 : i32, i32
  }
  func.func @transform_2(%arg0: i32) -> (i32, i32) {
    %c0_i32 = arith.constant 0 : i32
    %c0_i32_0 = arith.constant 0 : i32
    %c0_i32_1 = arith.constant 0 : i32
    return %c0_i32, %c0_i32_0 : i32, i32
  }
  func.func @transform_3(%arg0: i32) -> (i32, i32) {
    %c0_i32 = arith.constant 0 : i32
    %c0_i32_0 = arith.constant 0 : i32
    %c0_i32_1 = arith.constant 0 : i32
    return %c0_i32, %c0_i32_0 : i32, i32
  }
  func.func @transform_4(%arg0: i32) -> (i32, i32) {
    %c0_i32 = arith.constant 0 : i32
    %c0_i32_0 = arith.constant 0 : i32
    %c0_i32_1 = arith.constant 0 : i32
    return %c0_i32, %c0_i32_0 : i32, i32
  }
  func.func @transform_5(%arg0: i32) -> (i32, i32) {
    %c0_i32 = arith.constant 0 : i32
    %c0_i32_0 = arith.constant 0 : i32
    %c0_i32_1 = arith.constant 0 : i32
    return %c0_i32, %c0_i32_0 : i32, i32
  }
  func.func @transform_6(%arg0: i32) -> (i32, i32) {
    %c0_i32 = arith.constant 0 : i32
    %c0_i32_0 = arith.constant 0 : i32
    %c0_i32_1 = arith.constant 0 : i32
    return %c0_i32, %c0_i32_0 : i32, i32
  }
  func.func @transform_7(%arg0: i32) -> (i32, i32) {
    %c0_i32 = arith.constant 0 : i32
    %c0_i32_0 = arith.constant 0 : i32
    %c0_i32_1 = arith.constant 0 : i32
    return %c0_i32, %c0_i32_0 : i32, i32
  }
  func.func @transform_8(%arg0: i32) -> (i32, i32) {
    %c0_i32 = arith.constant 0 : i32
    %c0_i32_0 = arith.constant 0 : i32
    %c0_i32_1 = arith.constant 0 : i32
    return %c0_i32, %c0_i32_0 : i32, i32
  }
  func.func @transform_9(%arg0: i32) -> (i32, i32) {
    %c0_i32 = arith.constant 0 : i32
    %c0_i32_0 = arith.constant 0 : i32
    %c0_i32_1 = arith.constant 0 : i32
    return %c0_i32, %c0_i32_0 : i32, i32
  }
  func.func @transform_10(%arg0: i32) -> (i32, i32) {
    %c0_i32 = arith.constant 0 : i32
    %c0_i32_0 = arith.constant 0 : i32
    %c0_i32_1 = arith.constant 0 : i32
    return %c0_i32, %c0_i32_0 : i32, i32
  }
  func.func @transform_11(%arg0: i32) -> (i32, i32) {
    %c0_i32 = arith.constant 0 : i32
    %c0_i32_0 = arith.constant 0 : i32
    %c0_i32_1 = arith.constant 0 : i32
    return %c0_i32, %c0_i32_0 : i32, i32
  }
  func.func @transform_12(%arg0: i32) -> (i32, i32) {
    %c0_i32 = arith.constant 0 : i32
    %c0_i32_0 = arith.constant 0 : i32
    %c0_i32_1 = arith.constant 0 : i32
    return %c0_i32, %c0_i32_0 : i32, i32
  }
  func.func @transform_13(%arg0: i32) -> (i32, i32) {
    %c0_i32 = arith.constant 0 : i32
    %c0_i32_0 = arith.constant 0 : i32
    %c0_i32_1 = arith.constant 0 : i32
    return %c0_i32, %c0_i32_0 : i32, i32
  }
  func.func @transform_14(%arg0: i32) -> (i32, i32) {
    %c0_i32 = arith.constant 0 : i32
    %c0_i32_0 = arith.constant 0 : i32
    %c0_i32_1 = arith.constant 0 : i32
    return %c0_i32, %c0_i32_0 : i32, i32
  }
  func.func @transform_15(%arg0: i32) -> (i32, i32) {
    %c0_i32 = arith.constant 0 : i32
    %c0_i32_0 = arith.constant 0 : i32
    %c0_i32_1 = arith.constant 0 : i32
    return %c0_i32, %c0_i32_0 : i32, i32
  }
  func.func @transform_16(%arg0: i32) -> (i32, i32) {
    %c0_i32 = arith.constant 0 : i32
    %c0_i32_0 = arith.constant 0 : i32
    %c0_i32_1 = arith.constant 0 : i32
    return %c0_i32, %c0_i32_0 : i32, i32
  }
  func.func @transform_17(%arg0: i32) -> (i32, i32) {
    %c0_i32 = arith.constant 0 : i32
    %c0_i32_0 = arith.constant 0 : i32
    %c0_i32_1 = arith.constant 0 : i32
    return %c0_i32, %c0_i32_0 : i32, i32
  }
  func.func @transform_18(%arg0: i32) -> (i32, i32) {
    %c0_i32 = arith.constant 0 : i32
    %c0_i32_0 = arith.constant 0 : i32
    %c0_i32_1 = arith.constant 0 : i32
    return %c0_i32, %c0_i32_0 : i32, i32
  }
  func.func @transform_19(%arg0: i32) -> (i32, i32) {
    %c0_i32 = arith.constant 0 : i32
    %c0_i32_0 = arith.constant 0 : i32
    %c0_i32_1 = arith.constant 0 : i32
    return %c0_i32, %c0_i32_0 : i32, i32
  }
  func.func @transform_20(%arg0: i32) -> (i32, i32) {
    %c0_i32 = arith.constant 0 : i32
    %c0_i32_0 = arith.constant 0 : i32
    %c0_i32_1 = arith.constant 0 : i32
    return %c0_i32, %c0_i32_0 : i32, i32
  }
  func.func @transform_21(%arg0: i32) -> (i32, i32) {
    %c0_i32 = arith.constant 0 : i32
    %c0_i32_0 = arith.constant 0 : i32
    return %arg0, %c0_i32 : i32, i32
  }
}

</mosaic_0001>

<bundles_post_ra>
// kernel: _ae_forward_impl.1
= control target key start
LH: loop header
LB: loop body
LE: loop exit
PB: predicated region body
PF: predicated region fallthrough
CT: control target
= control target key end

     0   :  { %s3898_s0 = inlined_call_operand.vmem [shape: bf16[16,784], index: 0, kind: input, shape index: {}]   ;;  %s3899_s1 = inlined_call_operand.vmem [shape: bf16[784,128], index: 1, kind: input, shape index: {}]   ;;  %s3900_s2 = inlined_call_operand.vmem [shape: f32[1,128], index: 2, kind: input, shape index: {}]   ;;  %s3901_s3 = inlined_call_operand.vmem [shape: bf16[128,128], index: 3, kind: input, shape index: {}]   ;;  %s3902_s4 = inlined_call_operand.vmem [shape: f32[1,128], index: 4, kind: input, shape index: {}]   ;;  %s3903_s5 = inlined_call_operand.vmem [shape: bf16[128,128], index: 5, kind: input, shape index: {}]   ;;  %s3904_s6 = inlined_call_operand.vmem [shape: f32[1,128], index: 6, kind: input, shape index: {}]   ;;  %s3905_s7 = inlined_call_operand.vmem [shape: bf16[128,128], index: 7, kind: input, shape index: {}]   ;;  %s3906_s8 = inlined_call_operand.vmem [shape: f32[1,128], index: 8, kind: input, shape index: {}]   ;;  %s3907_s9 = inlined_call_operand.vmem [shape: bf16[128,128], index: 9, kind: input, shape index: {}]   ;;  %s3908_s10 = inlined_call_operand.vmem [shape: f32[1,128], index: 10, kind: input, shape index: {}]   ;;  %s3909_s11 = inlined_call_operand.vmem [shape: bf16[128,128], index: 11, kind: input, shape index: {}]   ;;  %s3910_s12 = inlined_call_operand.vmem [shape: f32[1,128], index: 12, kind: input, shape index: {}]   ;;  %s3911_s13 = inlined_call_operand.vmem [shape: bf16[128,128], index: 13, kind: input, shape index: {}]   ;;  %s3912_s14 = inlined_call_operand.vmem [shape: f32[1,128], index: 14, kind: input, shape index: {}]   ;;  %s3913_s15 = inlined_call_operand.vmem [shape: bf16[128,128], index: 15, kind: input, shape index: {}]   ;;  %s3914_s16 = inlined_call_operand.vmem [shape: f32[1,128], index: 16, kind: input, shape index: {}]   ;;  %s3915_s17 = inlined_call_operand.vmem [shape: bf16[128,128], index: 17, kind: input, shape index: {}]   ;;  %s3916_s18 = inlined_call_operand.vmem [shape: f32[1,128], index: 18, kind: input, shape index: {}]   ;;  %s3917_s19 = inlined_call_operand.vmem [shape: bf16[128,784], index: 19, kind: input, shape index: {}]   ;;  %s3918_s20 = inlined_call_operand.vmem [shape: f32[1,784], index: 20, kind: input, shape index: {}]   ;;  %s3919_s21 = inlined_call_operand.hbm [shape: f32[16,784], index: 21, kind: output, shape index: {}]  }
   0x1   :  { %3924 = sst [smem:[#allocation5_spill]] %s3898_s0 }
   0x2   :  { %3925 = sst [smem:[#allocation6_spill]] %s3899_s1 }
   0x3   :  { %3926 = sst [smem:[#allocation7_spill]] %s3900_s2 }
   0x4   :  { %3927 = sst [smem:[#allocation8_spill]] %s3901_s3 }
   0x5   :  { %3928 = sst [smem:[#allocation9_spill]] %s3902_s4 }
   0x6   :  { %3929 = sst [smem:[#allocation10_spill]] %s3903_s5 }
   0x7   :  { %s3930_s26 = sld [smem:[#allocation6_spill]]  ;;  %s3931_s30 = sld [smem:[#allocation5_spill]]  ;;  %v3098_v38 = vmov 0.0   ;;  %vm3099_vm0 = vmmov 0   ;;  %vm512_vm1 = vcmask 130048  }
   0xd   :  { %v2815_v0 = vld [vmem:[%s3930_s26 + $0x40] sm:$0xff]   ;;  %v2819_v4 = vld [vmem:[%s3930_s26 + $0x48] sm:$0xff]   ;;  %v2823_v8 = vld [vmem:[%s3930_s26 + $0x50] sm:$0xff]  }
   0xe   :  { %v2816_v1 = vld [vmem:[%s3930_s26] sm:$0xff]   ;;  %2474 = vmatprep.subr.bf16.mxu0 %v2815_v0  ;;  %v2820_v5 = vld [vmem:[%s3930_s26 + $0x8] sm:$0xff]   ;;  %v2824_v9 = vld [vmem:[%s3930_s26 + $0x10] sm:$0xff]  }
   0xf   :  { %v2817_v2 = vld [vmem:[%s3930_s26 + $0xc0] sm:$0xff]   ;;  %2475 = vmatpush3.bf16.msra.mxu0 %v2816_v1  ;;  %v2821_v6 = vld [vmem:[%s3930_s26 + $0xc8] sm:$0xff]   ;;  %v2825_v10 = vld [vmem:[%s3930_s26 + $0xd0] sm:$0xff]  }
  0x10   :  { %v2818_v3 = vld [vmem:[%s3930_s26 + $0x80] sm:$0xff]   ;;  %2496 = vmatprep.subr.bf16.mxu1 %v2817_v2  ;;  %2476 = vmatprep.subr.bf16.mxu0 %v2819_v4  ;;  %v2822_v7 = vld [vmem:[%s3930_s26 + $0x88] sm:$0xff]   ;;  %v2826_v11 = vld [vmem:[%s3930_s26 + $0x90] sm:$0xff]  }
  0x11   :  { %2497 = vmatpush3.bf16.msra.mxu1 %v2818_v3  ;;  %v2827_v12 = vld [vmem:[%s3930_s26 + $0x58] sm:$0xff]   ;;  %v2831_v16 = vld [vmem:[%s3930_s26 + $0x60] sm:$0xff]   ;;  %v2835_v20 = vld [vmem:[%s3930_s26 + $0x68] sm:$0xff]  }
  0x12   :  { %2498 = vmatprep.subr.bf16.mxu1 %v2821_v6  ;;  %v2828_v13 = vld [vmem:[%s3930_s26 + $0x18] sm:$0xff]   ;;  %v2832_v17 = vld [vmem:[%s3930_s26 + $0x20] sm:$0xff]   ;;  %v2836_v21 = vld [vmem:[%s3930_s26 + $0x28] sm:$0xff]  }
  0x13   :  { %2477 = vmatpush3.bf16.msra.mxu0 %v2820_v5  ;;  %v2829_v14 = vld [vmem:[%s3930_s26 + $0xd8] sm:$0xff]   ;;  %v2833_v18 = vld [vmem:[%s3930_s26 + $0xe0] sm:$0xff]   ;;  %v2837_v22 = vld [vmem:[%s3930_s26 + $0xe8] sm:$0xff]  }
  0x14   :  { %2478 = vmatprep.subr.bf16.mxu0 %v2823_v8  ;;  %v2830_v15 = vld [vmem:[%s3930_s26 + $0x98] sm:$0xff]   ;;  %v2834_v19 = vld [vmem:[%s3930_s26 + $0xa0] sm:$0xff]   ;;  %v2838_v23 = vld [vmem:[%s3930_s26 + $0xa8] sm:$0xff]  }
  0x15   :  { %2499 = vmatpush3.bf16.msra.mxu1 %v2822_v7  ;;  %v2839_v24 = vld [vmem:[%s3930_s26 + $0x70] sm:$0xff]   ;;  %v2843_v28 = vld [vmem:[%s3930_s26 + $0x78] sm:$0xff]   ;;  %v2848_v32 = vld [vmem:[%s3931_s30 + $0x4] ss:$28 sps:$4 sm:$0xff]  }
  0x16   :  { %2500 = vmatprep.subr.bf16.mxu1 %v2825_v10  ;;  %v2840_v25 = vld [vmem:[%s3930_s26 + $0x30] sm:$0xff]   ;;  %v2844_v29 = vld [vmem:[%s3930_s26 + $0x38] sm:$0xff]   ;;  %548 = vmatprep.mubr.bf16.mxu0 %v2848_v32  ;;  %v2850_v34 = vld [vmem:[%s3930_s26 + $0x140] sm:$0xff]  }
  0x17   :  { %2479 = vmatpush3.bf16.msra.mxu0 %v2824_v9  ;;  %v2841_v26 = vld [vmem:[%s3930_s26 + $0xf0] sm:$0xff]   ;;  %v2845_v30 = vld [vmem:[%s3930_s26 + $0xf8] sm:$0xff]   ;;  %v2851_v35 = vld [vmem:[%s3931_s30 + $0x8] ss:$28 sps:$4 sm:$0xff]  }
  0x18   :  { %2480 = vmatprep.subr.bf16.mxu0 %v2827_v12  ;;  %v2842_v27 = vld [vmem:[%s3930_s26 + $0xb0] sm:$0xff]   ;;  %v2846_v31 = vld [vmem:[%s3931_s30] ss:$28 sps:$4 sm:$0xff]   ;;  %v2853_v36 = vld [vmem:[%s3931_s30 + $0xc] ss:$28 sps:$4 sm:$0xff]  }
  0x19   :  { %2501 = vmatpush3.bf16.msra.mxu1 %v2826_v11  ;;  %v2849_v33 = vld [vmem:[%s3930_s26 + $0xb8] sm:$0xff]   ;;  %v2854_v37 = vld [vmem:[%s3930_s26 + $0x100] sm:$0xff]   ;;  %589 = vmatprep.mubr.bf16.mxu1 %v2853_v36  ;;  %v2855_v39 = vld [vmem:[%s3930_s26 + $0x148] sm:$0xff]  }
  0x1a   :  { %2502 = vmatprep.subr.bf16.mxu1 %v2829_v14  ;;  %v2856_v40 = vld [vmem:[%s3930_s26 + $0x108] sm:$0xff]   ;;  %v2857_v41 = vld [vmem:[%s3930_s26 + $0x150] sm:$0xff]   ;;  %v2859_v43 = vld [vmem:[%s3930_s26 + $0x158] sm:$0xff]  }
  0x1b   :  { %2481 = vmatpush3.bf16.msra.mxu0 %v2828_v13  ;;  %v2858_v42 = vld [vmem:[%s3930_s26 + $0x110] sm:$0xff]   ;;  %v2860_v44 = vld [vmem:[%s3930_s26 + $0x118] sm:$0xff]   ;;  %v2861_v45 = vld [vmem:[%s3930_s26 + $0x160] sm:$0xff]  }
  0x1c   :  { %2482 = vmatprep.subr.bf16.mxu0 %v2831_v16  ;;  %v2862_v46 = vld [vmem:[%s3930_s26 + $0x120] sm:$0xff]   ;;  %v2863_v47 = vld [vmem:[%s3930_s26 + $0x168] sm:$0xff]   ;;  %v2872_v50 = vld [vmem:[%s3931_s30 + $0x14] ss:$28 sps:$4 sm:$0xff]  }
  0x1d   :  { %2503 = vmatpush3.bf16.msra.mxu1 %v2830_v15  ;;  %v2869_v48 = vld [vmem:[%s3930_s26 + $0x180] sm:$0xff]   ;;  %v2864_v49 = vld [vmem:[%s3930_s26 + $0x128] sm:$0xff]   ;;  %v2865_v51 = vld [vmem:[%s3930_s26 + $0x170] sm:$0xff]  }
  0x1e   :  { %2504 = vmatprep.subr.bf16.mxu1 %v2833_v18  ;;  %v2873_v52 = vld [vmem:[%s3931_s30 + $0x18] ss:$28 sps:$4 sm:$0xff]   ;;  %v2870_v56 = vld [vmem:[%s3931_s30 + $0x10] ss:$28 sps:$4 sm:$0xff]  }
  0x1f   :  { %2483 = vmatpush3.bf16.msra.mxu0 %v2832_v17  ;;  %v2866_v53 = vld [vmem:[%s3930_s26 + $0x130] sm:$0xff]   ;;  %v2867_v54 = vld [vmem:[%s3930_s26 + $0x178] sm:$0xff]  }
  0x20   :  { %2484 = vmatprep.subr.bf16.mxu0 %v2835_v20  ;;  %v2868_v55 = vld [vmem:[%s3930_s26 + $0x138] sm:$0xff]  }
  0x21   :  { %2505 = vmatpush3.bf16.msra.mxu1 %v2834_v19 }
  0x22   :  { %2506 = vmatprep.subr.bf16.mxu1 %v2837_v22 }
  0x23   :  { %2485 = vmatpush3.bf16.msra.mxu0 %v2836_v21 }
  0x24   :  { %2486 = vmatprep.subr.bf16.mxu0 %v2839_v24 }
  0x25   :  { %2507 = vmatpush3.bf16.msra.mxu1 %v2838_v23 }
  0x26   :  { %2508 = vmatprep.subr.bf16.mxu1 %v2841_v26 }
  0x27   :  { %2487 = vmatpush3.bf16.msra.mxu0 %v2840_v25 }
  0x28   :  { %2488 = vmatprep.subr.bf16.mxu0 %v2843_v28 }
  0x29   :  { %2509 = vmatpush3.bf16.msra.mxu1 %v2842_v27 }
  0x2a   :  { %2510 = vmatprep.subr.bf16.mxu1 %v2845_v30 }
  0x2b   :  { %2489 = vmatpush3.bf16.msra.mxu0 %v2844_v29 }
  0x2c   :  { %2518 = vmatprep.subr.bf16.mxu0 %v2850_v34 }
  0x2d   :  { %2511 = vmatpush3.bf16.msra.mxu1 %v2849_v33 }
  0x2e   :  { %549 = vmatmul.mubr.bf16.vlgmr.msra.gmra.mrb[0].mxu0 %v2846_v31  ;;  %2623 = vmatprep.subr.bf16.mxu1 %v3098_v38 }
  0x2f   :  { %2519 = vmatpush3.bf16.msra.mxu0 %v2854_v37  ;;  %630 = vmatprep.mubr.bf16.mxu0 %v2872_v50 }
  0x30   :  { %590 = vmatmul.mubr.bf16.vlgmr.msra.gmra.mrb[0].mxu1 %v2851_v35  ;;  %2520 = vmatprep.subr.bf16.mxu0 %v2855_v39 }
  0x31   :  { %2625 = vmatprep.mubr.msk.bf16.mxu1 %vm3099_vm0, %v3098_v38  ;;  %2624 = vmatpush3.bf16.msra.mxu1 %v2869_v48 }
  0x32   :  { %2629 = vmatprep.subr.bf16.mxu1 %v3098_v38 }
  0x33   :  { %2521 = vmatpush3.bf16.msra.mxu0 %v2856_v40 }
  0x34   :  { %2522 = vmatprep.subr.bf16.mxu0 %v2857_v41 }
  0x37   :  { %2523 = vmatpush3.bf16.msra.mxu0 %v2858_v42 }
  0x38   :  { %2524 = vmatprep.subr.bf16.mxu0 %v2859_v43  ;;  %2626 = vmatmul.mubr.msk.bf16.vlgmr.msra.gmra.mrb[4].mxu1 %vm512_vm1, %v2873_v52 }
  0x39   :  { %2645 = vmatprep.mubr.msk.bf16.mxu1 %vm3099_vm0, %v3098_v38 }
  0x3b   :  { %2525 = vmatpush3.bf16.msra.mxu0 %v2860_v44 }
  0x3c   :  { %2526 = vmatprep.subr.bf16.mxu0 %v2861_v45 }
  0x3f   :  { %2527 = vmatpush3.bf16.msra.mxu0 %v2862_v46 }
  0x40   :  { %2528 = vmatprep.subr.bf16.mxu0 %v2863_v47 }
  0x43   :  { %2529 = vmatpush3.bf16.msra.mxu0 %v2864_v49 }
  0x44   :  { %2530 = vmatprep.subr.bf16.mxu0 %v2865_v51 }
  0x47   :  { %2531 = vmatpush3.bf16.msra.mxu0 %v2866_v53 }
  0x48   :  { %2532 = vmatprep.subr.bf16.mxu0 %v2867_v54 }
  0x4b   :  { %2533 = vmatpush3.bf16.msra.mxu0 %v2868_v55 }
  0x4c   :  { %2649 = vmatprep.subr.bf16.mxu0 %v3098_v38 }
  0x4e   :  { %631 = vmatmul.mubr.bf16.vlgmr.msra.gmra.mrb[4].mxu0 %v2870_v56 }
  0x4f   :  { %2665 = vmatprep.mubr.msk.bf16.mxu0 %vm3099_vm0, %v3098_v38 }
  0x50   :  { %26 = vsyncpa [#allocation3], 0  ;;  %s3932_s0 = sld [smem:[#allocation8_spill]]  ;;  %s3933_s30 = sld [smem:[#allocation10_spill]]  ;;  %v2890_v44 = vld [vmem:[%s3905_s7] sm:$0xff]   ;;  %v2891_v45 = vld [vmem:[%s3905_s7 + $0x8] sm:$0xff]  }
  0x51   :  { %s3934_s26 = sld [smem:[#allocation7_spill]]  ;;  %v2892_v46 = vld [vmem:[%s3905_s7 + $0x10] sm:$0xff]   ;;  %v2893_v47 = vld [vmem:[%s3905_s7 + $0x18] sm:$0xff]   ;;  %v2894_v48 = vld [vmem:[%s3905_s7 + $0x20] sm:$0xff]   ;;  %s3935_s23 = sld [smem:[#allocation9_spill]] }
  0x52   :  { %v2895_v49 = vld [vmem:[%s3905_s7 + $0x28] sm:$0xff]  }
  0x56   :  { %v2874_v57 = vld [vmem:[%s3932_s0] sm:$0xff]   ;;  %v2875_v58 = vld [vmem:[%s3932_s0 + $0x8] sm:$0xff]   ;;  %v2876_v59 = vld [vmem:[%s3932_s0 + $0x10] sm:$0xff]  }
  0x57   :  { %2630 = vmatpush3.bf16.msra.mxu1 %v2874_v57  ;;  %v2877_v60 = vld [vmem:[%s3932_s0 + $0x18] sm:$0xff]   ;;  %v2878_v61 = vld [vmem:[%s3932_s0 + $0x20] sm:$0xff]   ;;  %v2879_v62 = vld [vmem:[%s3932_s0 + $0x28] sm:$0xff]  }
  0x58   :  { %2631 = vmatprep.subr.bf16.mxu1 %v3098_v38  ;;  %v2880_v63 = vld [vmem:[%s3932_s0 + $0x30] sm:$0xff]   ;;  %v2881_v0 = vld [vmem:[%s3932_s0 + $0x38] sm:$0xff]   ;;  %v2882_v1 = vld [vmem:[%s3933_s30] sm:$0xff]  }
  0x59   :  { %2650 = vmatpush3.bf16.msra.mxu0 %v2882_v1  ;;  %v2883_v2 = vld [vmem:[%s3933_s30 + $0x8] sm:$0xff]   ;;  %v2884_v3 = vld [vmem:[%s3933_s30 + $0x10] sm:$0xff]   ;;  %v2885_v4 = vld [vmem:[%s3933_s30 + $0x18] sm:$0xff]  }
  0x5a   :  { %2651 = vmatprep.subr.bf16.mxu0 %v3098_v38  ;;  %v2886_v5 = vld [vmem:[%s3933_s30 + $0x20] sm:$0xff]   ;;  %v2887_v6 = vld [vmem:[%s3933_s30 + $0x28] sm:$0xff]   ;;  %v2888_v42 = vld [vmem:[%s3933_s30 + $0x30] sm:$0xff]  }
  0x5b   :  { %2632 = vmatpush3.bf16.msra.mxu1 %v2875_v58  ;;  %v2274_v8 = vld [vmem:[%s3934_s26] ss:$0 sm:$0xff]  ;;  %v2889_v43 = vld [vmem:[%s3933_s30 + $0x38] sm:$0xff]  }
  0x5c   :  { %2633 = vmatprep.subr.bf16.mxu1 %v3098_v38  ;;  %v2332_v50 = vld [vmem:[%s3935_s23] ss:$0 sm:$0xff]  ;;  %v2901_v1 = vld [vmem:[%s3907_s9 + $0x18] sm:$0xff]  }
  0x5d   :  { %2652 = vmatpush3.bf16.msra.mxu0 %v2883_v2  ;;  %v2902_v2 = vld [vmem:[%s3907_s9 + $0x20] sm:$0xff]  }
  0x5e   :  { %2653 = vmatprep.subr.bf16.mxu0 %v3098_v38 }
  0x5f   :  { %2634 = vmatpush3.bf16.msra.mxu1 %v2876_v59 }
  0x60   :  { %2635 = vmatprep.subr.bf16.mxu1 %v3098_v38 }
  0x61   :  { %2654 = vmatpush3.bf16.msra.mxu0 %v2884_v3  ;;  %v2903_v3 = vld [vmem:[%s3907_s9 + $0x28] sm:$0xff]  }
  0x62   :  { %2655 = vmatprep.subr.bf16.mxu0 %v3098_v38 }
  0x63   :  { %2636 = vmatpush3.bf16.msra.mxu1 %v2877_v60  ;;  %v2896_v60 = vld [vmem:[%s3905_s7 + $0x30] sm:$0xff]  }
  0x64   :  { %2637 = vmatprep.subr.bf16.mxu1 %v3098_v38 }
  0x65   :  { %2656 = vmatpush3.bf16.msra.mxu0 %v2885_v4  ;;  %v2341_v4 = vld [vmem:[%s3904_s6] ss:$0 sm:$0xff] }
  0x66   :  { %2657 = vmatprep.subr.bf16.mxu0 %v3098_v38 }
  0x67   :  { %2638 = vmatpush3.bf16.msra.mxu1 %v2878_v61  ;;  %v2897_v61 = vld [vmem:[%s3905_s7 + $0x38] sm:$0xff]  }
  0x68   :  { %2639 = vmatprep.subr.bf16.mxu1 %v3098_v38 }
  0x69   :  { %2658 = vmatpush3.bf16.msra.mxu0 %v2886_v5 }
  0x6a   :  { %2659 = vmatprep.subr.bf16.mxu0 %v3098_v38 }
  0x6b   :  { %2640 = vmatpush3.bf16.msra.mxu1 %v2879_v62  ;;  %v2898_v62 = vld [vmem:[%s3907_s9] sm:$0xff]  }
  0x6c   :  { %2641 = vmatprep.subr.bf16.mxu1 %v3098_v38 }
  0x6d   :  { %2660 = vmatpush3.bf16.msra.mxu0 %v2887_v6 }
  0x6e   :  { %2661 = vmatprep.subr.bf16.mxu0 %v3098_v38 }
  0x6f   :  { %2642 = vmatpush3.bf16.msra.mxu1 %v2880_v63  ;;  %v2899_v63 = vld [vmem:[%s3907_s9 + $0x8] sm:$0xff]  }
  0x70   :  { %2643 = vmatprep.subr.bf16.mxu1 %v3098_v38 }
  0x71   :  { %2662 = vmatpush3.bf16.msra.mxu0 %v2888_v42 }
  0x72   :  { %2663 = vmatprep.subr.bf16.mxu0 %v3098_v38 }
  0x73   :  { %2644 = vmatpush3.bf16.msra.mxu1 %v2881_v0  ;;  %v2900_v0 = vld [vmem:[%s3907_s9 + $0x10] sm:$0xff]  }
  0x74   :  { %2669 = vmatprep.subr.bf16.mxu1 %v3098_v38 }
  0x75   :  { %2664 = vmatpush3.bf16.msra.mxu0 %v2889_v43 }
  0x76   :  { %2689 = vmatprep.subr.bf16.mxu0 %v3098_v38 }
 0x101   :  { %v2490_v7 = vpop.f32.mrb[0].mxu0 }
 0x102   :  { %v2491_v9 = vpop.f32.mrb[1].mxu0 }
 0x103   :  { %v2492_v10 = vadd.f32 %v2491_v9, %v2490_v7  ;;  %v2493_v11 = vpop.f32.mrb[2].mxu0  ;;  %v2512_v12 = vpop.f32.mrb[0].mxu1 }
 0x104   :  { %v2494_v13 = vpop.f32.mrb[3].mxu0  ;;  %v2513_v16 = vpop.f32.mrb[1].mxu1 }
 0x105   :  { %v551_v14 = vadd.f32 %v2492_v10, %v2274_v8  ;;  %v2495_v15 = vadd.f32 %v2494_v13, %v2493_v11  ;;  %v2514_v17 = vadd.f32 %v2513_v16, %v2512_v12  ;;  %v2515_v18 = vpop.f32.mrb[2].mxu1  ;;  %v2906_v16 = vld [vmem:[%s3909_s11] sm:$0xff]  }
 0x106   :  { %v2516_v20 = vpop.f32.mrb[3].mxu1 }
 0x107   :  { %v554_v19 = vadd.f32 %v2495_v15, %v2274_v8  ;;  %v592_v21 = vadd.f32 %v2514_v17, %v551_v14  ;;  %v2517_v22 = vadd.f32 %v2516_v20, %v2515_v18  ;;  %v2904_v14 = vld [vmem:[%s3907_s9 + $0x30] sm:$0xff]   ;;  %v2905_v15 = vld [vmem:[%s3907_s9 + $0x38] sm:$0xff]   ;;  %v2907_v17 = vld [vmem:[%s3909_s11 + $0x8] sm:$0xff]  }
 0x108   :  { %v2908_v18 = vld [vmem:[%s3909_s11 + $0x10] sm:$0xff]   ;;  %v2910_v20 = vld [vmem:[%s3909_s11 + $0x20] sm:$0xff]  }
 0x109   :  { %v595_v23 = vadd.f32 %v2517_v22, %v554_v19  ;;  %v2909_v19 = vld [vmem:[%s3909_s11 + $0x18] sm:$0xff]   ;;  %v2350_v22 = vld [vmem:[%s3906_s8] ss:$0 sm:$0xff] }
 0x10b   :  { %v673_v24 = vpop.f32.mrb[4].mxu1 }
 0x10c   :  { %v2627_v25 = vpop.f32.mrb[5].mxu1 }
 0x10d   :  { %v676_v26 = vpop.f32.mrb[6].mxu1 }
 0x10e   :  { %v2628_v27 = vpop.f32.mrb[7].mxu1 }
 0x121   :  { %v2534_v28 = vpop.f32.mrb[4].mxu0 }
 0x122   :  { %v2535_v29 = vpop.f32.mrb[5].mxu0 }
 0x123   :  { %v2536_v30 = vadd.f32 %v2535_v29, %v2534_v28  ;;  %v2537_v31 = vpop.f32.mrb[6].mxu0 }
 0x124   :  { %v2538_v32 = vpop.f32.mrb[7].mxu0 }
 0x125   :  { %v633_v33 = vadd.f32 %v2536_v30, %v592_v21  ;;  %v2539_v34 = vadd.f32 %v2538_v32, %v2537_v31  ;;  %v2911_v21 = vld [vmem:[%s3909_s11 + $0x28] sm:$0xff]   ;;  %v2912_v32 = vld [vmem:[%s3909_s11 + $0x30] sm:$0xff]  }
 0x127   :  { %v674_v35 = vadd.f32 %v673_v24, %v633_v33  ;;  %v636_v36 = vadd.f32 %v2539_v34, %v595_v23  ;;  %v2913_v33 = vld [vmem:[%s3909_s11 + $0x38] sm:$0xff]   ;;  %v2914_v34 = vld [vmem:[%s3911_s13] sm:$0xff]  }
 0x129   :  { %v677_v37 = vadd.f32 %v676_v26, %v636_v36  ;;  %v680_v39 = vmax.f32 %v674_v35, 0.0  ;;  %v2915_v35 = vld [vmem:[%s3911_s13 + $0x8] sm:$0xff]   ;;  %v2916_v36 = vld [vmem:[%s3911_s13 + $0x10] sm:$0xff]  }
 0x12b   :  { %v681_v40 = vmax.f32 %v677_v37, 0.0  ;;  %v2917_v37 = vld [vmem:[%s3911_s13 + $0x18] sm:$0xff]  }
 0x12d   :  { %v699_v41 = vpack.c.bf16 %v681_v40, %v680_v39  ;;  %v2918_v39 = vld [vmem:[%s3911_s13 + $0x20] sm:$0xff]   ;;  %v2919_v40 = vld [vmem:[%s3911_s13 + $0x28] sm:$0xff]  }
 0x12f   :  { %2646 = vmatmul.mubr.bf16.vlgmr.msra.gmra.mrb[8].mxu1 %v699_v41  ;;  %v2359_v41 = vld [vmem:[%s3908_s10] ss:$0 sm:$0xff] }
 0x130   :  { %2685 = vmatprep.mubr.msk.bf16.mxu1 %vm3099_vm0, %v3098_v38  ;;  %2670 = vmatpush3.bf16.msra.mxu1 %v2890_v44 }
 0x131   :  { %2671 = vmatprep.subr.bf16.mxu1 %v3098_v38 }
 0x134   :  { %2672 = vmatpush3.bf16.msra.mxu1 %v2891_v45 }
 0x135   :  { %2673 = vmatprep.subr.bf16.mxu1 %v3098_v38 }
 0x138   :  { %2674 = vmatpush3.bf16.msra.mxu1 %v2892_v46 }
 0x139   :  { %2675 = vmatprep.subr.bf16.mxu1 %v3098_v38 }
 0x13c   :  { %2676 = vmatpush3.bf16.msra.mxu1 %v2893_v47 }
 0x13d   :  { %2677 = vmatprep.subr.bf16.mxu1 %v3098_v38 }
 0x140   :  { %2678 = vmatpush3.bf16.msra.mxu1 %v2894_v48 }
 0x141   :  { %2679 = vmatprep.subr.bf16.mxu1 %v3098_v38 }
 0x144   :  { %2680 = vmatpush3.bf16.msra.mxu1 %v2895_v49  ;;  %v2920_v49 = vld [vmem:[%s3911_s13 + $0x30] sm:$0xff]  }
 0x145   :  { %2681 = vmatprep.subr.bf16.mxu1 %v3098_v38 }
 0x148   :  { %2682 = vmatpush3.bf16.msra.mxu1 %v2896_v60 }
 0x149   :  { %2683 = vmatprep.subr.bf16.mxu1 %v3098_v38 }
 0x14c   :  { %2684 = vmatpush3.bf16.msra.mxu1 %v2897_v61 }
 0x14d   :  { %2709 = vmatprep.subr.bf16.mxu1 %v3098_v38 }
 0x202   :  { %v788_v51 = vpop.f32.mrb[8].mxu1 }
 0x203   :  { %v789_v52 = vadd.f32 %v2332_v50, %v788_v51  ;;  %v2647_v53 = vpop.f32.mrb[9].mxu1  ;;  %v2922_v51 = vld [vmem:[%s3913_s15] sm:$0xff]  }
 0x204   :  { %v791_v54 = vpop.f32.mrb[10].mxu1  ;;  %v2924_v53 = vld [vmem:[%s3913_s15 + $0x10] sm:$0xff]  }
 0x205   :  { %v792_v55 = vadd.f32 %v2332_v50, %v791_v54  ;;  %v2648_v56 = vpop.f32.mrb[11].mxu1  ;;  %v795_v57 = vmax.f32 %v789_v52, 0.0  ;;  %v2921_v50 = vld [vmem:[%s3911_s13 + $0x38] sm:$0xff]   ;;  %v2923_v52 = vld [vmem:[%s3913_s15 + $0x8] sm:$0xff]  }
 0x206   :  { %v2925_v54 = vld [vmem:[%s3913_s15 + $0x18] sm:$0xff]   ;;  %v2927_v56 = vld [vmem:[%s3913_s15 + $0x28] sm:$0xff]  }
 0x207   :  { %v796_v58 = vmax.f32 %v792_v55, 0.0  ;;  %v2926_v55 = vld [vmem:[%s3913_s15 + $0x20] sm:$0xff]  }
 0x209   :  { %v814_v59 = vpack.c.bf16 %v796_v58, %v795_v57  ;;  %v2368_v57 = vld [vmem:[%s3910_s12] ss:$0 sm:$0xff] }
 0x20b   :  { %2666 = vmatmul.mubr.bf16.vlgmr.msra.gmra.mrb[8].mxu0 %v814_v59 }
 0x20c   :  { %2705 = vmatprep.mubr.msk.bf16.mxu0 %vm3099_vm0, %v3098_v38  ;;  %2690 = vmatpush3.bf16.msra.mxu0 %v2898_v62 }
 0x20d   :  { %2691 = vmatprep.subr.bf16.mxu0 %v3098_v38 }
 0x210   :  { %2692 = vmatpush3.bf16.msra.mxu0 %v2899_v63 }
 0x211   :  { %2693 = vmatprep.subr.bf16.mxu0 %v3098_v38 }
 0x214   :  { %2694 = vmatpush3.bf16.msra.mxu0 %v2900_v0 }
 0x215   :  { %2695 = vmatprep.subr.bf16.mxu0 %v3098_v38 }
 0x218   :  { %2696 = vmatpush3.bf16.msra.mxu0 %v2901_v1 }
 0x219   :  { %2697 = vmatprep.subr.bf16.mxu0 %v3098_v38 }
 0x21c   :  { %2698 = vmatpush3.bf16.msra.mxu0 %v2902_v2 }
 0x21d   :  { %2699 = vmatprep.subr.bf16.mxu0 %v3098_v38 }
 0x220   :  { %2700 = vmatpush3.bf16.msra.mxu0 %v2903_v3  ;;  %v2928_v3 = vld [vmem:[%s3913_s15 + $0x30] sm:$0xff]  }
 0x221   :  { %2701 = vmatprep.subr.bf16.mxu0 %v3098_v38 }
 0x224   :  { %2702 = vmatpush3.bf16.msra.mxu0 %v2904_v14 }
 0x225   :  { %2703 = vmatprep.subr.bf16.mxu0 %v3098_v38 }
 0x228   :  { %2704 = vmatpush3.bf16.msra.mxu0 %v2905_v15 }
 0x229   :  { %2729 = vmatprep.subr.bf16.mxu0 %v3098_v38 }
 0x2de   :  { %v903_v5 = vpop.f32.mrb[8].mxu0 }
 0x2df   :  { %v904_v6 = vadd.f32 %v2341_v4, %v903_v5  ;;  %v2667_v7 = vpop.f32.mrb[9].mxu0  ;;  %v2930_v5 = vld [vmem:[%s3915_s17] sm:$0xff]  }
 0x2e0   :  { %v906_v8 = vpop.f32.mrb[10].mxu0  ;;  %v2932_v7 = vld [vmem:[%s3915_s17 + $0x10] sm:$0xff]  }
 0x2e1   :  { %v907_v9 = vadd.f32 %v2341_v4, %v906_v8  ;;  %v2668_v10 = vpop.f32.mrb[11].mxu0  ;;  %v910_v11 = vmax.f32 %v904_v6, 0.0  ;;  %v2929_v4 = vld [vmem:[%s3913_s15 + $0x38] sm:$0xff]   ;;  %v2931_v6 = vld [vmem:[%s3915_s17 + $0x8] sm:$0xff]  }
 0x2e2   :  { %v2933_v8 = vld [vmem:[%s3915_s17 + $0x18] sm:$0xff]   ;;  %v2935_v10 = vld [vmem:[%s3915_s17 + $0x28] sm:$0xff]  }
 0x2e3   :  { %v911_v12 = vmax.f32 %v907_v9, 0.0  ;;  %v2934_v9 = vld [vmem:[%s3915_s17 + $0x20] sm:$0xff]  }
 0x2e5   :  { %v929_v13 = vpack.c.bf16 %v911_v12, %v910_v11  ;;  %v2377_v11 = vld [vmem:[%s3912_s14] ss:$0 sm:$0xff] }
 0x2e7   :  { %2686 = vmatmul.mubr.bf16.vlgmr.msra.gmra.mrb[12].mxu1 %v929_v13 }
 0x2e8   :  { %2725 = vmatprep.mubr.msk.bf16.mxu1 %vm3099_vm0, %v3098_v38  ;;  %2710 = vmatpush3.bf16.msra.mxu1 %v2906_v16 }
 0x2e9   :  { %2711 = vmatprep.subr.bf16.mxu1 %v3098_v38 }
 0x2ec   :  { %2712 = vmatpush3.bf16.msra.mxu1 %v2907_v17 }
 0x2ed   :  { %2713 = vmatprep.subr.bf16.mxu1 %v3098_v38 }
 0x2f0   :  { %2714 = vmatpush3.bf16.msra.mxu1 %v2908_v18 }
 0x2f1   :  { %2715 = vmatprep.subr.bf16.mxu1 %v3098_v38 }
 0x2f4   :  { %2716 = vmatpush3.bf16.msra.mxu1 %v2909_v19 }
 0x2f5   :  { %2717 = vmatprep.subr.bf16.mxu1 %v3098_v38 }
 0x2f8   :  { %2718 = vmatpush3.bf16.msra.mxu1 %v2910_v20 }
 0x2f9   :  { %2719 = vmatprep.subr.bf16.mxu1 %v3098_v38 }
 0x2fc   :  { %2720 = vmatpush3.bf16.msra.mxu1 %v2911_v21  ;;  %v2936_v21 = vld [vmem:[%s3915_s17 + $0x30] sm:$0xff]  }
 0x2fd   :  { %2721 = vmatprep.subr.bf16.mxu1 %v3098_v38 }
 0x300   :  { %2722 = vmatpush3.bf16.msra.mxu1 %v2912_v32  ;;  %v2964_v32 = vld [vmem:[%s3917_s19 + $0xe4] ss:$28 sps:$4 sm:$0xff]  }
 0x301   :  { %2723 = vmatprep.subr.bf16.mxu1 %v3098_v38 }
 0x304   :  { %2724 = vmatpush3.bf16.msra.mxu1 %v2913_v33  ;;  %v2962_v33 = vld [vmem:[%s3917_s19 + $0xe0] ss:$28 sps:$4 sm:$0xff]  }
 0x305   :  { %2749 = vmatprep.subr.bf16.mxu1 %v3098_v38 }
 0x3ba   :  { %v1018_v23 = vpop.f32.mrb[12].mxu1 }
 0x3bb   :  { %v1019_v24 = vadd.f32 %v2350_v22, %v1018_v23  ;;  %v2687_v25 = vpop.f32.mrb[13].mxu1  ;;  %v2938_v23 = vld [vmem:[%s3917_s19] ss:$28 sps:$4 sm:$0xff]  }
 0x3bc   :  { %v1021_v26 = vpop.f32.mrb[14].mxu1  ;;  %v2943_v25 = vld [vmem:[%s3917_s19 + $0xc] ss:$28 sps:$4 sm:$0xff]  }
 0x3bd   :  { %v1022_v27 = vadd.f32 %v2350_v22, %v1021_v26  ;;  %v2688_v28 = vpop.f32.mrb[15].mxu1  ;;  %v1025_v29 = vmax.f32 %v1019_v24, 0.0  ;;  %v2937_v22 = vld [vmem:[%s3915_s17 + $0x38] sm:$0xff]   ;;  %v2940_v24 = vld [vmem:[%s3917_s19 + $0x4] ss:$28 sps:$4 sm:$0xff]  }
 0x3be   :  { %v2946_v26 = vld [vmem:[%s3917_s19 + $0x3c] ss:$28 sps:$4 sm:$0xff]   ;;  %v2952_v28 = vld [vmem:[%s3917_s19 + $0x74] ss:$28 sps:$4 sm:$0xff]  }
 0x3bf   :  { %v1026_v30 = vmax.f32 %v1022_v27, 0.0  ;;  %v2944_v27 = vld [vmem:[%s3917_s19 + $0x38] ss:$28 sps:$4 sm:$0xff]  }
 0x3c1   :  { %v1044_v31 = vpack.c.bf16 %v1026_v30, %v1025_v29  ;;  %v2950_v29 = vld [vmem:[%s3917_s19 + $0x70] ss:$28 sps:$4 sm:$0xff]  }
 0x3c2   :  { %v2958_v30 = vld [vmem:[%s3917_s19 + $0xac] ss:$28 sps:$4 sm:$0xff]  }
 0x3c3   :  { %2706 = vmatmul.mubr.bf16.vlgmr.msra.gmra.mrb[12].mxu0 %v1044_v31  ;;  %v2956_v31 = vld [vmem:[%s3917_s19 + $0xa8] ss:$28 sps:$4 sm:$0xff]  }
 0x3c4   :  { %2745 = vmatprep.mubr.msk.bf16.mxu0 %vm3099_vm0, %v3098_v38  ;;  %2730 = vmatpush3.bf16.msra.mxu0 %v2914_v34  ;;  %v2970_v34 = vld [vmem:[%s3917_s19 + $0x11c] ss:$28 sps:$4 sm:$0xff]  }
 0x3c5   :  { %2731 = vmatprep.subr.bf16.mxu0 %v3098_v38 }
 0x3c8   :  { %2732 = vmatpush3.bf16.msra.mxu0 %v2915_v35  ;;  %v2968_v35 = vld [vmem:[%s3917_s19 + $0x118] ss:$28 sps:$4 sm:$0xff]  }
 0x3c9   :  { %2733 = vmatprep.subr.bf16.mxu0 %v3098_v38 }
 0x3cc   :  { %2734 = vmatpush3.bf16.msra.mxu0 %v2916_v36  ;;  %v2386_v36 = vld [vmem:[%s3914_s16] ss:$0 sm:$0xff] }
 0x3cd   :  { %2735 = vmatprep.subr.bf16.mxu0 %v3098_v38 }
 0x3d0   :  { %2736 = vmatpush3.bf16.msra.mxu0 %v2917_v37 }
 0x3d1   :  { %2737 = vmatprep.subr.bf16.mxu0 %v3098_v38 }
 0x3d4   :  { %2738 = vmatpush3.bf16.msra.mxu0 %v2918_v39 }
 0x3d5   :  { %2739 = vmatprep.subr.bf16.mxu0 %v3098_v38 }
 0x3d8   :  { %2740 = vmatpush3.bf16.msra.mxu0 %v2919_v40 }
 0x3d9   :  { %2741 = vmatprep.subr.bf16.mxu0 %v3098_v38 }
 0x3dc   :  { %2742 = vmatpush3.bf16.msra.mxu0 %v2920_v49  ;;  %v2947_v49 = vld [vmem:[%s3917_s19 + $0x40] ss:$28 sps:$4 sm:$0xff]  }
 0x3dd   :  { %2743 = vmatprep.subr.bf16.mxu0 %v3098_v38 }
 0x3e0   :  { %2744 = vmatpush3.bf16.msra.mxu0 %v2921_v50  ;;  %v2955_v50 = vld [vmem:[%s3917_s19 + $0x7c] ss:$28 sps:$4 sm:$0xff]  }
 0x3e1   :  { %2769 = vmatprep.subr.bf16.mxu0 %v3098_v38 }
 0x496   :  { %v1133_v42 = vpop.f32.mrb[12].mxu0 }
 0x497   :  { %v2707_v43 = vpop.f32.mrb[13].mxu0  ;;  %v1134_v45 = vadd.f32 %v2359_v41, %v1133_v42 }
 0x498   :  { %v1136_v44 = vpop.f32.mrb[14].mxu0 }
 0x499   :  { %v1137_v46 = vadd.f32 %v2359_v41, %v1136_v44  ;;  %v2708_v47 = vpop.f32.mrb[15].mxu0 }
 0x49b   :  { %v1157_v48 = vpack.c.bf16 %v1137_v46, %v1134_v45  ;;  %v2941_v46 = vld [vmem:[%s3917_s19 + $0x8] ss:$28 sps:$4 sm:$0xff]  }
 0x49d   :  { %2726 = vmatmul.mubr.bf16.vlgmr.msra.gmra.mrb[16].mxu1 %v1157_v48  ;;  %v2949_v48 = vld [vmem:[%s3917_s19 + $0x44] ss:$28 sps:$4 sm:$0xff]  }
 0x49e   :  { %2765 = vmatprep.mubr.msk.bf16.mxu1 %vm3099_vm0, %v3098_v38  ;;  %2750 = vmatpush3.bf16.msra.mxu1 %v2922_v51  ;;  %v2953_v51 = vld [vmem:[%s3917_s19 + $0x78] ss:$28 sps:$4 sm:$0xff]  }
 0x49f   :  { %2751 = vmatprep.subr.bf16.mxu1 %v3098_v38 }
 0x4a2   :  { %2752 = vmatpush3.bf16.msra.mxu1 %v2923_v52  ;;  %v2961_v52 = vld [vmem:[%s3917_s19 + $0xb4] ss:$28 sps:$4 sm:$0xff]  }
 0x4a3   :  { %2753 = vmatprep.subr.bf16.mxu1 %v3098_v38 }
 0x4a6   :  { %2754 = vmatpush3.bf16.msra.mxu1 %v2924_v53  ;;  %v2959_v53 = vld [vmem:[%s3917_s19 + $0xb0] ss:$28 sps:$4 sm:$0xff]  }
 0x4a7   :  { %2755 = vmatprep.subr.bf16.mxu1 %v3098_v38 }
 0x4aa   :  { %2756 = vmatpush3.bf16.msra.mxu1 %v2925_v54  ;;  %v2967_v54 = vld [vmem:[%s3917_s19 + $0xec] ss:$28 sps:$4 sm:$0xff]  }
 0x4ab   :  { %2757 = vmatprep.subr.bf16.mxu1 %v3098_v38 }
 0x4ae   :  { %2758 = vmatpush3.bf16.msra.mxu1 %v2926_v55  ;;  %v2965_v55 = vld [vmem:[%s3917_s19 + $0xe8] ss:$28 sps:$4 sm:$0xff]  }
 0x4af   :  { %2759 = vmatprep.subr.bf16.mxu1 %v3098_v38 }
 0x4b2   :  { %2760 = vmatpush3.bf16.msra.mxu1 %v2927_v56  ;;  %v2973_v56 = vld [vmem:[%s3917_s19 + $0x124] ss:$28 sps:$4 sm:$0xff]  }
 0x4b3   :  { %2761 = vmatprep.subr.bf16.mxu1 %v3098_v38 }
 0x4b6   :  { %2762 = vmatpush3.bf16.msra.mxu1 %v2928_v3  ;;  %v3100_v3 = vmov 0  }
 0x4b7   :  { %2763 = vmatprep.subr.bf16.mxu1 %v3098_v38 }
 0x4ba   :  { %2764 = vmatpush3.bf16.msra.mxu1 %v2929_v4  ;;  %v2395_v4 = vld [vmem:[%s3916_s18] ss:$0 sm:$0xff] }
 0x4bb   :  { %1990 = vmatprep.subr.bf16.mxu1 %v2940_v24  ;;  %v3001_v24 = vld [vmem:[%s3917_s19 + $0xc0] ss:$28 sps:$4 sm:$0xff]  }
 0x570   :  { %v1246_v58 = vpop.f32.mrb[16].mxu1 }
 0x571   :  { %v1247_v59 = vadd.f32 %v2368_v57, %v1246_v58  ;;  %v2727_v60 = vpop.f32.mrb[17].mxu1  ;;  %v2976_v58 = vld [vmem:[%s3917_s19 + $0x154] ss:$28 sps:$4 sm:$0xff]  }
 0x572   :  { %v1249_v61 = vpop.f32.mrb[18].mxu1  ;;  %v2974_v60 = vld [vmem:[%s3917_s19 + $0x150] ss:$28 sps:$4 sm:$0xff]  }
 0x573   :  { %v1250_v62 = vadd.f32 %v2368_v57, %v1249_v61  ;;  %v2728_v63 = vpop.f32.mrb[19].mxu1  ;;  %v1253_v0 = vmax.f32 %v1247_v59, 0.0  ;;  %v2971_v57 = vld [vmem:[%s3917_s19 + $0x120] ss:$28 sps:$4 sm:$0xff]   ;;  %v2977_v61 = vld [vmem:[%s3917_s19 + $0x158] ss:$28 sps:$4 sm:$0xff]  }
 0x574   :  { %v2979_v59 = vld [vmem:[%s3917_s19 + $0x15c] ss:$28 sps:$4 sm:$0xff]   ;;  %v2985_v63 = vld [vmem:[%s3917_s19 + $0x194] ss:$28 sps:$4 sm:$0xff]  }
 0x575   :  { %v1254_v1 = vmax.f32 %v1250_v62, 0.0  ;;  %v2982_v62 = vld [vmem:[%s3917_s19 + $0x18c] ss:$28 sps:$4 sm:$0xff]  }
 0x577   :  { %v1272_v2 = vpack.c.bf16 %v1254_v1, %v1253_v0  ;;  %v2980_v0 = vld [vmem:[%s3917_s19 + $0x188] ss:$28 sps:$4 sm:$0xff]   ;;  %v2983_v1 = vld [vmem:[%s3917_s19 + $0x190] ss:$28 sps:$4 sm:$0xff]  }
 0x579   :  { %2746 = vmatmul.mubr.bf16.vlgmr.msra.gmra.mrb[16].mxu0 %v1272_v2  ;;  %v2988_v2 = vld [vmem:[%s3917_s19 + $0x14] ss:$28 sps:$4 sm:$0xff]  }
 0x57a   :  { %2785 = vmatprep.mubr.msk.bf16.mxu0 %vm3099_vm0, %v3098_v38  ;;  %2770 = vmatpush3.bf16.msra.mxu0 %v2930_v5 }
 0x57b   :  { %2771 = vmatprep.subr.bf16.mxu0 %v3098_v38 }
 0x57e   :  { %2772 = vmatpush3.bf16.msra.mxu0 %v2931_v6 }
 0x57f   :  { %2773 = vmatprep.subr.bf16.mxu0 %v3098_v38 }
 0x582   :  { %2774 = vmatpush3.bf16.msra.mxu0 %v2932_v7 }
 0x583   :  { %2775 = vmatprep.subr.bf16.mxu0 %v3098_v38 }
 0x586   :  { %2776 = vmatpush3.bf16.msra.mxu0 %v2933_v8 }
 0x587   :  { %2777 = vmatprep.subr.bf16.mxu0 %v3098_v38 }
 0x58a   :  { %2778 = vmatpush3.bf16.msra.mxu0 %v2934_v9 }
 0x58b   :  { %2779 = vmatprep.subr.bf16.mxu0 %v3098_v38 }
 0x58e   :  { %2780 = vmatpush3.bf16.msra.mxu0 %v2935_v10 }
 0x58f   :  { %2781 = vmatprep.subr.bf16.mxu0 %v3098_v38 }
 0x592   :  { %2782 = vmatpush3.bf16.msra.mxu0 %v2936_v21  ;;  %v2997_v21 = vld [vmem:[%s3917_s19 + $0x88] ss:$28 sps:$4 sm:$0xff]  }
 0x593   :  { %2783 = vmatprep.subr.bf16.mxu0 %v3098_v38 }
 0x596   :  { %2784 = vmatpush3.bf16.msra.mxu0 %v2937_v22  ;;  %v3000_v22 = vld [vmem:[%s3917_s19 + $0xbc] ss:$28 sps:$4 sm:$0xff]  }
 0x597   :  { %2033 = vmatprep.subr.bf16.mxu0 %v2943_v25  ;;  %v3004_v25 = vld [vmem:[%s3917_s19 + $0xf4] ss:$28 sps:$4 sm:$0xff]  }
 0x64c   :  { %v1361_v12 = vpop.f32.mrb[16].mxu0 }
 0x64d   :  { %v1362_v13 = vadd.f32 %v2377_v11, %v1361_v12  ;;  %v2747_v14 = vpop.f32.mrb[17].mxu0 }
 0x64e   :  { %v1364_v15 = vpop.f32.mrb[18].mxu0  ;;  %v2989_v14 = vld [vmem:[%s3917_s19 + $0x18] ss:$28 sps:$4 sm:$0xff]  }
 0x64f   :  { %v1365_v16 = vadd.f32 %v2377_v11, %v1364_v15  ;;  %v2748_v17 = vpop.f32.mrb[19].mxu0  ;;  %v1368_v18 = vmax.f32 %v1362_v13, 0.0  ;;  %v2986_v13 = vld [vmem:[%s3917_s19 + $0x10] ss:$28 sps:$4 sm:$0xff]  }
 0x650   :  { %v2990_v17 = vld [vmem:[%s3917_s19 + $0x48] ss:$28 sps:$4 sm:$0xff]  }
 0x651   :  { %v1369_v19 = vmax.f32 %v1365_v16, 0.0  ;;  %v2992_v16 = vld [vmem:[%s3917_s19 + $0x4c] ss:$28 sps:$4 sm:$0xff]  }
 0x653   :  { %v1387_v20 = vpack.c.bf16 %v1369_v19, %v1368_v18  ;;  %v2993_v18 = vld [vmem:[%s3917_s19 + $0x50] ss:$28 sps:$4 sm:$0xff]   ;;  %v2996_v19 = vld [vmem:[%s3917_s19 + $0x84] ss:$28 sps:$4 sm:$0xff]  }
 0x655   :  { %2766 = vmatmul.mubr.bf16.vlgmr.msra.gmra.mrb[20].mxu1 %v1387_v20  ;;  %v2994_v20 = vld [vmem:[%s3917_s19 + $0x80] ss:$28 sps:$4 sm:$0xff]  }
 0x656   :  { %1991 = vmatpush1.bf16.msra.mxu1 %v2938_v23  ;;  %2022 = vmatprep.mubr.bf16.mxu1 %v3100_v3  ;;  %v2998_v23 = vld [vmem:[%s3917_s19 + $0xb8] ss:$28 sps:$4 sm:$0xff]  }
 0x657   :  { %1992 = vmatprep.subr.bf16.mxu1 %v2946_v26  ;;  %v3002_v26 = vld [vmem:[%s3917_s19 + $0xf0] ss:$28 sps:$4 sm:$0xff]  }
 0x65a   :  { %1993 = vmatpush1.bf16.msra.mxu1 %v2944_v27  ;;  %v3005_v27 = vld [vmem:[%s3917_s19 + $0xf8] ss:$28 sps:$4 sm:$0xff]  }
 0x65b   :  { %1994 = vmatprep.subr.bf16.mxu1 %v2952_v28  ;;  %v3008_v28 = vld [vmem:[%s3917_s19 + $0x12c] ss:$28 sps:$4 sm:$0xff]  }
 0x65e   :  { %1995 = vmatpush1.bf16.msra.mxu1 %v2950_v29  ;;  %v3006_v29 = vld [vmem:[%s3917_s19 + $0x128] ss:$28 sps:$4 sm:$0xff]  }
 0x65f   :  { %1996 = vmatprep.subr.bf16.mxu1 %v2958_v30  ;;  %v3009_v30 = vld [vmem:[%s3917_s19 + $0x130] ss:$28 sps:$4 sm:$0xff]  }
 0x662   :  { %1997 = vmatpush1.bf16.msra.mxu1 %v2956_v31  ;;  %v3012_v31 = vld [vmem:[%s3917_s19 + $0x164] ss:$28 sps:$4 sm:$0xff]  }
 0x663   :  { %1998 = vmatprep.subr.bf16.mxu1 %v2964_v32  ;;  %v3010_v32 = vld [vmem:[%s3917_s19 + $0x160] ss:$28 sps:$4 sm:$0xff]  }
 0x666   :  { %1999 = vmatpush1.bf16.msra.mxu1 %v2962_v33  ;;  %v3013_v33 = vld [vmem:[%s3917_s19 + $0x168] ss:$28 sps:$4 sm:$0xff]  }
 0x667   :  { %2000 = vmatprep.subr.bf16.mxu1 %v2970_v34  ;;  %v3016_v34 = vld [vmem:[%s3917_s19 + $0x19c] ss:$28 sps:$4 sm:$0xff]  }
 0x66a   :  { %2001 = vmatpush1.bf16.msra.mxu1 %v2968_v35  ;;  %v3014_v35 = vld [vmem:[%s3917_s19 + $0x198] ss:$28 sps:$4 sm:$0xff]  }
 0x66b   :  { %2002 = vmatprep.subr.bf16.mxu1 %v2976_v58 }
 0x66e   :  { %2003 = vmatpush1.bf16.msra.mxu1 %v2974_v60 }
 0x66f   :  { %2004 = vmatprep.subr.bf16.mxu1 %v2982_v62 }
 0x672   :  { %2005 = vmatpush1.bf16.msra.mxu1 %v2980_v0 }
 0x673   :  { %2076 = vmatprep.subr.bf16.mxu1 %v2988_v2 }
 0x728   :  { %v1476_v37 = vpop.f32.mrb[20].mxu1 }
 0x729   :  { %v1477_v39 = vadd.f32 %v2386_v36, %v1476_v37  ;;  %v2767_v40 = vpop.f32.mrb[21].mxu1  ;;  %v1667_v37 = vlaneseq }
 0x72a   :  { %v1479_v41 = vpop.f32.mrb[22].mxu1 }
 0x72b   :  { %v1480_v42 = vadd.f32 %v2386_v36, %v1479_v41  ;;  %v2768_v43 = vpop.f32.mrb[23].mxu1  ;;  %v1483_v44 = vmax.f32 %v1477_v39, 0.0  ;;  %v3017_v36 = vld [vmem:[%s3917_s19 + $0x1a0] ss:$28 sps:$4 sm:$0xff]   ;;  %v3863_v39 = vshrl.u32 %v1667_v37, 7  ;;  %s3101_s19 = smov [#allocation2]  }
 0x72d   :  { %v1484_v45 = vmax.f32 %v1480_v42, 0.0  ;;  %v1669_v40 = vsub.s32 0, %v3863_v39  ;;  %v1677_v41 = vsub.s32 2, %v3863_v39  ;;  %v3870_v42 = vld [vmem:[%s3918_s20] sm:$0x7f]  ;;  %v1673_v43 = vsub.s32 1, %v3863_v39 }
 0x72e   :  { %s2263_s20 = sshll.u32 %s3101_s19, 4  ;;  %s2264_s20 = int_to_ptr.vmem [resolvable:$true] %s2263_s20 }
 0x72f   :  { %v1502_v47 = vpack.c.bf16 %v1484_v45, %v1483_v44  ;;  %v1670_v44 = vrot.slane %v3870_v42, %v1669_v40  ;;  %v1678_v45 = vrot.slane %v3870_v42, %v1677_v41  ;;  %s3074_s17 = scalar_lea.vmem %s2264_s20, 1792  ;;  %p3079_p1 = scmp.lt.s32.totalorder %s2264_s20, %s2264_s20 }
 0x730   :  { %p3075_p0 = scmp.ne.s32.totalorder %s2264_s20, %s3074_s17  ;;  %p3080_p2 = scmp.lt.s32.totalorder %s3074_s17, %s3074_s17 }
 0x731   :  { %2786 = vmatmul.mubr.bf16.vlgmr.msra.gmra.mrb[20].mxu0 %v1502_v47 }
 0x732   :  { %2034 = vmatpush1.bf16.msra.mxu0 %v2941_v46  ;;  %2065 = vmatprep.mubr.bf16.mxu0 %v3100_v3  ;;  %v1674_v46 = vrot.slane %v3870_v42, %v1673_v43  ;;  %p3081_p3 = por %p3080_p2, %p3079_p1 }
 0x733   :  { %2035 = vmatprep.subr.bf16.mxu0 %v2949_v48 }
 0x734   :  { %p3082_p4 = pnand %p3081_p3, %p3075_p0 }
 0x736   :  { %2036 = vmatpush1.bf16.msra.mxu0 %v2947_v49 }
 0x737   :  { %2037 = vmatprep.subr.bf16.mxu0 %v2955_v50 }
 0x73a   :  { %2038 = vmatpush1.bf16.msra.mxu0 %v2953_v51 }
 0x73b   :  { %2039 = vmatprep.subr.bf16.mxu0 %v2961_v52 }
 0x73e   :  { %2040 = vmatpush1.bf16.msra.mxu0 %v2959_v53 }
 0x73f   :  { %2041 = vmatprep.subr.bf16.mxu0 %v2967_v54 }
 0x742   :  { %2042 = vmatpush1.bf16.msra.mxu0 %v2965_v55 }
 0x743   :  { %2043 = vmatprep.subr.bf16.mxu0 %v2973_v56 }
 0x746   :  { %2044 = vmatpush1.bf16.msra.mxu0 %v2971_v57 }
 0x747   :  { %2045 = vmatprep.subr.bf16.mxu0 %v2979_v59 }
 0x74a   :  { %2046 = vmatpush1.bf16.msra.mxu0 %v2977_v61 }
 0x74b   :  { %2047 = vmatprep.subr.bf16.mxu0 %v2985_v63 }
 0x74e   :  { %2048 = vmatpush1.bf16.msra.mxu0 %v2983_v1 }
 0x74f   :  { %2789 = vmatprep.subr.bf16.mxu0 %v3098_v38 }
 0x804   :  { %v1591_v5 = vpop.f32.mrb[20].mxu0 }
 0x805   :  { %v1592_v6 = vadd.f32 %v2395_v4, %v1591_v5  ;;  %v2787_v7 = vpop.f32.mrb[21].mxu0 }
 0x806   :  { %v1594_v8 = vpop.f32.mrb[22].mxu0 }
 0x807   :  { %v1595_v9 = vadd.f32 %v2395_v4, %v1594_v8  ;;  %v2788_v10 = vpop.f32.mrb[23].mxu0  ;;  %v1598_v11 = vmax.f32 %v1592_v6, 0.0 }
 0x809   :  { %v1599_v12 = vmax.f32 %v1595_v9, 0.0 }
 0x80b   :  { %v1665_v15 = vpack.c.bf16 %v1599_v12, %v1598_v11 }
 0x80d   :  { %2023 = vmatmul.mubr.bf16.vlgmr.msra.gmra.mrb[24].mxu1 %v1665_v15  ;;  %2066 = vmatmul.mubr.bf16.vlgmr.msra.gmra.mrb[24].mxu0 %v1665_v15 }
 0x80e   :  { %2077 = vmatpush1.bf16.msra.mxu1 %v2986_v13  ;;  %2790 = vmatpush3.bf16.msra.mxu0 %v2989_v14 }
 0x80f   :  { %2078 = vmatprep.subr.bf16.mxu1 %v2992_v16  ;;  %2791 = vmatprep.subr.bf16.mxu0 %v3098_v38 }
 0x810   :  { %2108 = vmatprep.mubr.bf16.mxu1 %v3100_v3  ;;  %2805 = vmatprep.mubr.msk.bf16.mxu0 %vm3099_vm0, %v3098_v38 }
 0x812   :  { %2079 = vmatpush1.bf16.msra.mxu1 %v2990_v17  ;;  %2792 = vmatpush3.bf16.msra.mxu0 %v2993_v18 }
 0x813   :  { %2080 = vmatprep.subr.bf16.mxu1 %v2996_v19  ;;  %2793 = vmatprep.subr.bf16.mxu0 %v3098_v38 }
 0x816   :  { %2081 = vmatpush1.bf16.msra.mxu1 %v2994_v20  ;;  %2794 = vmatpush3.bf16.msra.mxu0 %v2997_v21 }
 0x817   :  { %2082 = vmatprep.subr.bf16.mxu1 %v3000_v22  ;;  %2795 = vmatprep.subr.bf16.mxu0 %v3098_v38 }
 0x81a   :  { %2083 = vmatpush1.bf16.msra.mxu1 %v2998_v23  ;;  %2796 = vmatpush3.bf16.msra.mxu0 %v3001_v24  ;;  %v1685_v24 = vsub.s32 4, %v3863_v39 }
 0x81b   :  { %2084 = vmatprep.subr.bf16.mxu1 %v3004_v25  ;;  %2797 = vmatprep.subr.bf16.mxu0 %v3098_v38  ;;  %v1693_v25 = vsub.s32 6, %v3863_v39 }
 0x81e   :  { %2085 = vmatpush1.bf16.msra.mxu1 %v3002_v26  ;;  %2798 = vmatpush3.bf16.msra.mxu0 %v3005_v27  ;;  %v1689_v26 = vsub.s32 5, %v3863_v39 }
 0x81f   :  { %2086 = vmatprep.subr.bf16.mxu1 %v3008_v28  ;;  %2799 = vmatprep.subr.bf16.mxu0 %v3098_v38 }
 0x822   :  { %2087 = vmatpush1.bf16.msra.mxu1 %v3006_v29  ;;  %2800 = vmatpush3.bf16.msra.mxu0 %v3009_v30  ;;  %v1686_v29 = vrot.slane %v3870_v42, %v1685_v24  ;;  %v1694_v30 = vrot.slane %v3870_v42, %v1693_v25 }
 0x823   :  { %2088 = vmatprep.subr.bf16.mxu1 %v3012_v31  ;;  %2801 = vmatprep.subr.bf16.mxu0 %v3098_v38 }
 0x826   :  { %2089 = vmatpush1.bf16.msra.mxu1 %v3010_v32  ;;  %2802 = vmatpush3.bf16.msra.mxu0 %v3013_v33  ;;  %v1690_v32 = vrot.slane %v3870_v42, %v1689_v26 }
 0x827   :  { %2090 = vmatprep.subr.bf16.mxu1 %v3016_v34  ;;  %2803 = vmatprep.subr.bf16.mxu0 %v3098_v38  ;;  %v1681_v38 = vsub.s32 3, %v3863_v39 }
 0x829   :  { %v1682_v47 = vrot.slane %v3870_v42, %v1681_v38 }
 0x82a   :  { %2091 = vmatpush1.bf16.msra.mxu1 %v3014_v35  ;;  %2804 = vmatpush3.bf16.msra.mxu0 %v3017_v36 }
 0x82d   :  { %2109 = vmatmul.mubr.bf16.vlgmr.msra.gmra.mrb[28].mxu1 %v1665_v15  ;;  %2806 = vmatmul.mubr.bf16.vlgmr.msra.gmra.mrb[28].mxu0 %v1665_v15 }
 0x8e0   :  { %v2024_v48 = vpop.f32.mrb[24].mxu1  ;;  %v2067_v49 = vpop.f32.mrb[24].mxu0 }
 0x8e1   :  { %v2025_v50 = vadd.f32 %v2024_v48, %v1670_v44  ;;  %v2068_v51 = vadd.f32 %v2067_v49, %v1678_v45  ;;  %v2026_v52 = vpop.f32.mrb[25].mxu1  ;;  %v2069_v53 = vpop.f32.mrb[25].mxu0 }
 0x8e2   :  { %v2027_v54 = vadd.f32 %v2026_v52, %v1674_v46  ;;  %v2070_v55 = vadd.f32 %v2069_v53, %v1682_v47  ;;  %v2028_v56 = vpop.f32.mrb[26].mxu1  ;;  %v2071_v57 = vpop.f32.mrb[26].mxu0 }
 0x8e3   :  { %v2460_v58 = vmul.f32 -1.442695, %v2025_v50  ;;  %v2462_v59 = vmul.f32 -1.442695, %v2068_v51  ;;  %v2029_v60 = vadd.f32 %v2028_v56, %v1670_v44  ;;  %v2072_v61 = vadd.f32 %v2071_v57, %v1678_v45  ;;  %v2030_v62 = vpop.f32.mrb[27].mxu1  ;;  %v2073_v63 = vpop.f32.mrb[27].mxu0 }
 0x8e4   :  { %v2461_v0 = vmul.f32 -1.442695, %v2027_v54  ;;  %v2463_v1 = vmul.f32 -1.442695, %v2070_v55  ;;  %v2031_v2 = vadd.f32 %v2030_v62, %v1674_v46  ;;  %v2074_v3 = vadd.f32 %v2073_v63, %v1682_v47 }
 0x8e5   :  { %3018 = vpow2.f32 %v2460_v58  ;;  %v2467_v4 = vmul.f32 -1.442695, %v2029_v60  ;;  %v2469_v5 = vmul.f32 -1.442695, %v2072_v61 }
 0x8e6   :  { %3020 = vpow2.f32 %v2462_v59  ;;  %v2468_v6 = vmul.f32 -1.442695, %v2031_v2  ;;  %v2470_v7 = vmul.f32 -1.442695, %v2074_v3 }
 0x8e7   :  { %3022 = vpow2.f32 %v2461_v0 }
 0x8e8   :  { %3024 = vpow2.f32 %v2463_v1 }
 0x8e9   :  { %3026 = vpow2.f32 %v2467_v4 }
 0x8ea   :  { %3028 = vpow2.f32 %v2469_v5 }
 0x8eb   :  { %3030 = vpow2.f32 %v2468_v6 }
 0x8ec   :  { %3032 = vpow2.f32 %v2470_v7 }
 0x8ef   :  { %v3019_v8 = vpop.eup %3018 }
 0x8f0   :  { %v3021_v9 = vpop.eup %3020  ;;  %v2202_v10 = vadd.f32 1.0, %v3019_v8 }
 0x8f1   :  { %v3023_v11 = vpop.eup %3022  ;;  %v2204_v12 = vadd.f32 1.0, %v3021_v9 }
 0x8f2   :  { %v3025_v13 = vpop.eup %3024  ;;  %3034 = vrcp.f32 %v2202_v10  ;;  %v2203_v14 = vadd.f32 1.0, %v3023_v11 }
 0x8f3   :  { %v3027_v15 = vpop.eup %3026  ;;  %3036 = vrcp.f32 %v2204_v12  ;;  %v2205_v16 = vadd.f32 1.0, %v3025_v13 }
 0x8f4   :  { %v3029_v17 = vpop.eup %3028  ;;  %3038 = vrcp.f32 %v2203_v14  ;;  %v2209_v18 = vadd.f32 1.0, %v3027_v15 }
 0x8f5   :  { %v3031_v19 = vpop.eup %3030  ;;  %3040 = vrcp.f32 %v2205_v16  ;;  %v2211_v20 = vadd.f32 1.0, %v3029_v17 }
 0x8f6   :  { %v3033_v21 = vpop.eup %3032  ;;  %3042 = vrcp.f32 %v2209_v18  ;;  %v2210_v22 = vadd.f32 1.0, %v3031_v19 }
 0x8f7   :  { %3044 = vrcp.f32 %v2211_v20  ;;  %v2212_v23 = vadd.f32 1.0, %v3033_v21 }
 0x8f8   :  { %3046 = vrcp.f32 %v2210_v22 }
 0x8f9   :  { %3048 = vrcp.f32 %v2212_v23 }
 0x8fc   :  { %v3035_v27 = vpop.eup %3034 }
 0x8fd   :  { %v3037_v28 = vpop.eup %3036  ;;  %2244 = vst [vmem:[#allocation2] sm:$0xff] %v3035_v27 }
 0x8fe   :  { %v3039_v31 = vpop.eup %3038  ;;  %2246 = vst [vmem:[#allocation2 + $0x10] sm:$0xff] %v3037_v28 }
 0x8ff   :  { %v3041_v33 = vpop.eup %3040  ;;  %2245 = vst [vmem:[#allocation2 + $0x8] sm:$0xff] %v3039_v31 }
 0x900   :  { %v3043_v34 = vpop.eup %3042  ;;  %2247 = vst [vmem:[#allocation2 + $0x18] sm:$0xff] %v3041_v33  ;;  %v2110_v35 = vpop.f32.mrb[28].mxu1 }
 0x901   :  { %v2153_v36 = vpop.f32.mrb[28].mxu0  ;;  %v3045_v37 = vpop.eup %3044  ;;  %2251 = vst [vmem:[#allocation2 + $0x38] sm:$0xff] %v3043_v34  ;;  %v2111_v39 = vadd.f32 %v2110_v35, %v1686_v29 }
 0x902   :  { %v2154_v40 = vadd.f32 %v2153_v36, %v1694_v30  ;;  %v2112_v41 = vpop.f32.mrb[29].mxu1  ;;  %v2807_v43 = vpop.f32.mrb[29].mxu0  ;;  %2253 = vst [vmem:[#allocation2 + $0x48] sm:$0xff] %v3045_v37 }
 0x903   :  { %v3047_v38 = vpop.eup %3046  ;;  %v2113_v44 = vadd.f32 %v2112_v41, %v1690_v32  ;;  %v2114_v45 = vpop.f32.mrb[30].mxu1  ;;  %v2464_v42 = vmul.f32 -1.442695, %v2111_v39 }
 0x904   :  { %v2156_v46 = vpop.f32.mrb[30].mxu0  ;;  %v3049_v47 = vpop.eup %3048  ;;  %2252 = vst [vmem:[#allocation2 + $0x40] sm:$0xff] %v3047_v38  ;;  %v2466_v48 = vmul.f32 -1.442695, %v2154_v40  ;;  %v2115_v49 = vadd.f32 %v2114_v45, %v1686_v29 }
 0x905   :  { %v2157_v50 = vadd.f32 %v2156_v46, %v1694_v30  ;;  %v2116_v51 = vpop.f32.mrb[31].mxu1  ;;  %v2808_v52 = vpop.f32.mrb[31].mxu0  ;;  %2254 = vst [vmem:[#allocation2 + $0x50] sm:$0xff] %v3049_v47  ;;  %v2465_v53 = vmul.f32 -1.442695, %v2113_v44  ;;  %3050 = vpow2.f32 %v2464_v42 }
 0x906   :  { %v2117_v54 = vadd.f32 %v2116_v51, %v1690_v32  ;;  %v2471_v55 = vmul.f32 -1.442695, %v2115_v49  ;;  %3052 = vpow2.f32 %v2466_v48 }
 0x907   :  { %v2473_v56 = vmul.f32 -1.442695, %v2157_v50  ;;  %3054 = vpow2.f32 %v2465_v53 }
 0x908   :  { %v2472_v57 = vmul.f32 -1.442695, %v2117_v54  ;;  %3056 = vpow2.f32 %v2471_v55 }
 0x909   :  { %3058 = vpow2.f32 %v2473_v56 }
 0x90a   :  { %3060 = vpow2.f32 %v2472_v57 }
 0x90f   :  { %v3051_v58 = vpop.eup %3050 }
 0x910   :  { %v3053_v59 = vpop.eup %3052  ;;  %v2206_v60 = vadd.f32 1.0, %v3051_v58 }
 0x911   :  { %v3055_v61 = vpop.eup %3054  ;;  %v2208_v62 = vadd.f32 1.0, %v3053_v59 }
 0x912   :  { %v3057_v63 = vpop.eup %3056  ;;  %3062 = vrcp.f32 %v2206_v60  ;;  %v2207_v0 = vadd.f32 1.0, %v3055_v61 }
 0x913   :  { %v3059_v1 = vpop.eup %3058  ;;  %3064 = vrcp.f32 %v2208_v62  ;;  %v2213_v2 = vadd.f32 1.0, %v3057_v63 }
 0x914   :  { %v3061_v3 = vpop.eup %3060  ;;  %3066 = vrcp.f32 %v2207_v0  ;;  %v2215_v4 = vadd.f32 1.0, %v3059_v1 }
 0x915   :  { %3068 = vrcp.f32 %v2213_v2  ;;  %v2214_v5 = vadd.f32 1.0, %v3061_v3 }
 0x916   :  { %3070 = vrcp.f32 %v2215_v4 }
 0x917   :  { %3072 = vrcp.f32 %v2214_v5 }
 0x91c   :  { %v3063_v6 = vpop.eup %3062 }
 0x91d   :  { %v3065_v7 = vpop.eup %3064  ;;  %2248 = vst [vmem:[#allocation2 + $0x20] sm:$0xff] %v3063_v6 }
 0x91e   :  { %v3067_v8 = vpop.eup %3066  ;;  %2250 = vst.msk [vmem:[#allocation2 + $0x30] sm:$0xff] %vm512_vm1, %v3065_v7 }
 0x91f   :  { %v3069_v9 = vpop.eup %3068  ;;  %2249 = vst [vmem:[#allocation2 + $0x28] sm:$0xff] %v3067_v8 }
 0x920   :  { %v3071_v10 = vpop.eup %3070  ;;  %2255 = vst [vmem:[#allocation2 + $0x58] sm:$0xff] %v3069_v9 }
 0x921   :  { %v3073_v11 = vpop.eup %3072  ;;  %2257 = vst.msk [vmem:[#allocation2 + $0x68] sm:$0xff] %vm512_vm1, %v3071_v10 }
 0x922   :  { %2256 = vst [vmem:[#allocation2 + $0x60] sm:$0xff] %v3073_v11 }
 0x923   :  { %3085 = shalt.err (!%p3082_p4)
}
 0x924   :  { %s3086_s24 = scalar_lea.hbm %s3919_s21, 1792 }
 0x925   :  { %p3087_p5 = scmp.ne.s32.totalorder %s3919_s21, %s3086_s24  ;;  %p3090_p6 = scmp.lt.u32.totalorder %s3086_s24, %s3919_s21 }
 0x927   :  { %p3092_p7 = pnand %p3090_p6, %p3087_p5 }
 0x929   :  { %3095 = shalt.err (!%p3092_p7)
}
 0x92a   :  { %s3102_s6 = smov 896   ;;  %s3103_s25 = smov 56  }
 0x92b   :  { %2269 = dma.vmem_to_hbm [thread:$0]  %s2264_s20, 1792, %s3919_s21, [#allocation3], %s3102_s6, %s3102_s6, %s3103_s25  }
 0x92c   :  { %3096 = dma.done.wait [#allocation3], 1792  }
 0x92d   :  { %3097 = vsyncadd [#allocation3], 4294965504 }
 0x92e   :  { %2273 = vsyncpa [#allocation3], 1 }

// kernel: _ae_forward_impl.1
= control target key start
LH: loop header
LB: loop body
LE: loop exit
PB: predicated region body
PF: predicated region fallthrough
CT: control target
= control target key end

     0   :  { %s3898_s0 = inlined_call_operand.vmem [shape: bf16[16,784], index: 0, kind: input, shape index: {}]   ;;  %s3899_s1 = inlined_call_operand.vmem [shape: bf16[784,128], index: 1, kind: input, shape index: {}]   ;;  %s3900_s2 = inlined_call_operand.vmem [shape: f32[1,128], index: 2, kind: input, shape index: {}]   ;;  %s3901_s3 = inlined_call_operand.vmem [shape: bf16[128,128], index: 3, kind: input, shape index: {}]   ;;  %s3902_s4 = inlined_call_operand.vmem [shape: f32[1,128], index: 4, kind: input, shape index: {}]   ;;  %s3903_s5 = inlined_call_operand.vmem [shape: bf16[128,128], index: 5, kind: input, shape index: {}]   ;;  %s3904_s6 = inlined_call_operand.vmem [shape: f32[1,128], index: 6, kind: input, shape index: {}]   ;;  %s3905_s7 = inlined_call_operand.vmem [shape: bf16[128,128], index: 7, kind: input, shape index: {}]   ;;  %s3906_s8 = inlined_call_operand.vmem [shape: f32[1,128], index: 8, kind: input, shape index: {}]   ;;  %s3907_s9 = inlined_call_operand.vmem [shape: bf16[128,128], index: 9, kind: input, shape index: {}]   ;;  %s3908_s10 = inlined_call_operand.vmem [shape: f32[1,128], index: 10, kind: input, shape index: {}]   ;;  %s3909_s11 = inlined_call_operand.vmem [shape: bf16[128,128], index: 11, kind: input, shape index: {}]   ;;  %s3910_s12 = inlined_call_operand.vmem [shape: f32[1,128], index: 12, kind: input, shape index: {}]   ;;  %s3911_s13 = inlined_call_operand.vmem [shape: bf16[128,128], index: 13, kind: input, shape index: {}]   ;;  %s3912_s14 = inlined_call_operand.vmem [shape: f32[1,128], index: 14, kind: input, shape index: {}]   ;;  %s3913_s15 = inlined_call_operand.vmem [shape: bf16[128,128], index: 15, kind: input, shape index: {}]   ;;  %s3914_s16 = inlined_call_operand.vmem [shape: f32[1,128], index: 16, kind: input, shape index: {}]   ;;  %s3915_s17 = inlined_call_operand.vmem [shape: bf16[128,128], index: 17, kind: input, shape index: {}]   ;;  %s3916_s18 = inlined_call_operand.vmem [shape: f32[1,128], index: 18, kind: input, shape index: {}]   ;;  %s3917_s19 = inlined_call_operand.vmem [shape: bf16[128,784], index: 19, kind: input, shape index: {}]   ;;  %s3918_s20 = inlined_call_operand.vmem [shape: f32[1,784], index: 20, kind: input, shape index: {}]   ;;  %s3919_s21 = inlined_call_operand.hbm [shape: f32[16,784], index: 21, kind: output, shape index: {}]  }
   0x1   :  { %3924 = sst [smem:[#allocation5_spill]] %s3898_s0 }
   0x2   :  { %3925 = sst [smem:[#allocation6_spill]] %s3899_s1 }
   0x3   :  { %3926 = sst [smem:[#allocation7_spill]] %s3900_s2 }
   0x4   :  { %3927 = sst [smem:[#allocation8_spill]] %s3901_s3 }
   0x5   :  { %3928 = sst [smem:[#allocation9_spill]] %s3902_s4 }
   0x6   :  { %3929 = sst [smem:[#allocation10_spill]] %s3903_s5 }
   0x7   :  { %s3930_s26 = sld [smem:[#allocation6_spill]]  ;;  %s3931_s30 = sld [smem:[#allocation5_spill]]  ;;  %v3098_v38 = vmov 0.0   ;;  %vm3099_vm0 = vmmov 0   ;;  %vm512_vm1 = vcmask 130048  }
   0xd   :  { %v2815_v0 = vld [vmem:[%s3930_s26 + $0x40] sm:$0xff]   ;;  %v2819_v4 = vld [vmem:[%s3930_s26 + $0x48] sm:$0xff]   ;;  %v2823_v8 = vld [vmem:[%s3930_s26 + $0x50] sm:$0xff]  }
   0xe   :  { %v2816_v1 = vld [vmem:[%s3930_s26] sm:$0xff]   ;;  %2474 = vmatprep.subr.bf16.mxu0 %v2815_v0  ;;  %v2820_v5 = vld [vmem:[%s3930_s26 + $0x8] sm:$0xff]   ;;  %v2824_v9 = vld [vmem:[%s3930_s26 + $0x10] sm:$0xff]  }
   0xf   :  { %v2817_v2 = vld [vmem:[%s3930_s26 + $0xc0] sm:$0xff]   ;;  %2475 = vmatpush3.bf16.msra.mxu0 %v2816_v1  ;;  %v2821_v6 = vld [vmem:[%s3930_s26 + $0xc8] sm:$0xff]   ;;  %v2825_v10 = vld [vmem:[%s3930_s26 + $0xd0] sm:$0xff]  }
  0x10   :  { %v2818_v3 = vld [vmem:[%s3930_s26 + $0x80] sm:$0xff]   ;;  %2496 = vmatprep.subr.bf16.mxu1 %v2817_v2  ;;  %2476 = vmatprep.subr.bf16.mxu0 %v2819_v4  ;;  %v2822_v7 = vld [vmem:[%s3930_s26 + $0x88] sm:$0xff]   ;;  %v2826_v11 = vld [vmem:[%s3930_s26 + $0x90] sm:$0xff]  }
  0x11   :  { %2497 = vmatpush3.bf16.msra.mxu1 %v2818_v3  ;;  %v2827_v12 = vld [vmem:[%s3930_s26 + $0x58] sm:$0xff]   ;;  %v2831_v16 = vld [vmem:[%s3930_s26 + $0x60] sm:$0xff]   ;;  %v2835_v20 = vld [vmem:[%s3930_s26 + $0x68] sm:$0xff]  }
  0x12   :  { %2498 = vmatprep.subr.bf16.mxu1 %v2821_v6  ;;  %v2828_v13 = vld [vmem:[%s3930_s26 + $0x18] sm:$0xff]   ;;  %v2832_v17 = vld [vmem:[%s3930_s26 + $0x20] sm:$0xff]   ;;  %v2836_v21 = vld [vmem:[%s3930_s26 + $0x28] sm:$0xff]  }
  0x13   :  { %2477 = vmatpush3.bf16.msra.mxu0 %v2820_v5  ;;  %v2829_v14 = vld [vmem:[%s3930_s26 + $0xd8] sm:$0xff]   ;;  %v2833_v18 = vld [vmem:[%s3930_s26 + $0xe0] sm:$0xff]   ;;  %v2837_v22 = vld [vmem:[%s3930_s26 + $0xe8] sm:$0xff]  }
  0x14   :  { %2478 = vmatprep.subr.bf16.mxu0 %v2823_v8  ;;  %v2830_v15 = vld [vmem:[%s3930_s26 + $0x98] sm:$0xff]   ;;  %v2834_v19 = vld [vmem:[%s3930_s26 + $0xa0] sm:$0xff]   ;;  %v2838_v23 = vld [vmem:[%s3930_s26 + $0xa8] sm:$0xff]  }
  0x15   :  { %2499 = vmatpush3.bf16.msra.mxu1 %v2822_v7  ;;  %v2839_v24 = vld [vmem:[%s3930_s26 + $0x70] sm:$0xff]   ;;  %v2843_v28 = vld [vmem:[%s3930_s26 + $0x78] sm:$0xff]   ;;  %v2848_v32 = vld [vmem:[%s3931_s30 + $0x4] ss:$28 sps:$4 sm:$0xff]  }
  0x16   :  { %2500 = vmatprep.subr.bf16.mxu1 %v2825_v10  ;;  %v2840_v25 = vld [vmem:[%s3930_s26 + $0x30] sm:$0xff]   ;;  %v2844_v29 = vld [vmem:[%s3930_s26 + $0x38] sm:$0xff]   ;;  %548 = vmatprep.mubr.bf16.mxu0 %v2848_v32  ;;  %v2850_v34 = vld [vmem:[%s3930_s26 + $0x140] sm:$0xff]  }
  0x17   :  { %2479 = vmatpush3.bf16.msra.mxu0 %v2824_v9  ;;  %v2841_v26 = vld [vmem:[%s3930_s26 + $0xf0] sm:$0xff]   ;;  %v2845_v30 = vld [vmem:[%s3930_s26 + $0xf8] sm:$0xff]   ;;  %v2851_v35 = vld [vmem:[%s3931_s30 + $0x8] ss:$28 sps:$4 sm:$0xff]  }
  0x18   :  { %2480 = vmatprep.subr.bf16.mxu0 %v2827_v12  ;;  %v2842_v27 = vld [vmem:[%s3930_s26 + $0xb0] sm:$0xff]   ;;  %v2846_v31 = vld [vmem:[%s3931_s30] ss:$28 sps:$4 sm:$0xff]   ;;  %v2853_v36 = vld [vmem:[%s3931_s30 + $0xc] ss:$28 sps:$4 sm:$0xff]  }
  0x19   :  { %2501 = vmatpush3.bf16.msra.mxu1 %v2826_v11  ;;  %v2849_v33 = vld [vmem:[%s3930_s26 + $0xb8] sm:$0xff]   ;;  %v2854_v37 = vld [vmem:[%s3930_s26 + $0x100] sm:$0xff]   ;;  %589 = vmatprep.mubr.bf16.mxu1 %v2853_v36  ;;  %v2855_v39 = vld [vmem:[%s3930_s26 + $0x148] sm:$0xff]  }
  0x1a   :  { %2502 = vmatprep.subr.bf16.mxu1 %v2829_v14  ;;  %v2856_v40 = vld [vmem:[%s3930_s26 + $0x108] sm:$0xff]   ;;  %v2857_v41 = vld [vmem:[%s3930_s26 + $0x150] sm:$0xff]   ;;  %v2859_v43 = vld [vmem:[%s3930_s26 + $0x158] sm:$0xff]  }
  0x1b   :  { %2481 = vmatpush3.bf16.msra.mxu0 %v2828_v13  ;;  %v2858_v42 = vld [vmem:[%s3930_s26 + $0x110] sm:$0xff]   ;;  %v2860_v44 = vld [vmem:[%s3930_s26 + $0x118] sm:$0xff]   ;;  %v2861_v45 = vld [vmem:[%s3930_s26 + $0x160] sm:$0xff]  }
  0x1c   :  { %2482 = vmatprep.subr.bf16.mxu0 %v2831_v16  ;;  %v2862_v46 = vld [vmem:[%s3930_s26 + $0x120] sm:$0xff]   ;;  %v2863_v47 = vld [vmem:[%s3930_s26 + $0x168] sm:$0xff]   ;;  %v2872_v50 = vld [vmem:[%s3931_s30 + $0x14] ss:$28 sps:$4 sm:$0xff]  }
  0x1d   :  { %2503 = vmatpush3.bf16.msra.mxu1 %v2830_v15  ;;  %v2869_v48 = vld [vmem:[%s3930_s26 + $0x180] sm:$0xff]   ;;  %v2864_v49 = vld [vmem:[%s3930_s26 + $0x128] sm:$0xff]   ;;  %v2865_v51 = vld [vmem:[%s3930_s26 + $0x170] sm:$0xff]  }
  0x1e   :  { %2504 = vmatprep.subr.bf16.mxu1 %v2833_v18  ;;  %v2873_v52 = vld [vmem:[%s3931_s30 + $0x18] ss:$28 sps:$4 sm:$0xff]   ;;  %v2870_v56 = vld [vmem:[%s3931_s30 + $0x10] ss:$28 sps:$4 sm:$0xff]  }
  0x1f   :  { %2483 = vmatpush3.bf16.msra.mxu0 %v2832_v17  ;;  %v2866_v53 = vld [vmem:[%s3930_s26 + $0x130] sm:$0xff]   ;;  %v2867_v54 = vld [vmem:[%s3930_s26 + $0x178] sm:$0xff]  }
  0x20   :  { %2484 = vmatprep.subr.bf16.mxu0 %v2835_v20  ;;  %v2868_v55 = vld [vmem:[%s3930_s26 + $0x138] sm:$0xff]  }
  0x21   :  { %2505 = vmatpush3.bf16.msra.mxu1 %v2834_v19 }
  0x22   :  { %2506 = vmatprep.subr.bf16.mxu1 %v2837_v22 }
  0x23   :  { %2485 = vmatpush3.bf16.msra.mxu0 %v2836_v21 }
  0x24   :  { %2486 = vmatprep.subr.bf16.mxu0 %v2839_v24 }
  0x25   :  { %2507 = vmatpush3.bf16.msra.mxu1 %v2838_v23 }
  0x26   :  { %2508 = vmatprep.subr.bf16.mxu1 %v2841_v26 }
  0x27   :  { %2487 = vmatpush3.bf16.msra.mxu0 %v2840_v25 }
  0x28   :  { %2488 = vmatprep.subr.bf16.mxu0 %v2843_v28 }
  0x29   :  { %2509 = vmatpush3.bf16.msra.mxu1 %v2842_v27 }
  0x2a   :  { %2510 = vmatprep.subr.bf16.mxu1 %v2845_v30 }
  0x2b   :  { %2489 = vmatpush3.bf16.msra.mxu0 %v2844_v29 }
  0x2c   :  { %2518 = vmatprep.subr.bf16.mxu0 %v2850_v34 }
  0x2d   :  { %2511 = vmatpush3.bf16.msra.mxu1 %v2849_v33 }
  0x2e   :  { %549 = vmatmul.mubr.bf16.vlgmr.msra.gmra.mrb[0].mxu0 %v2846_v31  ;;  %2623 = vmatprep.subr.bf16.mxu1 %v3098_v38 }
  0x2f   :  { %2519 = vmatpush3.bf16.msra.mxu0 %v2854_v37  ;;  %630 = vmatprep.mubr.bf16.mxu0 %v2872_v50 }
  0x30   :  { %590 = vmatmul.mubr.bf16.vlgmr.msra.gmra.mrb[0].mxu1 %v2851_v35  ;;  %2520 = vmatprep.subr.bf16.mxu0 %v2855_v39 }
  0x31   :  { %2625 = vmatprep.mubr.msk.bf16.mxu1 %vm3099_vm0, %v3098_v38  ;;  %2624 = vmatpush3.bf16.msra.mxu1 %v2869_v48 }
  0x32   :  { %2629 = vmatprep.subr.bf16.mxu1 %v3098_v38 }
  0x33   :  { %2521 = vmatpush3.bf16.msra.mxu0 %v2856_v40 }
  0x34   :  { %2522 = vmatprep.subr.bf16.mxu0 %v2857_v41 }
  0x37   :  { %2523 = vmatpush3.bf16.msra.mxu0 %v2858_v42 }
  0x38   :  { %2524 = vmatprep.subr.bf16.mxu0 %v2859_v43  ;;  %2626 = vmatmul.mubr.msk.bf16.vlgmr.msra.gmra.mrb[4].mxu1 %vm512_vm1, %v2873_v52 }
  0x39   :  { %2645 = vmatprep.mubr.msk.bf16.mxu1 %vm3099_vm0, %v3098_v38 }
  0x3b   :  { %2525 = vmatpush3.bf16.msra.mxu0 %v2860_v44 }
  0x3c   :  { %2526 = vmatprep.subr.bf16.mxu0 %v2861_v45 }
  0x3f   :  { %2527 = vmatpush3.bf16.msra.mxu0 %v2862_v46 }
  0x40   :  { %2528 = vmatprep.subr.bf16.mxu0 %v2863_v47 }
  0x43   :  { %2529 = vmatpush3.bf16.msra.mxu0 %v2864_v49 }
  0x44   :  { %2530 = vmatprep.subr.bf16.mxu0 %v2865_v51 }
  0x47   :  { %2531 = vmatpush3.bf16.msra.mxu0 %v2866_v53 }
  0x48   :  { %2532 = vmatprep.subr.bf16.mxu0 %v2867_v54 }
  0x4b   :  { %2533 = vmatpush3.bf16.msra.mxu0 %v2868_v55 }
  0x4c   :  { %2649 = vmatprep.subr.bf16.mxu0 %v3098_v38 }
  0x4e   :  { %631 = vmatmul.mubr.bf16.vlgmr.msra.gmra.mrb[4].mxu0 %v2870_v56 }
  0x4f   :  { %2665 = vmatprep.mubr.msk.bf16.mxu0 %vm3099_vm0, %v3098_v38 }
  0x50   :  { %26 = vsyncpa [#allocation3], 0  ;;  %s3932_s0 = sld [smem:[#allocation8_spill]]  ;;  %s3933_s30 = sld [smem:[#allocation10_spill]]  ;;  %v2890_v44 = vld [vmem:[%s3905_s7] sm:$0xff]   ;;  %v2891_v45 = vld [vmem:[%s3905_s7 + $0x8] sm:$0xff]  }
  0x51   :  { %s3934_s26 = sld [smem:[#allocation7_spill]]  ;;  %v2892_v46 = vld [vmem:[%s3905_s7 + $0x10] sm:$0xff]   ;;  %v2893_v47 = vld [vmem:[%s3905_s7 + $0x18] sm:$0xff]   ;;  %v2894_v48 = vld [vmem:[%s3905_s7 + $0x20] sm:$0xff]   ;;  %s3935_s23 = sld [smem:[#allocation9_spill]] }
  0x52   :  { %v2895_v49 = vld [vmem:[%s3905_s7 + $0x28] sm:$0xff]  }
  0x56   :  { %v2874_v57 = vld [vmem:[%s3932_s0] sm:$0xff]   ;;  %v2875_v58 = vld [vmem:[%s3932_s0 + $0x8] sm:$0xff]   ;;  %v2876_v59 = vld [vmem:[%s3932_s0 + $0x10] sm:$0xff]  }
  0x57   :  { %2630 = vmatpush3.bf16.msra.mxu1 %v2874_v57  ;;  %v2877_v60 = vld [vmem:[%s3932_s0 + $0x18] sm:$0xff]   ;;  %v2878_v61 = vld [vmem:[%s3932_s0 + $0x20] sm:$0xff]   ;;  %v2879_v62 = vld [vmem:[%s3932_s0 + $0x28] sm:$0xff]  }
  0x58   :  { %2631 = vmatprep.subr.bf16.mxu1 %v3098_v38  ;;  %v2880_v63 = vld [vmem:[%s3932_s0 + $0x30] sm:$0xff]   ;;  %v2881_v0 = vld [vmem:[%s3932_s0 + $0x38] sm:$0xff]   ;;  %v2882_v1 = vld [vmem:[%s3933_s30] sm:$0xff]  }
  0x59   :  { %2650 = vmatpush3.bf16.msra.mxu0 %v2882_v1  ;;  %v2883_v2 = vld [vmem:[%s3933_s30 + $0x8] sm:$0xff]   ;;  %v2884_v3 = vld [vmem:[%s3933_s30 + $0x10] sm:$0xff]   ;;  %v2885_v4 = vld [vmem:[%s3933_s30 + $0x18] sm:$0xff]  }
  0x5a   :  { %2651 = vmatprep.subr.bf16.mxu0 %v3098_v38  ;;  %v2886_v5 = vld [vmem:[%s3933_s30 + $0x20] sm:$0xff]   ;;  %v2887_v6 = vld [vmem:[%s3933_s30 + $0x28] sm:$0xff]   ;;  %v2888_v42 = vld [vmem:[%s3933_s30 + $0x30] sm:$0xff]  }
  0x5b   :  { %2632 = vmatpush3.bf16.msra.mxu1 %v2875_v58  ;;  %v2274_v8 = vld [vmem:[%s3934_s26] ss:$0 sm:$0xff]  ;;  %v2889_v43 = vld [vmem:[%s3933_s30 + $0x38] sm:$0xff]  }
  0x5c   :  { %2633 = vmatprep.subr.bf16.mxu1 %v3098_v38  ;;  %v2332_v50 = vld [vmem:[%s3935_s23] ss:$0 sm:$0xff]  ;;  %v2901_v1 = vld [vmem:[%s3907_s9 + $0x18] sm:$0xff]  }
  0x5d   :  { %2652 = vmatpush3.bf16.msra.mxu0 %v2883_v2  ;;  %v2902_v2 = vld [vmem:[%s3907_s9 + $0x20] sm:$0xff]  }
  0x5e   :  { %2653 = vmatprep.subr.bf16.mxu0 %v3098_v38 }
  0x5f   :  { %2634 = vmatpush3.bf16.msra.mxu1 %v2876_v59 }
  0x60   :  { %2635 = vmatprep.subr.bf16.mxu1 %v3098_v38 }
  0x61   :  { %2654 = vmatpush3.bf16.msra.mxu0 %v2884_v3  ;;  %v2903_v3 = vld [vmem:[%s3907_s9 + $0x28] sm:$0xff]  }
  0x62   :  { %2655 = vmatprep.subr.bf16.mxu0 %v3098_v38 }
  0x63   :  { %2636 = vmatpush3.bf16.msra.mxu1 %v2877_v60  ;;  %v2896_v60 = vld [vmem:[%s3905_s7 + $0x30] sm:$0xff]  }
  0x64   :  { %2637 = vmatprep.subr.bf16.mxu1 %v3098_v38 }
  0x65   :  { %2656 = vmatpush3.bf16.msra.mxu0 %v2885_v4  ;;  %v2341_v4 = vld [vmem:[%s3904_s6] ss:$0 sm:$0xff] }
  0x66   :  { %2657 = vmatprep.subr.bf16.mxu0 %v3098_v38 }
  0x67   :  { %2638 = vmatpush3.bf16.msra.mxu1 %v2878_v61  ;;  %v2897_v61 = vld [vmem:[%s3905_s7 + $0x38] sm:$0xff]  }
  0x68   :  { %2639 = vmatprep.subr.bf16.mxu1 %v3098_v38 }
  0x69   :  { %2658 = vmatpush3.bf16.msra.mxu0 %v2886_v5 }
  0x6a   :  { %2659 = vmatprep.subr.bf16.mxu0 %v3098_v38 }
  0x6b   :  { %2640 = vmatpush3.bf16.msra.mxu1 %v2879_v62  ;;  %v2898_v62 = vld [vmem:[%s3907_s9] sm:$0xff]  }
  0x6c   :  { %2641 = vmatprep.subr.bf16.mxu1 %v3098_v38 }
  0x6d   :  { %2660 = vmatpush3.bf16.msra.mxu0 %v2887_v6 }
  0x6e   :  { %2661 = vmatprep.subr.bf16.mxu0 %v3098_v38 }
  0x6f   :  { %2642 = vmatpush3.bf16.msra.mxu1 %v2880_v63  ;;  %v2899_v63 = vld [vmem:[%s3907_s9 + $0x8] sm:$0xff]  }
  0x70   :  { %2643 = vmatprep.subr.bf16.mxu1 %v3098_v38 }
  0x71   :  { %2662 = vmatpush3.bf16.msra.mxu0 %v2888_v42 }
  0x72   :  { %2663 = vmatprep.subr.bf16.mxu0 %v3098_v38 }
  0x73   :  { %2644 = vmatpush3.bf16.msra.mxu1 %v2881_v0  ;;  %v2900_v0 = vld [vmem:[%s3907_s9 + $0x10] sm:$0xff]  }
  0x74   :  { %2669 = vmatprep.subr.bf16.mxu1 %v3098_v38 }
  0x75   :  { %2664 = vmatpush3.bf16.msra.mxu0 %v2889_v43 }
  0x76   :  { %2689 = vmatprep.subr.bf16.mxu0 %v3098_v38 }
 0x101   :  { %v2490_v7 = vpop.f32.mrb[0].mxu0 }
 0x102   :  { %v2491_v9 = vpop.f32.mrb[1].mxu0 }
 0x103   :  { %v2492_v10 = vadd.f32 %v2491_v9, %v2490_v7  ;;  %v2493_v11 = vpop.f32.mrb[2].mxu0  ;;  %v2512_v12 = vpop.f32.mrb[0].mxu1 }
 0x104   :  { %v2494_v13 = vpop.f32.mrb[3].mxu0  ;;  %v2513_v16 = vpop.f32.mrb[1].mxu1 }
 0x105   :  { %v551_v14 = vadd.f32 %v2492_v10, %v2274_v8  ;;  %v2495_v15 = vadd.f32 %v2494_v13, %v2493_v11  ;;  %v2514_v17 = vadd.f32 %v2513_v16, %v2512_v12  ;;  %v2515_v18 = vpop.f32.mrb[2].mxu1  ;;  %v2906_v16 = vld [vmem:[%s3909_s11] sm:$0xff]  }
 0x106   :  { %v2516_v20 = vpop.f32.mrb[3].mxu1 }
 0x107   :  { %v554_v19 = vadd.f32 %v2495_v15, %v2274_v8  ;;  %v592_v21 = vadd.f32 %v2514_v17, %v551_v14  ;;  %v2517_v22 = vadd.f32 %v2516_v20, %v2515_v18  ;;  %v2904_v14 = vld [vmem:[%s3907_s9 + $0x30] sm:$0xff]   ;;  %v2905_v15 = vld [vmem:[%s3907_s9 + $0x38] sm:$0xff]   ;;  %v2907_v17 = vld [vmem:[%s3909_s11 + $0x8] sm:$0xff]  }
 0x108   :  { %v2908_v18 = vld [vmem:[%s3909_s11 + $0x10] sm:$0xff]   ;;  %v2910_v20 = vld [vmem:[%s3909_s11 + $0x20] sm:$0xff]  }
 0x109   :  { %v595_v23 = vadd.f32 %v2517_v22, %v554_v19  ;;  %v2909_v19 = vld [vmem:[%s3909_s11 + $0x18] sm:$0xff]   ;;  %v2350_v22 = vld [vmem:[%s3906_s8] ss:$0 sm:$0xff] }
 0x10b   :  { %v673_v24 = vpop.f32.mrb[4].mxu1 }
 0x10c   :  { %v2627_v25 = vpop.f32.mrb[5].mxu1 }
 0x10d   :  { %v676_v26 = vpop.f32.mrb[6].mxu1 }
 0x10e   :  { %v2628_v27 = vpop.f32.mrb[7].mxu1 }
 0x121   :  { %v2534_v28 = vpop.f32.mrb[4].mxu0 }
 0x122   :  { %v2535_v29 = vpop.f32.mrb[5].mxu0 }
 0x123   :  { %v2536_v30 = vadd.f32 %v2535_v29, %v2534_v28  ;;  %v2537_v31 = vpop.f32.mrb[6].mxu0 }
 0x124   :  { %v2538_v32 = vpop.f32.mrb[7].mxu0 }
 0x125   :  { %v633_v33 = vadd.f32 %v2536_v30, %v592_v21  ;;  %v2539_v34 = vadd.f32 %v2538_v32, %v2537_v31  ;;  %v2911_v21 = vld [vmem:[%s3909_s11 + $0x28] sm:$0xff]   ;;  %v2912_v32 = vld [vmem:[%s3909_s11 + $0x30] sm:$0xff]  }
 0x127   :  { %v674_v35 = vadd.f32 %v673_v24, %v633_v33  ;;  %v636_v36 = vadd.f32 %v2539_v34, %v595_v23  ;;  %v2913_v33 = vld [vmem:[%s3909_s11 + $0x38] sm:$0xff]   ;;  %v2914_v34 = vld [vmem:[%s3911_s13] sm:$0xff]  }
 0x129   :  { %v677_v37 = vadd.f32 %v676_v26, %v636_v36  ;;  %v680_v39 = vmax.f32 %v674_v35, 0.0  ;;  %v2915_v35 = vld [vmem:[%s3911_s13 + $0x8] sm:$0xff]   ;;  %v2916_v36 = vld [vmem:[%s3911_s13 + $0x10] sm:$0xff]  }
 0x12b   :  { %v681_v40 = vmax.f32 %v677_v37, 0.0  ;;  %v2917_v37 = vld [vmem:[%s3911_s13 + $0x18] sm:$0xff]  }
 0x12d   :  { %v699_v41 = vpack.c.bf16 %v681_v40, %v680_v39  ;;  %v2918_v39 = vld [vmem:[%s3911_s13 + $0x20] sm:$0xff]   ;;  %v2919_v40 = vld [vmem:[%s3911_s13 + $0x28] sm:$0xff]  }
 0x12f   :  { %2646 = vmatmul.mubr.bf16.vlgmr.msra.gmra.mrb[8].mxu1 %v699_v41  ;;  %v2359_v41 = vld [vmem:[%s3908_s10] ss:$0 sm:$0xff] }
 0x130   :  { %2685 = vmatprep.mubr.msk.bf16.mxu1 %vm3099_vm0, %v3098_v38  ;;  %2670 = vmatpush3.bf16.msra.mxu1 %v2890_v44 }
 0x131   :  { %2671 = vmatprep.subr.bf16.mxu1 %v3098_v38 }
 0x134   :  { %2672 = vmatpush3.bf16.msra.mxu1 %v2891_v45 }
 0x135   :  { %2673 = vmatprep.subr.bf16.mxu1 %v3098_v38 }
 0x138   :  { %2674 = vmatpush3.bf16.msra.mxu1 %v2892_v46 }
 0x139   :  { %2675 = vmatprep.subr.bf16.mxu1 %v3098_v38 }
 0x13c   :  { %2676 = vmatpush3.bf16.msra.mxu1 %v2893_v47 }
 0x13d   :  { %2677 = vmatprep.subr.bf16.mxu1 %v3098_v38 }
 0x140   :  { %2678 = vmatpush3.bf16.msra.mxu1 %v2894_v48 }
 0x141   :  { %2679 = vmatprep.subr.bf16.mxu1 %v3098_v38 }
 0x144   :  { %2680 = vmatpush3.bf16.msra.mxu1 %v2895_v49  ;;  %v2920_v49 = vld [vmem:[%s3911_s13 + $0x30] sm:$0xff]  }
 0x145   :  { %2681 = vmatprep.subr.bf16.mxu1 %v3098_v38 }
 0x148   :  { %2682 = vmatpush3.bf16.msra.mxu1 %v2896_v60 }
 0x149   :  { %2683 = vmatprep.subr.bf16.mxu1 %v3098_v38 }
 0x14c   :  { %2684 = vmatpush3.bf16.msra.mxu1 %v2897_v61 }
 0x14d   :  { %2709 = vmatprep.subr.bf16.mxu1 %v3098_v38 }
 0x202   :  { %v788_v51 = vpop.f32.mrb[8].mxu1 }
 0x203   :  { %v789_v52 = vadd.f32 %v2332_v50, %v788_v51  ;;  %v2647_v53 = vpop.f32.mrb[9].mxu1  ;;  %v2922_v51 = vld [vmem:[%s3913_s15] sm:$0xff]  }
 0x204   :  { %v791_v54 = vpop.f32.mrb[10].mxu1  ;;  %v2924_v53 = vld [vmem:[%s3913_s15 + $0x10] sm:$0xff]  }
 0x205   :  { %v792_v55 = vadd.f32 %v2332_v50, %v791_v54  ;;  %v2648_v56 = vpop.f32.mrb[11].mxu1  ;;  %v795_v57 = vmax.f32 %v789_v52, 0.0  ;;  %v2921_v50 = vld [vmem:[%s3911_s13 + $0x38] sm:$0xff]   ;;  %v2923_v52 = vld [vmem:[%s3913_s15 + $0x8] sm:$0xff]  }
 0x206   :  { %v2925_v54 = vld [vmem:[%s3913_s15 + $0x18] sm:$0xff]   ;;  %v2927_v56 = vld [vmem:[%s3913_s15 + $0x28] sm:$0xff]  }
 0x207   :  { %v796_v58 = vmax.f32 %v792_v55, 0.0  ;;  %v2926_v55 = vld [vmem:[%s3913_s15 + $0x20] sm:$0xff]  }
 0x209   :  { %v814_v59 = vpack.c.bf16 %v796_v58, %v795_v57  ;;  %v2368_v57 = vld [vmem:[%s3910_s12] ss:$0 sm:$0xff] }
 0x20b   :  { %2666 = vmatmul.mubr.bf16.vlgmr.msra.gmra.mrb[8].mxu0 %v814_v59 }
 0x20c   :  { %2705 = vmatprep.mubr.msk.bf16.mxu0 %vm3099_vm0, %v3098_v38  ;;  %2690 = vmatpush3.bf16.msra.mxu0 %v2898_v62 }
 0x20d   :  { %2691 = vmatprep.subr.bf16.mxu0 %v3098_v38 }
 0x210   :  { %2692 = vmatpush3.bf16.msra.mxu0 %v2899_v63 }
 0x211   :  { %2693 = vmatprep.subr.bf16.mxu0 %v3098_v38 }
 0x214   :  { %2694 = vmatpush3.bf16.msra.mxu0 %v2900_v0 }
 0x215   :  { %2695 = vmatprep.subr.bf16.mxu0 %v3098_v38 }
 0x218   :  { %2696 = vmatpush3.bf16.msra.mxu0 %v2901_v1 }
 0x219   :  { %2697 = vmatprep.subr.bf16.mxu0 %v3098_v38 }
 0x21c   :  { %2698 = vmatpush3.bf16.msra.mxu0 %v2902_v2 }
 0x21d   :  { %2699 = vmatprep.subr.bf16.mxu0 %v3098_v38 }
 0x220   :  { %2700 = vmatpush3.bf16.msra.mxu0 %v2903_v3  ;;  %v2928_v3 = vld [vmem:[%s3913_s15 + $0x30] sm:$0xff]  }
 0x221   :  { %2701 = vmatprep.subr.bf16.mxu0 %v3098_v38 }
 0x224   :  { %2702 = vmatpush3.bf16.msra.mxu0 %v2904_v14 }
 0x225   :  { %2703 = vmatprep.subr.bf16.mxu0 %v3098_v38 }
 0x228   :  { %2704 = vmatpush3.bf16.msra.mxu0 %v2905_v15 }
 0x229   :  { %2729 = vmatprep.subr.bf16.mxu0 %v3098_v38 }
 0x2de   :  { %v903_v5 = vpop.f32.mrb[8].mxu0 }
 0x2df   :  { %v904_v6 = vadd.f32 %v2341_v4, %v903_v5  ;;  %v2667_v7 = vpop.f32.mrb[9].mxu0  ;;  %v2930_v5 = vld [vmem:[%s3915_s17] sm:$0xff]  }
 0x2e0   :  { %v906_v8 = vpop.f32.mrb[10].mxu0  ;;  %v2932_v7 = vld [vmem:[%s3915_s17 + $0x10] sm:$0xff]  }
 0x2e1   :  { %v907_v9 = vadd.f32 %v2341_v4, %v906_v8  ;;  %v2668_v10 = vpop.f32.mrb[11].mxu0  ;;  %v910_v11 = vmax.f32 %v904_v6, 0.0  ;;  %v2929_v4 = vld [vmem:[%s3913_s15 + $0x38] sm:$0xff]   ;;  %v2931_v6 = vld [vmem:[%s3915_s17 + $0x8] sm:$0xff]  }
 0x2e2   :  { %v2933_v8 = vld [vmem:[%s3915_s17 + $0x18] sm:$0xff]   ;;  %v2935_v10 = vld [vmem:[%s3915_s17 + $0x28] sm:$0xff]  }
 0x2e3   :  { %v911_v12 = vmax.f32 %v907_v9, 0.0  ;;  %v2934_v9 = vld [vmem:[%s3915_s17 + $0x20] sm:$0xff]  }
 0x2e5   :  { %v929_v13 = vpack.c.bf16 %v911_v12, %v910_v11  ;;  %v2377_v11 = vld [vmem:[%s3912_s14] ss:$0 sm:$0xff] }
 0x2e7   :  { %2686 = vmatmul.mubr.bf16.vlgmr.msra.gmra.mrb[12].mxu1 %v929_v13 }
 0x2e8   :  { %2725 = vmatprep.mubr.msk.bf16.mxu1 %vm3099_vm0, %v3098_v38  ;;  %2710 = vmatpush3.bf16.msra.mxu1 %v2906_v16 }
 0x2e9   :  { %2711 = vmatprep.subr.bf16.mxu1 %v3098_v38 }
 0x2ec   :  { %2712 = vmatpush3.bf16.msra.mxu1 %v2907_v17 }
 0x2ed   :  { %2713 = vmatprep.subr.bf16.mxu1 %v3098_v38 }
 0x2f0   :  { %2714 = vmatpush3.bf16.msra.mxu1 %v2908_v18 }
 0x2f1   :  { %2715 = vmatprep.subr.bf16.mxu1 %v3098_v38 }
 0x2f4   :  { %2716 = vmatpush3.bf16.msra.mxu1 %v2909_v19 }
 0x2f5   :  { %2717 = vmatprep.subr.bf16.mxu1 %v3098_v38 }
 0x2f8   :  { %2718 = vmatpush3.bf16.msra.mxu1 %v2910_v20 }
 0x2f9   :  { %2719 = vmatprep.subr.bf16.mxu1 %v3098_v38 }
 0x2fc   :  { %2720 = vmatpush3.bf16.msra.mxu1 %v2911_v21  ;;  %v2936_v21 = vld [vmem:[%s3915_s17 + $0x30] sm:$0xff]  }
 0x2fd   :  { %2721 = vmatprep.subr.bf16.mxu1 %v3098_v38 }
 0x300   :  { %2722 = vmatpush3.bf16.msra.mxu1 %v2912_v32  ;;  %v2964_v32 = vld [vmem:[%s3917_s19 + $0xe4] ss:$28 sps:$4 sm:$0xff]  }
 0x301   :  { %2723 = vmatprep.subr.bf16.mxu1 %v3098_v38 }
 0x304   :  { %2724 = vmatpush3.bf16.msra.mxu1 %v2913_v33  ;;  %v2962_v33 = vld [vmem:[%s3917_s19 + $0xe0] ss:$28 sps:$4 sm:$0xff]  }
 0x305   :  { %2749 = vmatprep.subr.bf16.mxu1 %v3098_v38 }
 0x3ba   :  { %v1018_v23 = vpop.f32.mrb[12].mxu1 }
 0x3bb   :  { %v1019_v24 = vadd.f32 %v2350_v22, %v1018_v23  ;;  %v2687_v25 = vpop.f32.mrb[13].mxu1  ;;  %v2938_v23 = vld [vmem:[%s3917_s19] ss:$28 sps:$4 sm:$0xff]  }
 0x3bc   :  { %v1021_v26 = vpop.f32.mrb[14].mxu1  ;;  %v2943_v25 = vld [vmem:[%s3917_s19 + $0xc] ss:$28 sps:$4 sm:$0xff]  }
 0x3bd   :  { %v1022_v27 = vadd.f32 %v2350_v22, %v1021_v26  ;;  %v2688_v28 = vpop.f32.mrb[15].mxu1  ;;  %v1025_v29 = vmax.f32 %v1019_v24, 0.0  ;;  %v2937_v22 = vld [vmem:[%s3915_s17 + $0x38] sm:$0xff]   ;;  %v2940_v24 = vld [vmem:[%s3917_s19 + $0x4] ss:$28 sps:$4 sm:$0xff]  }
 0x3be   :  { %v2946_v26 = vld [vmem:[%s3917_s19 + $0x3c] ss:$28 sps:$4 sm:$0xff]   ;;  %v2952_v28 = vld [vmem:[%s3917_s19 + $0x74] ss:$28 sps:$4 sm:$0xff]  }
 0x3bf   :  { %v1026_v30 = vmax.f32 %v1022_v27, 0.0  ;;  %v2944_v27 = vld [vmem:[%s3917_s19 + $0x38] ss:$28 sps:$4 sm:$0xff]  }
 0x3c1   :  { %v1044_v31 = vpack.c.bf16 %v1026_v30, %v1025_v29  ;;  %v2950_v29 = vld [vmem:[%s3917_s19 + $0x70] ss:$28 sps:$4 sm:$0xff]  }
 0x3c2   :  { %v2958_v30 = vld [vmem:[%s3917_s19 + $0xac] ss:$28 sps:$4 sm:$0xff]  }
 0x3c3   :  { %2706 = vmatmul.mubr.bf16.vlgmr.msra.gmra.mrb[12].mxu0 %v1044_v31  ;;  %v2956_v31 = vld [vmem:[%s3917_s19 + $0xa8] ss:$28 sps:$4 sm:$0xff]  }
 0x3c4   :  { %2745 = vmatprep.mubr.msk.bf16.mxu0 %vm3099_vm0, %v3098_v38  ;;  %2730 = vmatpush3.bf16.msra.mxu0 %v2914_v34  ;;  %v2970_v34 = vld [vmem:[%s3917_s19 + $0x11c] ss:$28 sps:$4 sm:$0xff]  }
 0x3c5   :  { %2731 = vmatprep.subr.bf16.mxu0 %v3098_v38 }
 0x3c8   :  { %2732 = vmatpush3.bf16.msra.mxu0 %v2915_v35  ;;  %v2968_v35 = vld [vmem:[%s3917_s19 + $0x118] ss:$28 sps:$4 sm:$0xff]  }
 0x3c9   :  { %2733 = vmatprep.subr.bf16.mxu0 %v3098_v38 }
 0x3cc   :  { %2734 = vmatpush3.bf16.msra.mxu0 %v2916_v36  ;;  %v2386_v36 = vld [vmem:[%s3914_s16] ss:$0 sm:$0xff] }
 0x3cd   :  { %2735 = vmatprep.subr.bf16.mxu0 %v3098_v38 }
 0x3d0   :  { %2736 = vmatpush3.bf16.msra.mxu0 %v2917_v37 }
 0x3d1   :  { %2737 = vmatprep.subr.bf16.mxu0 %v3098_v38 }
 0x3d4   :  { %2738 = vmatpush3.bf16.msra.mxu0 %v2918_v39 }
 0x3d5   :  { %2739 = vmatprep.subr.bf16.mxu0 %v3098_v38 }
 0x3d8   :  { %2740 = vmatpush3.bf16.msra.mxu0 %v2919_v40 }
 0x3d9   :  { %2741 = vmatprep.subr.bf16.mxu0 %v3098_v38 }
 0x3dc   :  { %2742 = vmatpush3.bf16.msra.mxu0 %v2920_v49  ;;  %v2947_v49 = vld [vmem:[%s3917_s19 + $0x40] ss:$28 sps:$4 sm:$0xff]  }
 0x3dd   :  { %2743 = vmatprep.subr.bf16.mxu0 %v3098_v38 }
 0x3e0   :  { %2744 = vmatpush3.bf16.msra.mxu0 %v2921_v50  ;;  %v2955_v50 = vld [vmem:[%s3917_s19 + $0x7c] ss:$28 sps:$4 sm:$0xff]  }
 0x3e1   :  { %2769 = vmatprep.subr.bf16.mxu0 %v3098_v38 }
 0x496   :  { %v1133_v42 = vpop.f32.mrb[12].mxu0 }
 0x497   :  { %v2707_v43 = vpop.f32.mrb[13].mxu0  ;;  %v1134_v45 = vadd.f32 %v2359_v41, %v1133_v42 }
 0x498   :  { %v1136_v44 = vpop.f32.mrb[14].mxu0 }
 0x499   :  { %v1137_v46 = vadd.f32 %v2359_v41, %v1136_v44  ;;  %v2708_v47 = vpop.f32.mrb[15].mxu0 }
 0x49b   :  { %v1157_v48 = vpack.c.bf16 %v1137_v46, %v1134_v45  ;;  %v2941_v46 = vld [vmem:[%s3917_s19 + $0x8] ss:$28 sps:$4 sm:$0xff]  }
 0x49d   :  { %2726 = vmatmul.mubr.bf16.vlgmr.msra.gmra.mrb[16].mxu1 %v1157_v48  ;;  %v2949_v48 = vld [vmem:[%s3917_s19 + $0x44] ss:$28 sps:$4 sm:$0xff]  }
 0x49e   :  { %2765 = vmatprep.mubr.msk.bf16.mxu1 %vm3099_vm0, %v3098_v38  ;;  %2750 = vmatpush3.bf16.msra.mxu1 %v2922_v51  ;;  %v2953_v51 = vld [vmem:[%s3917_s19 + $0x78] ss:$28 sps:$4 sm:$0xff]  }
 0x49f   :  { %2751 = vmatprep.subr.bf16.mxu1 %v3098_v38 }
 0x4a2   :  { %2752 = vmatpush3.bf16.msra.mxu1 %v2923_v52  ;;  %v2961_v52 = vld [vmem:[%s3917_s19 + $0xb4] ss:$28 sps:$4 sm:$0xff]  }
 0x4a3   :  { %2753 = vmatprep.subr.bf16.mxu1 %v3098_v38 }
 0x4a6   :  { %2754 = vmatpush3.bf16.msra.mxu1 %v2924_v53  ;;  %v2959_v53 = vld [vmem:[%s3917_s19 + $0xb0] ss:$28 sps:$4 sm:$0xff]  }
 0x4a7   :  { %2755 = vmatprep.subr.bf16.mxu1 %v3098_v38 }
 0x4aa   :  { %2756 = vmatpush3.bf16.msra.mxu1 %v2925_v54  ;;  %v2967_v54 = vld [vmem:[%s3917_s19 + $0xec] ss:$28 sps:$4 sm:$0xff]  }
 0x4ab   :  { %2757 = vmatprep.subr.bf16.mxu1 %v3098_v38 }
 0x4ae   :  { %2758 = vmatpush3.bf16.msra.mxu1 %v2926_v55  ;;  %v2965_v55 = vld [vmem:[%s3917_s19 + $0xe8] ss:$28 sps:$4 sm:$0xff]  }
 0x4af   :  { %2759 = vmatprep.subr.bf16.mxu1 %v3098_v38 }
 0x4b2   :  { %2760 = vmatpush3.bf16.msra.mxu1 %v2927_v56  ;;  %v2973_v56 = vld [vmem:[%s3917_s19 + $0x124] ss:$28 sps:$4 sm:$0xff]  }
 0x4b3   :  { %2761 = vmatprep.subr.bf16.mxu1 %v3098_v38 }
 0x4b6   :  { %2762 = vmatpush3.bf16.msra.mxu1 %v2928_v3  ;;  %v3100_v3 = vmov 0  }
 0x4b7   :  { %2763 = vmatprep.subr.bf16.mxu1 %v3098_v38 }
 0x4ba   :  { %2764 = vmatpush3.bf16.msra.mxu1 %v2929_v4  ;;  %v2395_v4 = vld [vmem:[%s3916_s18] ss:$0 sm:$0xff] }
 0x4bb   :  { %1990 = vmatprep.subr.bf16.mxu1 %v2940_v24  ;;  %v3001_v24 = vld [vmem:[%s3917_s19 + $0xc0] ss:$28 sps:$4 sm:$0xff]  }
 0x570   :  { %v1246_v58 = vpop.f32.mrb[16].mxu1 }
 0x571   :  { %v1247_v59 = vadd.f32 %v2368_v57, %v1246_v58  ;;  %v2727_v60 = vpop.f32.mrb[17].mxu1  ;;  %v2976_v58 = vld [vmem:[%s3917_s19 + $0x154] ss:$28 sps:$4 sm:$0xff]  }
 0x572   :  { %v1249_v61 = vpop.f32.mrb[18].mxu1  ;;  %v2974_v60 = vld [vmem:[%s3917_s19 + $0x150] ss:$28 sps:$4 sm:$0xff]  }
 0x573   :  { %v1250_v62 = vadd.f32 %v2368_v57, %v1249_v61  ;;  %v2728_v63 = vpop.f32.mrb[19].mxu1  ;;  %v1253_v0 = vmax.f32 %v1247_v59, 0.0  ;;  %v2971_v57 = vld [vmem:[%s3917_s19 + $0x120] ss:$28 sps:$4 sm:$0xff]   ;;  %v2977_v61 = vld [vmem:[%s3917_s19 + $0x158] ss:$28 sps:$4 sm:$0xff]  }
 0x574   :  { %v2979_v59 = vld [vmem:[%s3917_s19 + $0x15c] ss:$28 sps:$4 sm:$0xff]   ;;  %v2985_v63 = vld [vmem:[%s3917_s19 + $0x194] ss:$28 sps:$4 sm:$0xff]  }
 0x575   :  { %v1254_v1 = vmax.f32 %v1250_v62, 0.0  ;;  %v2982_v62 = vld [vmem:[%s3917_s19 + $0x18c] ss:$28 sps:$4 sm:$0xff]  }
 0x577   :  { %v1272_v2 = vpack.c.bf16 %v1254_v1, %v1253_v0  ;;  %v2980_v0 = vld [vmem:[%s3917_s19 + $0x188] ss:$28 sps:$4 sm:$0xff]   ;;  %v2983_v1 = vld [vmem:[%s3917_s19 + $0x190] ss:$28 sps:$4 sm:$0xff]  }
 0x579   :  { %2746 = vmatmul.mubr.bf16.vlgmr.msra.gmra.mrb[16].mxu0 %v1272_v2  ;;  %v2988_v2 = vld [vmem:[%s3917_s19 + $0x14] ss:$28 sps:$4 sm:$0xff]  }
 0x57a   :  { %2785 = vmatprep.mubr.msk.bf16.mxu0 %vm3099_vm0, %v3098_v38  ;;  %2770 = vmatpush3.bf16.msra.mxu0 %v2930_v5 }
 0x57b   :  { %2771 = vmatprep.subr.bf16.mxu0 %v3098_v38 }
 0x57e   :  { %2772 = vmatpush3.bf16.msra.mxu0 %v2931_v6 }
 0x57f   :  { %2773 = vmatprep.subr.bf16.mxu0 %v3098_v38 }
 0x582   :  { %2774 = vmatpush3.bf16.msra.mxu0 %v2932_v7 }
 0x583   :  { %2775 = vmatprep.subr.bf16.mxu0 %v3098_v38 }
 0x586   :  { %2776 = vmatpush3.bf16.msra.mxu0 %v2933_v8 }
 0x587   :  { %2777 = vmatprep.subr.bf16.mxu0 %v3098_v38 }
 0x58a   :  { %2778 = vmatpush3.bf16.msra.mxu0 %v2934_v9 }
 0x58b   :  { %2779 = vmatprep.subr.bf16.mxu0 %v3098_v38 }
 0x58e   :  { %2780 = vmatpush3.bf16.msra.mxu0 %v2935_v10 }
 0x58f   :  { %2781 = vmatprep.subr.bf16.mxu0 %v3098_v38 }
 0x592   :  { %2782 = vmatpush3.bf16.msra.mxu0 %v2936_v21  ;;  %v2997_v21 = vld [vmem:[%s3917_s19 + $0x88] ss:$28 sps:$4 sm:$0xff]  }
 0x593   :  { %2783 = vmatprep.subr.bf16.mxu0 %v3098_v38 }
 0x596   :  { %2784 = vmatpush3.bf16.msra.mxu0 %v2937_v22  ;;  %v3000_v22 = vld [vmem:[%s3917_s19 + $0xbc] ss:$28 sps:$4 sm:$0xff]  }
 0x597   :  { %2033 = vmatprep.subr.bf16.mxu0 %v2943_v25  ;;  %v3004_v25 = vld [vmem:[%s3917_s19 + $0xf4] ss:$28 sps:$4 sm:$0xff]  }
 0x64c   :  { %v1361_v12 = vpop.f32.mrb[16].mxu0 }
 0x64d   :  { %v1362_v13 = vadd.f32 %v2377_v11, %v1361_v12  ;;  %v2747_v14 = vpop.f32.mrb[17].mxu0 }
 0x64e   :  { %v1364_v15 = vpop.f32.mrb[18].mxu0  ;;  %v2989_v14 = vld [vmem:[%s3917_s19 + $0x18] ss:$28 sps:$4 sm:$0xff]  }
 0x64f   :  { %v1365_v16 = vadd.f32 %v2377_v11, %v1364_v15  ;;  %v2748_v17 = vpop.f32.mrb[19].mxu0  ;;  %v1368_v18 = vmax.f32 %v1362_v13, 0.0  ;;  %v2986_v13 = vld [vmem:[%s3917_s19 + $0x10] ss:$28 sps:$4 sm:$0xff]  }
 0x650   :  { %v2990_v17 = vld [vmem:[%s3917_s19 + $0x48] ss:$28 sps:$4 sm:$0xff]  }
 0x651   :  { %v1369_v19 = vmax.f32 %v1365_v16, 0.0  ;;  %v2992_v16 = vld [vmem:[%s3917_s19 + $0x4c] ss:$28 sps:$4 sm:$0xff]  }
 0x653   :  { %v1387_v20 = vpack.c.bf16 %v1369_v19, %v1368_v18  ;;  %v2993_v18 = vld [vmem:[%s3917_s19 + $0x50] ss:$28 sps:$4 sm:$0xff]   ;;  %v2996_v19 = vld [vmem:[%s3917_s19 + $0x84] ss:$28 sps:$4 sm:$0xff]  }
 0x655   :  { %2766 = vmatmul.mubr.bf16.vlgmr.msra.gmra.mrb[20].mxu1 %v1387_v20  ;;  %v2994_v20 = vld [vmem:[%s3917_s19 + $0x80] ss:$28 sps:$4 sm:$0xff]  }
 0x656   :  { %1991 = vmatpush1.bf16.msra.mxu1 %v2938_v23  ;;  %2022 = vmatprep.mubr.bf16.mxu1 %v3100_v3  ;;  %v2998_v23 = vld [vmem:[%s3917_s19 + $0xb8] ss:$28 sps:$4 sm:$0xff]  }
 0x657   :  { %1992 = vmatprep.subr.bf16.mxu1 %v2946_v26  ;;  %v3002_v26 = vld [vmem:[%s3917_s19 + $0xf0] ss:$28 sps:$4 sm:$0xff]  }
 0x65a   :  { %1993 = vmatpush1.bf16.msra.mxu1 %v2944_v27  ;;  %v3005_v27 = vld [vmem:[%s3917_s19 + $0xf8] ss:$28 sps:$4 sm:$0xff]  }
 0x65b   :  { %1994 = vmatprep.subr.bf16.mxu1 %v2952_v28  ;;  %v3008_v28 = vld [vmem:[%s3917_s19 + $0x12c] ss:$28 sps:$4 sm:$0xff]  }
 0x65e   :  { %1995 = vmatpush1.bf16.msra.mxu1 %v2950_v29  ;;  %v3006_v29 = vld [vmem:[%s3917_s19 + $0x128] ss:$28 sps:$4 sm:$0xff]  }
 0x65f   :  { %1996 = vmatprep.subr.bf16.mxu1 %v2958_v30  ;;  %v3009_v30 = vld [vmem:[%s3917_s19 + $0x130] ss:$28 sps:$4 sm:$0xff]  }
 0x662   :  { %1997 = vmatpush1.bf16.msra.mxu1 %v2956_v31  ;;  %v3012_v31 = vld [vmem:[%s3917_s19 + $0x164] ss:$28 sps:$4 sm:$0xff]  }
 0x663   :  { %1998 = vmatprep.subr.bf16.mxu1 %v2964_v32  ;;  %v3010_v32 = vld [vmem:[%s3917_s19 + $0x160] ss:$28 sps:$4 sm:$0xff]  }
 0x666   :  { %1999 = vmatpush1.bf16.msra.mxu1 %v2962_v33  ;;  %v3013_v33 = vld [vmem:[%s3917_s19 + $0x168] ss:$28 sps:$4 sm:$0xff]  }
 0x667   :  { %2000 = vmatprep.subr.bf16.mxu1 %v2970_v34  ;;  %v3016_v34 = vld [vmem:[%s3917_s19 + $0x19c] ss:$28 sps:$4 sm:$0xff]  }
 0x66a   :  { %2001 = vmatpush1.bf16.msra.mxu1 %v2968_v35  ;;  %v3014_v35 = vld [vmem:[%s3917_s19 + $0x198] ss:$28 sps:$4 sm:$0xff]  }
 0x66b   :  { %2002 = vmatprep.subr.bf16.mxu1 %v2976_v58 }
 0x66e   :  { %2003 = vmatpush1.bf16.msra.mxu1 %v2974_v60 }
 0x66f   :  { %2004 = vmatprep.subr.bf16.mxu1 %v2982_v62 }
 0x672   :  { %2005 = vmatpush1.bf16.msra.mxu1 %v2980_v0 }
 0x673   :  { %2076 = vmatprep.subr.bf16.mxu1 %v2988_v2 }
 0x728   :  { %v1476_v37 = vpop.f32.mrb[20].mxu1 }
 0x729   :  { %v1477_v39 = vadd.f32 %v2386_v36, %v1476_v37  ;;  %v2767_v40 = vpop.f32.mrb[21].mxu1  ;;  %v1667_v37 = vlaneseq }
 0x72a   :  { %v1479_v41 = vpop.f32.mrb[22].mxu1 }
 0x72b   :  { %v1480_v42 = vadd.f32 %v2386_v36, %v1479_v41  ;;  %v2768_v43 = vpop.f32.mrb[23].mxu1  ;;  %v1483_v44 = vmax.f32 %v1477_v39, 0.0  ;;  %v3017_v36 = vld [vmem:[%s3917_s19 + $0x1a0] ss:$28 sps:$4 sm:$0xff]   ;;  %v3863_v39 = vshrl.u32 %v1667_v37, 7  ;;  %s3101_s19 = smov [#allocation2]  }
 0x72d   :  { %v1484_v45 = vmax.f32 %v1480_v42, 0.0  ;;  %v1669_v40 = vsub.s32 0, %v3863_v39  ;;  %v1677_v41 = vsub.s32 2, %v3863_v39  ;;  %v3870_v42 = vld [vmem:[%s3918_s20] sm:$0x7f]  ;;  %v1673_v43 = vsub.s32 1, %v3863_v39 }
 0x72e   :  { %s2263_s20 = sshll.u32 %s3101_s19, 4  ;;  %s2264_s20 = int_to_ptr.vmem [resolvable:$true] %s2263_s20 }
 0x72f   :  { %v1502_v47 = vpack.c.bf16 %v1484_v45, %v1483_v44  ;;  %v1670_v44 = vrot.slane %v3870_v42, %v1669_v40  ;;  %v1678_v45 = vrot.slane %v3870_v42, %v1677_v41  ;;  %s3074_s17 = scalar_lea.vmem %s2264_s20, 1792  ;;  %p3079_p1 = scmp.lt.s32.totalorder %s2264_s20, %s2264_s20 }
 0x730   :  { %p3075_p0 = scmp.ne.s32.totalorder %s2264_s20, %s3074_s17  ;;  %p3080_p2 = scmp.lt.s32.totalorder %s3074_s17, %s3074_s17 }
 0x731   :  { %2786 = vmatmul.mubr.bf16.vlgmr.msra.gmra.mrb[20].mxu0 %v1502_v47 }
 0x732   :  { %2034 = vmatpush1.bf16.msra.mxu0 %v2941_v46  ;;  %2065 = vmatprep.mubr.bf16.mxu0 %v3100_v3  ;;  %v1674_v46 = vrot.slane %v3870_v42, %v1673_v43  ;;  %p3081_p3 = por %p3080_p2, %p3079_p1 }
 0x733   :  { %2035 = vmatprep.subr.bf16.mxu0 %v2949_v48 }
 0x734   :  { %p3082_p4 = pnand %p3081_p3, %p3075_p0 }
 0x736   :  { %2036 = vmatpush1.bf16.msra.mxu0 %v2947_v49 }
 0x737   :  { %2037 = vmatprep.subr.bf16.mxu0 %v2955_v50 }
 0x73a   :  { %2038 = vmatpush1.bf16.msra.mxu0 %v2953_v51 }
 0x73b   :  { %2039 = vmatprep.subr.bf16.mxu0 %v2961_v52 }
 0x73e   :  { %2040 = vmatpush1.bf16.msra.mxu0 %v2959_v53 }
 0x73f   :  { %2041 = vmatprep.subr.bf16.mxu0 %v2967_v54 }
 0x742   :  { %2042 = vmatpush1.bf16.msra.mxu0 %v2965_v55 }
 0x743   :  { %2043 = vmatprep.subr.bf16.mxu0 %v2973_v56 }
 0x746   :  { %2044 = vmatpush1.bf16.msra.mxu0 %v2971_v57 }
 0x747   :  { %2045 = vmatprep.subr.bf16.mxu0 %v2979_v59 }
 0x74a   :  { %2046 = vmatpush1.bf16.msra.mxu0 %v2977_v61 }
 0x74b   :  { %2047 = vmatprep.subr.bf16.mxu0 %v2985_v63 }
 0x74e   :  { %2048 = vmatpush1.bf16.msra.mxu0 %v2983_v1 }
 0x74f   :  { %2789 = vmatprep.subr.bf16.mxu0 %v3098_v38 }
 0x804   :  { %v1591_v5 = vpop.f32.mrb[20].mxu0 }
 0x805   :  { %v1592_v6 = vadd.f32 %v2395_v4, %v1591_v5  ;;  %v2787_v7 = vpop.f32.mrb[21].mxu0 }
 0x806   :  { %v1594_v8 = vpop.f32.mrb[22].mxu0 }
 0x807   :  { %v1595_v9 = vadd.f32 %v2395_v4, %v1594_v8  ;;  %v2788_v10 = vpop.f32.mrb[23].mxu0  ;;  %v1598_v11 = vmax.f32 %v1592_v6, 0.0 }
 0x809   :  { %v1599_v12 = vmax.f32 %v1595_v9, 0.0 }
 0x80b   :  { %v1665_v15 = vpack.c.bf16 %v1599_v12, %v1598_v11 }
 0x80d   :  { %2023 = vmatmul.mubr.bf16.vlgmr.msra.gmra.mrb[24].mxu1 %v1665_v15  ;;  %2066 = vmatmul.mubr.bf16.vlgmr.msra.gmra.mrb[24].mxu0 %v1665_v15 }
 0x80e   :  { %2077 = vmatpush1.bf16.msra.mxu1 %v2986_v13  ;;  %2790 = vmatpush3.bf16.msra.mxu0 %v2989_v14 }
 0x80f   :  { %2078 = vmatprep.subr.bf16.mxu1 %v2992_v16  ;;  %2791 = vmatprep.subr.bf16.mxu0 %v3098_v38 }
 0x810   :  { %2108 = vmatprep.mubr.bf16.mxu1 %v3100_v3  ;;  %2805 = vmatprep.mubr.msk.bf16.mxu0 %vm3099_vm0, %v3098_v38 }
 0x812   :  { %2079 = vmatpush1.bf16.msra.mxu1 %v2990_v17  ;;  %2792 = vmatpush3.bf16.msra.mxu0 %v2993_v18 }
 0x813   :  { %2080 = vmatprep.subr.bf16.mxu1 %v2996_v19  ;;  %2793 = vmatprep.subr.bf16.mxu0 %v3098_v38 }
 0x816   :  { %2081 = vmatpush1.bf16.msra.mxu1 %v2994_v20  ;;  %2794 = vmatpush3.bf16.msra.mxu0 %v2997_v21 }
 0x817   :  { %2082 = vmatprep.subr.bf16.mxu1 %v3000_v22  ;;  %2795 = vmatprep.subr.bf16.mxu0 %v3098_v38 }
 0x81a   :  { %2083 = vmatpush1.bf16.msra.mxu1 %v2998_v23  ;;  %2796 = vmatpush3.bf16.msra.mxu0 %v3001_v24  ;;  %v1685_v24 = vsub.s32 4, %v3863_v39 }
 0x81b   :  { %2084 = vmatprep.subr.bf16.mxu1 %v3004_v25  ;;  %2797 = vmatprep.subr.bf16.mxu0 %v3098_v38  ;;  %v1693_v25 = vsub.s32 6, %v3863_v39 }
 0x81e   :  { %2085 = vmatpush1.bf16.msra.mxu1 %v3002_v26  ;;  %2798 = vmatpush3.bf16.msra.mxu0 %v3005_v27  ;;  %v1689_v26 = vsub.s32 5, %v3863_v39 }
 0x81f   :  { %2086 = vmatprep.subr.bf16.mxu1 %v3008_v28  ;;  %2799 = vmatprep.subr.bf16.mxu0 %v3098_v38 }
 0x822   :  { %2087 = vmatpush1.bf16.msra.mxu1 %v3006_v29  ;;  %2800 = vmatpush3.bf16.msra.mxu0 %v3009_v30  ;;  %v1686_v29 = vrot.slane %v3870_v42, %v1685_v24  ;;  %v1694_v30 = vrot.slane %v3870_v42, %v1693_v25 }
 0x823   :  { %2088 = vmatprep.subr.bf16.mxu1 %v3012_v31  ;;  %2801 = vmatprep.subr.bf16.mxu0 %v3098_v38 }
 0x826   :  { %2089 = vmatpush1.bf16.msra.mxu1 %v3010_v32  ;;  %2802 = vmatpush3.bf16.msra.mxu0 %v3013_v33  ;;  %v1690_v32 = vrot.slane %v3870_v42, %v1689_v26 }
 0x827   :  { %2090 = vmatprep.subr.bf16.mxu1 %v3016_v34  ;;  %2803 = vmatprep.subr.bf16.mxu0 %v3098_v38  ;;  %v1681_v38 = vsub.s32 3, %v3863_v39 }
 0x829   :  { %v1682_v47 = vrot.slane %v3870_v42, %v1681_v38 }
 0x82a   :  { %2091 = vmatpush1.bf16.msra.mxu1 %v3014_v35  ;;  %2804 = vmatpush3.bf16.msra.mxu0 %v3017_v36 }
 0x82d   :  { %2109 = vmatmul.mubr.bf16.vlgmr.msra.gmra.mrb[28].mxu1 %v1665_v15  ;;  %2806 = vmatmul.mubr.bf16.vlgmr.msra.gmra.mrb[28].mxu0 %v1665_v15 }
 0x8e0   :  { %v2024_v48 = vpop.f32.mrb[24].mxu1  ;;  %v2067_v49 = vpop.f32.mrb[24].mxu0 }
 0x8e1   :  { %v2025_v50 = vadd.f32 %v2024_v48, %v1670_v44  ;;  %v2068_v51 = vadd.f32 %v2067_v49, %v1678_v45  ;;  %v2026_v52 = vpop.f32.mrb[25].mxu1  ;;  %v2069_v53 = vpop.f32.mrb[25].mxu0 }
 0x8e2   :  { %v2027_v54 = vadd.f32 %v2026_v52, %v1674_v46  ;;  %v2070_v55 = vadd.f32 %v2069_v53, %v1682_v47  ;;  %v2028_v56 = vpop.f32.mrb[26].mxu1  ;;  %v2071_v57 = vpop.f32.mrb[26].mxu0 }
 0x8e3   :  { %v2460_v58 = vmul.f32 -1.442695, %v2025_v50  ;;  %v2462_v59 = vmul.f32 -1.442695, %v2068_v51  ;;  %v2029_v60 = vadd.f32 %v2028_v56, %v1670_v44  ;;  %v2072_v61 = vadd.f32 %v2071_v57, %v1678_v45  ;;  %v2030_v62 = vpop.f32.mrb[27].mxu1  ;;  %v2073_v63 = vpop.f32.mrb[27].mxu0 }
 0x8e4   :  { %v2461_v0 = vmul.f32 -1.442695, %v2027_v54  ;;  %v2463_v1 = vmul.f32 -1.442695, %v2070_v55  ;;  %v2031_v2 = vadd.f32 %v2030_v62, %v1674_v46  ;;  %v2074_v3 = vadd.f32 %v2073_v63, %v1682_v47 }
 0x8e5   :  { %3018 = vpow2.f32 %v2460_v58  ;;  %v2467_v4 = vmul.f32 -1.442695, %v2029_v60  ;;  %v2469_v5 = vmul.f32 -1.442695, %v2072_v61 }
 0x8e6   :  { %3020 = vpow2.f32 %v2462_v59  ;;  %v2468_v6 = vmul.f32 -1.442695, %v2031_v2  ;;  %v2470_v7 = vmul.f32 -1.442695, %v2074_v3 }
 0x8e7   :  { %3022 = vpow2.f32 %v2461_v0 }
 0x8e8   :  { %3024 = vpow2.f32 %v2463_v1 }
 0x8e9   :  { %3026 = vpow2.f32 %v2467_v4 }
 0x8ea   :  { %3028 = vpow2.f32 %v2469_v5 }
 0x8eb   :  { %3030 = vpow2.f32 %v2468_v6 }
 0x8ec   :  { %3032 = vpow2.f32 %v2470_v7 }
 0x8ef   :  { %v3019_v8 = vpop.eup %3018 }
 0x8f0   :  { %v3021_v9 = vpop.eup %3020  ;;  %v2202_v10 = vadd.f32 1.0, %v3019_v8 }
 0x8f1   :  { %v3023_v11 = vpop.eup %3022  ;;  %v2204_v12 = vadd.f32 1.0, %v3021_v9 }
 0x8f2   :  { %v3025_v13 = vpop.eup %3024  ;;  %3034 = vrcp.f32 %v2202_v10  ;;  %v2203_v14 = vadd.f32 1.0, %v3023_v11 }
 0x8f3   :  { %v3027_v15 = vpop.eup %3026  ;;  %3036 = vrcp.f32 %v2204_v12  ;;  %v2205_v16 = vadd.f32 1.0, %v3025_v13 }
 0x8f4   :  { %v3029_v17 = vpop.eup %3028  ;;  %3038 = vrcp.f32 %v2203_v14  ;;  %v2209_v18 = vadd.f32 1.0, %v3027_v15 }
 0x8f5   :  { %v3031_v19 = vpop.eup %3030  ;;  %3040 = vrcp.f32 %v2205_v16  ;;  %v2211_v20 = vadd.f32 1.0, %v3029_v17 }
 0x8f6   :  { %v3033_v21 = vpop.eup %3032  ;;  %3042 = vrcp.f32 %v2209_v18  ;;  %v2210_v22 = vadd.f32 1.0, %v3031_v19 }
 0x8f7   :  { %3044 = vrcp.f32 %v2211_v20  ;;  %v2212_v23 = vadd.f32 1.0, %v3033_v21 }
 0x8f8   :  { %3046 = vrcp.f32 %v2210_v22 }
 0x8f9   :  { %3048 = vrcp.f32 %v2212_v23 }
 0x8fc   :  { %v3035_v27 = vpop.eup %3034 }
 0x8fd   :  { %v3037_v28 = vpop.eup %3036  ;;  %2244 = vst [vmem:[#allocation2] sm:$0xff] %v3035_v27 }
 0x8fe   :  { %v3039_v31 = vpop.eup %3038  ;;  %2246 = vst [vmem:[#allocation2 + $0x10] sm:$0xff] %v3037_v28 }
 0x8ff   :  { %v3041_v33 = vpop.eup %3040  ;;  %2245 = vst [vmem:[#allocation2 + $0x8] sm:$0xff] %v3039_v31 }
 0x900   :  { %v3043_v34 = vpop.eup %3042  ;;  %2247 = vst [vmem:[#allocation2 + $0x18] sm:$0xff] %v3041_v33  ;;  %v2110_v35 = vpop.f32.mrb[28].mxu1 }
 0x901   :  { %v2153_v36 = vpop.f32.mrb[28].mxu0  ;;  %v3045_v37 = vpop.eup %3044  ;;  %2251 = vst [vmem:[#allocation2 + $0x38] sm:$0xff] %v3043_v34  ;;  %v2111_v39 = vadd.f32 %v2110_v35, %v1686_v29 }
 0x902   :  { %v2154_v40 = vadd.f32 %v2153_v36, %v1694_v30  ;;  %v2112_v41 = vpop.f32.mrb[29].mxu1  ;;  %v2807_v43 = vpop.f32.mrb[29].mxu0  ;;  %2253 = vst [vmem:[#allocation2 + $0x48] sm:$0xff] %v3045_v37 }
 0x903   :  { %v3047_v38 = vpop.eup %3046  ;;  %v2113_v44 = vadd.f32 %v2112_v41, %v1690_v32  ;;  %v2114_v45 = vpop.f32.mrb[30].mxu1  ;;  %v2464_v42 = vmul.f32 -1.442695, %v2111_v39 }
 0x904   :  { %v2156_v46 = vpop.f32.mrb[30].mxu0  ;;  %v3049_v47 = vpop.eup %3048  ;;  %2252 = vst [vmem:[#allocation2 + $0x40] sm:$0xff] %v3047_v38  ;;  %v2466_v48 = vmul.f32 -1.442695, %v2154_v40  ;;  %v2115_v49 = vadd.f32 %v2114_v45, %v1686_v29 }
 0x905   :  { %v2157_v50 = vadd.f32 %v2156_v46, %v1694_v30  ;;  %v2116_v51 = vpop.f32.mrb[31].mxu1  ;;  %v2808_v52 = vpop.f32.mrb[31].mxu0  ;;  %2254 = vst [vmem:[#allocation2 + $0x50] sm:$0xff] %v3049_v47  ;;  %v2465_v53 = vmul.f32 -1.442695, %v2113_v44  ;;  %3050 = vpow2.f32 %v2464_v42 }
 0x906   :  { %v2117_v54 = vadd.f32 %v2116_v51, %v1690_v32  ;;  %v2471_v55 = vmul.f32 -1.442695, %v2115_v49  ;;  %3052 = vpow2.f32 %v2466_v48 }
 0x907   :  { %v2473_v56 = vmul.f32 -1.442695, %v2157_v50  ;;  %3054 = vpow2.f32 %v2465_v53 }
 0x908   :  { %v2472_v57 = vmul.f32 -1.442695, %v2117_v54  ;;  %3056 = vpow2.f32 %v2471_v55 }
 0x909   :  { %3058 = vpow2.f32 %v2473_v56 }
 0x90a   :  { %3060 = vpow2.f32 %v2472_v57 }
 0x90f   :  { %v3051_v58 = vpop.eup %3050 }
 0x910   :  { %v3053_v59 = vpop.eup %3052  ;;  %v2206_v60 = vadd.f32 1.0, %v3051_v58 }
 0x911   :  { %v3055_v61 = vpop.eup %3054  ;;  %v2208_v62 = vadd.f32 1.0, %v3053_v59 }
 0x912   :  { %v3057_v63 = vpop.eup %3056  ;;  %3062 = vrcp.f32 %v2206_v60  ;;  %v2207_v0 = vadd.f32 1.0, %v3055_v61 }
 0x913   :  { %v3059_v1 = vpop.eup %3058  ;;  %3064 = vrcp.f32 %v2208_v62  ;;  %v2213_v2 = vadd.f32 1.0, %v3057_v63 }
 0x914   :  { %v3061_v3 = vpop.eup %3060  ;;  %3066 = vrcp.f32 %v2207_v0  ;;  %v2215_v4 = vadd.f32 1.0, %v3059_v1 }
 0x915   :  { %3068 = vrcp.f32 %v2213_v2  ;;  %v2214_v5 = vadd.f32 1.0, %v3061_v3 }
 0x916   :  { %3070 = vrcp.f32 %v2215_v4 }
 0x917   :  { %3072 = vrcp.f32 %v2214_v5 }
 0x91c   :  { %v3063_v6 = vpop.eup %3062 }
 0x91d   :  { %v3065_v7 = vpop.eup %3064  ;;  %2248 = vst [vmem:[#allocation2 + $0x20] sm:$0xff] %v3063_v6 }
 0x91e   :  { %v3067_v8 = vpop.eup %3066  ;;  %2250 = vst.msk [vmem:[#allocation2 + $0x30] sm:$0xff] %vm512_vm1, %v3065_v7 }
 0x91f   :  { %v3069_v9 = vpop.eup %3068  ;;  %2249 = vst [vmem:[#allocation2 + $0x28] sm:$0xff] %v3067_v8 }
 0x920   :  { %v3071_v10 = vpop.eup %3070  ;;  %2255 = vst [vmem:[#allocation2 + $0x58] sm:$0xff] %v3069_v9 }
 0x921   :  { %v3073_v11 = vpop.eup %3072  ;;  %2257 = vst.msk [vmem:[#allocation2 + $0x68] sm:$0xff] %vm512_vm1, %v3071_v10 }
 0x922   :  { %2256 = vst [vmem:[#allocation2 + $0x60] sm:$0xff] %v3073_v11 }
 0x923   :  { %3085 = shalt.err (!%p3082_p4)
}
 0x924   :  { %s3086_s24 = scalar_lea.hbm %s3919_s21, 1792 }
 0x925   :  { %p3087_p5 = scmp.ne.s32.totalorder %s3919_s21, %s3086_s24  ;;  %p3090_p6 = scmp.lt.u32.totalorder %s3086_s24, %s3919_s21 }
 0x927   :  { %p3092_p7 = pnand %p3090_p6, %p3087_p5 }
 0x929   :  { %3095 = shalt.err (!%p3092_p7)
}
 0x92a   :  { %s3102_s6 = smov 896   ;;  %s3103_s25 = smov 56  }
 0x92b   :  { %2269 = dma.vmem_to_hbm [thread:$0]  %s2264_s20, 1792, %s3919_s21, [#allocation3], %s3102_s6, %s3102_s6, %s3103_s25  }
 0x92c   :  { %3096 = dma.done.wait [#allocation3], 1792  }
 0x92d   :  { %3097 = vsyncadd [#allocation3], 4294965504 }
 0x92e   :  { %2273 = vsyncpa [#allocation3], 1 }

</bundles_post_ra>
